<compile_context>
chip_gen: v6e
topology: v6e:2x2x1
jax: 0.10.0
libtpu: 0.0.40
codegen_flags: <defaults>
</compile_context>

<pallas_src>
import jax
import jax.numpy as jnp
from jax import lax
from jax.experimental import pallas as pl
from jax.experimental.pallas import tpu as pltpu

B = 8        # batch (> 1 so the bn1/bn2 branch is taken)
F_IN = 384   # flattened omic feature dim (fcg = Linear(z.shape[1], 256) built at forward time)
E = 256      # self.embedding_dims
L = 10       # Highway num_layers
O = 4        # output_dims
OP = 128     # lane-dense padded output width (sliced back to O in the wrapper)
EPS_BN = 1e-5
EPS_LN = 1e-5

# Row layout of the packed per-feature vector block (8, E).
ROW_BG, ROW_PRE_S, ROW_PRE_B, ROW_BN2_S, ROW_BN2_B, ROW_BO = 0, 1, 2, 3, 4, 5


def _mm_prognosis_kernel(
    x_ref,       # (B, F_IN)    f32   flattened omic input
    wg_ref,      # (F_IN, E)    bf16  fcg weight
    vec_ref,     # (8, E)       f32   packed [bg, pre_s, pre_b, bn2_s, bn2_b, bo_pad, 0, 0]
    hw_w_ref,    # (L, E, 3E)   bf16  fused highway weights [gate|nonlinear|linear]
    hw_b_ref,    # (L, 3E)      f32   fused highway biases
    wo_ref,      # (E, OP)      bf16  LayerNorm-folded, zero-padded head weight
    out_ref,     # (B, OP)      f32
):
    bg    = vec_ref[ROW_BG:ROW_BG + 1, :]
    pre_s = vec_ref[ROW_PRE_S:ROW_PRE_S + 1, :]
    pre_b = vec_ref[ROW_PRE_B:ROW_PRE_B + 1, :]
    bn2_s = vec_ref[ROW_BN2_S:ROW_BN2_S + 1, :]
    bn2_b = vec_ref[ROW_BN2_B:ROW_BN2_B + 1, :]
    bo    = vec_ref[ROW_BO:ROW_BO + 1, :OP]

    # --- omic_encoder + masked_mean + bn1 (folded) ---
    z = jnp.tanh(
        jnp.dot(x_ref[...].astype(jnp.bfloat16), wg_ref[...],
                preferred_element_type=jnp.float32)
        + bg
    )
    # masked_mean((z, 1), ones(256,1)) == (z + 1)/256; bn1 eval affine folded in.
    # F.dropout(p=0.5, training=False) -> identity.
    h = z * pre_s + pre_b

    # TODO(synk): var / var2 / ratio are computed in the torch forward but only consumed
    # by the loss (pred['ratio']); they never influence the returned logits, so omitted.

    # --- Highway: 10 layers unrolled, h carried in vregs (no VMEM round-trips) ---
    for l in range(L):
        proj = (
            jnp.dot(h.astype(jnp.bfloat16), hw_w_ref[l],
                    preferred_element_type=jnp.float32)
            + hw_b_ref[l:l + 1, :]
        )
        gate = jax.nn.sigmoid(proj[:, :E])
        nl = jnp.maximum(proj[:, E:2 * E], 0.0)
        lin = proj[:, 2 * E:]
        h = gate * nl + (1.0 - gate) * lin

    # --- bn2 + LayerNorm (affine pre-folded into wo/bo) + Linear(E, O) ---
    hh = h * bn2_s + bn2_b
    mu = jnp.mean(hh, axis=-1, keepdims=True)
    var = jnp.mean((hh - mu) ** 2, axis=-1, keepdims=True)
    hn = (hh - mu) * lax.rsqrt(var + EPS_LN)
    out_ref[...] = (
        jnp.dot(hn.astype(jnp.bfloat16), wo_ref[...],
                preferred_element_type=jnp.float32)
        + bo
    )


def mm_prognosis_forward(x, p):
    def full(shape):
        n = len(shape)
        return pl.BlockSpec(shape, lambda i, _n=n: (0,) * _n)

    grid_spec = pltpu.PrefetchScalarGridSpec(
        num_scalar_prefetch=0,
        grid=(1,),                          # single step: everything resident
        in_specs=[
            full((B, F_IN)),                # x
            full((F_IN, E)),                # wg (bf16)
            full((8, E)),                   # packed per-feature vectors
            full((L, E, 3 * E)),            # fused highway weight stack (bf16)
            full((L, 3 * E)),               # fused highway bias stack
            full((E, OP)),                  # head weight (LN-folded, padded, bf16)
        ],
        out_specs=pl.BlockSpec((B, OP), lambda i: (0, 0)),
    )
    out = pl.pallas_call(
        _mm_prognosis_kernel,
        out_shape=jax.ShapeDtypeStruct((B, OP), jnp.float32),
        grid_spec=grid_spec,
        compiler_params=pltpu.CompilerParams(
            dimension_semantics=("arbitrary",),
        ),
    )(
        x,
        p["wg"], p["vec"],
        p["hw_w"], p["hw_b"],
        p["wo_fold"],
    )
    return out[:, :O]


def _linear_init(key, fan_in, shape_w, shape_b):
    # torch.nn.Linear default init: U(-1/sqrt(fan_in), 1/sqrt(fan_in)), deterministic here.
    bound = 1.0 / (fan_in ** 0.5)
    kw, kb = jax.random.split(key)
    w = jax.random.uniform(kw, shape_w, jnp.float32, -bound, bound)
    b = jax.random.uniform(kb, shape_b, jnp.float32, -bound, bound)
    return w, b


def init_params(key):
    keys = jax.random.split(key, 5)
    wg, bg = _linear_init(keys[0], F_IN, (F_IN, E), (1, E))

    def stacked(k):
        ws, bs = [], []
        for lk in jax.random.split(k, L):
            w, b = _linear_init(lk, E, (E, E), (1, E))
            ws.append(w)
            bs.append(b)
        return jnp.stack(ws, axis=0), jnp.concatenate(bs, axis=0)

    hwg_w, hwg_b = stacked(keys[1])   # gate
    hwn_w, hwn_b = stacked(keys[2])   # nonlinear
    hwl_w, hwl_b = stacked(keys[3])   # linear

    # Fuse highway projections: [gate | nonlinear | linear] along the output axis.
    hw_w = jnp.concatenate([hwg_w, hwn_w, hwl_w], axis=-1)   # (L, E, 3E)
    hw_b = jnp.concatenate([hwg_b, hwn_b, hwl_b], axis=-1)   # (L, 3E)

    wo, bo = _linear_init(keys[4], E, (E, O), (1, O))

    # BatchNorm1d eval with default stats: y = (x - 0)/sqrt(1 + eps) * 1 + 0.
    # (With real trained running stats, compute scale/shift from the checkpoint instead.)
    bn_scale = jnp.full((1, E), 1.0 / (1.0 + EPS_BN) ** 0.5, jnp.float32)
    bn_shift = jnp.zeros((1, E), jnp.float32)

    # Fold masked_mean ((z + 1)/E) and bn1 affine into one scale/shift:
    #   h = ((z + 1)/E) * s + b = z * (s/E) + (s/E + b)
    pre_s = bn_scale / E
    pre_b = bn_scale / E + bn_shift

    # Fold the LayerNorm affine (default gamma=1, beta=0) into the head linear:
    #   (hn * g + b) @ wo + bo == hn @ (g.T * wo) + (b @ wo + bo)
    ln_g = jnp.ones((1, E), jnp.float32)
    ln_b = jnp.zeros((1, E), jnp.float32)
    wo_fold = ln_g.T * wo                 # (E, O)
    bo_fold = ln_b @ wo + bo              # (1, O)
    wo_pad = jnp.zeros((E, OP), jnp.float32).at[:, :O].set(wo_fold)
    bo_pad = jnp.zeros((1, OP), jnp.float32).at[:, :O].set(bo_fold)

    # Pack all tiny per-feature vectors into one (8, E) block -> single DMA.
    vec = jnp.zeros((8, E), jnp.float32)
    vec = vec.at[ROW_BG].set(bg[0])
    vec = vec.at[ROW_PRE_S].set(pre_s[0])
    vec = vec.at[ROW_PRE_B].set(pre_b[0])
    vec = vec.at[ROW_BN2_S].set(bn_scale[0])
    vec = vec.at[ROW_BN2_B].set(bn_shift[0])
    vec = vec.at[ROW_BO, :OP].set(bo_pad[0])

    return dict(
        wg=wg.astype(jnp.bfloat16),
        vec=vec,
        hw_w=hw_w.astype(jnp.bfloat16),
        hw_b=hw_b,
        wo_fold=wo_pad.astype(jnp.bfloat16),
    )


def reference_forward(x, p):
    """Pure-JAX mirror of the torch forward (omic branch, eval mode), f32 math on the
    same (bf16-quantized, LN-folded) weights the kernel consumes."""
    wg = p["wg"].astype(jnp.float32)
    hw_w = p["hw_w"].astype(jnp.float32)
    wo = p["wo_fold"].astype(jnp.float32)
    vec = p["vec"]
    bg, pre_s, pre_b = (vec[ROW_BG:ROW_BG + 1], vec[ROW_PRE_S:ROW_PRE_S + 1],
                        vec[ROW_PRE_B:ROW_PRE_B + 1])
    bn2_s, bn2_b = vec[ROW_BN2_S:ROW_BN2_S + 1], vec[ROW_BN2_B:ROW_BN2_B + 1]
    bo = vec[ROW_BO:ROW_BO + 1, :OP]

    z = jnp.tanh(x @ wg + bg)
    h = z * pre_s + pre_b                 # == bn1((z + 1)/E) in eval mode
    for l in range(L):
        proj = h @ hw_w[l] + p["hw_b"][l:l + 1]
        gate = jax.nn.sigmoid(proj[:, :E])
        nl = jax.nn.relu(proj[:, E:2 * E])
        lin = proj[:, 2 * E:]
        h = gate * nl + (1.0 - gate) * lin
    h = h * bn2_s + bn2_b
    mu = jnp.mean(h, axis=-1, keepdims=True)
    var = jnp.mean((h - mu) ** 2, axis=-1, keepdims=True)
    hn = (h - mu) / jnp.sqrt(var + EPS_LN)
    return (hn @ wo + bo)[:, :O]


if __name__ == "__main__":
    key = jax.random.PRNGKey(0)
    kx, kp = jax.random.split(key)
    x = jax.random.normal(kx, (B, F_IN), jnp.float32)
    params = init_params(kp)

    out = mm_prognosis_forward(x, params)
    jax.block_until_ready(out)

    ref = reference_forward(x, params)
    assert out.shape == (B, O)
    # bf16 matmul inputs (f32 accumulation) -> relaxed tolerance vs f32 reference.
    assert jnp.allclose(out, ref, atol=2e-2, rtol=2e-2), (out, ref)
    print("KERNEL_OK")
</pallas_src>

<mosaic_0001>
module attributes {stable_mosaic.version = 11 : i64} {
  func.func @_mm_prognosis_kernel(%arg0: i32, %arg1: memref<8x384xf32, #tpu.memory_space<vmem>>, %arg2: memref<384x256xbf16, #tpu.memory_space<vmem>>, %arg3: memref<8x256xf32, #tpu.memory_space<vmem>>, %arg4: memref<10x256x768xbf16, #tpu.memory_space<vmem>>, %arg5: memref<10x768xf32, #tpu.memory_space<vmem>>, %arg6: memref<256x128xbf16, #tpu.memory_space<vmem>>, %arg7: memref<8x128xf32, #tpu.memory_space<vmem>>) attributes {dimension_semantics = [#tpu.dimension_semantics<arbitrary>], iteration_bounds = array<i64: 1>, scalar_prefetch = 0 : i64, scratch_operands = 0 : i64, tpu.core_type = #tpu.core_type<tc>, window_params = [{pipeline_mode = #tpu.pipeline_mode<synchronous>, transform_indices = @transform_0, window_bounds = array<i64: 8, 384>}, {pipeline_mode = #tpu.pipeline_mode<synchronous>, transform_indices = @transform_1, window_bounds = array<i64: 384, 256>}, {pipeline_mode = #tpu.pipeline_mode<synchronous>, transform_indices = @transform_2, window_bounds = array<i64: 8, 256>}, {pipeline_mode = #tpu.pipeline_mode<synchronous>, transform_indices = @transform_3, window_bounds = array<i64: 10, 256, 768>}, {pipeline_mode = #tpu.pipeline_mode<synchronous>, transform_indices = @transform_4, window_bounds = array<i64: 10, 768>}, {pipeline_mode = #tpu.pipeline_mode<synchronous>, transform_indices = @transform_5, window_bounds = array<i64: 256, 128>}, {pipeline_mode = #tpu.pipeline_mode<synchronous>, transform_indices = @transform_6, window_bounds = array<i64: 8, 128>}]} {
    %c0 = arith.constant 0 : index
    %c0_0 = arith.constant 0 : index
    %0 = vector.load %arg3[%c0, %c0_0] : memref<8x256xf32, #tpu.memory_space<vmem>>, vector<1x256xf32>
    %c1 = arith.constant 1 : index
    %c0_1 = arith.constant 0 : index
    %1 = vector.load %arg3[%c1, %c0_1] : memref<8x256xf32, #tpu.memory_space<vmem>>, vector<1x256xf32>
    %c2 = arith.constant 2 : index
    %c0_2 = arith.constant 0 : index
    %2 = vector.load %arg3[%c2, %c0_2] : memref<8x256xf32, #tpu.memory_space<vmem>>, vector<1x256xf32>
    %c3 = arith.constant 3 : index
    %c0_3 = arith.constant 0 : index
    %3 = vector.load %arg3[%c3, %c0_3] : memref<8x256xf32, #tpu.memory_space<vmem>>, vector<1x256xf32>
    %c4 = arith.constant 4 : index
    %c0_4 = arith.constant 0 : index
    %4 = vector.load %arg3[%c4, %c0_4] : memref<8x256xf32, #tpu.memory_space<vmem>>, vector<1x256xf32>
    %c5 = arith.constant 5 : index
    %c0_5 = arith.constant 0 : index
    %5 = vector.load %arg3[%c5, %c0_5] : memref<8x256xf32, #tpu.memory_space<vmem>>, vector<1x128xf32>
    %c0_6 = arith.constant 0 : index
    %c0_7 = arith.constant 0 : index
    %6 = vector.load %arg1[%c0_6, %c0_7] : memref<8x384xf32, #tpu.memory_space<vmem>>, vector<8x384xf32>
    %7 = arith.truncf %6 : vector<8x384xf32> to vector<8x384xbf16>
    %c0_8 = arith.constant 0 : index
    %c0_9 = arith.constant 0 : index
    %8 = vector.load %arg2[%c0_8, %c0_9] : memref<384x256xbf16, #tpu.memory_space<vmem>>, vector<384x256xbf16>
    %cst = arith.constant dense<0.000000e+00> : vector<8x256xf32>
    %9 = tpu.matmul %7, %8, %cst {dimension_numbers = #tpu.dot_dimension_numbers<[1], [0], [0], [1], [0, 0, 1, 1], [], []>} : vector<8x384xbf16>, vector<384x256xbf16>, vector<8x256xf32> -> vector<8x256xf32>
    %10 = vector.broadcast %0 : vector<1x256xf32> to vector<8x256xf32>
    %11 = arith.addf %9, %10 : vector<8x256xf32>
    %12 = math.tanh %11 : vector<8x256xf32>
    %13 = vector.broadcast %1 : vector<1x256xf32> to vector<8x256xf32>
    %14 = arith.mulf %12, %13 : vector<8x256xf32>
    %15 = vector.broadcast %2 : vector<1x256xf32> to vector<8x256xf32>
    %16 = arith.addf %14, %15 : vector<8x256xf32>
    %17 = arith.truncf %16 : vector<8x256xf32> to vector<8x256xbf16>
    %c0_10 = arith.constant 0 : index
    %c0_11 = arith.constant 0 : index
    %c0_12 = arith.constant 0 : index
    %18 = vector.load %arg4[%c0_10, %c0_11, %c0_12] : memref<10x256x768xbf16, #tpu.memory_space<vmem>>, vector<1x256x768xbf16>
    %19 = vector.shape_cast %18 : vector<1x256x768xbf16> to vector<256x768xbf16>
    %cst_13 = arith.constant dense<0.000000e+00> : vector<8x768xf32>
    %20 = tpu.matmul %17, %19, %cst_13 {dimension_numbers = #tpu.dot_dimension_numbers<[1], [0], [0], [1], [0, 0, 1, 1], [], []>} : vector<8x256xbf16>, vector<256x768xbf16>, vector<8x768xf32> -> vector<8x768xf32>
    %c0_14 = arith.constant 0 : index
    %c0_15 = arith.constant 0 : index
    %21 = vector.load %arg5[%c0_14, %c0_15] : memref<10x768xf32, #tpu.memory_space<vmem>>, vector<1x768xf32>
    %22 = vector.broadcast %21 : vector<1x768xf32> to vector<8x768xf32>
    %23 = arith.addf %20, %22 : vector<8x768xf32>
    %24 = vector.extract_strided_slice %23 {offsets = [0, 0], sizes = [8, 256], strides = [1, 1]} : vector<8x768xf32> to vector<8x256xf32>
    %25 = arith.negf %24 : vector<8x256xf32>
    %26 = math.exp %25 : vector<8x256xf32>
    %cst_16 = arith.constant 1.000000e+00 : f32
    %27 = vector.broadcast %cst_16 : f32 to vector<8x256xf32>
    %28 = arith.addf %27, %26 : vector<8x256xf32>
    %29 = arith.divf %27, %28 : vector<8x256xf32>
    %30 = vector.extract_strided_slice %23 {offsets = [0, 256], sizes = [8, 256], strides = [1, 1]} : vector<8x768xf32> to vector<8x256xf32>
    %cst_17 = arith.constant 0.000000e+00 : f32
    %31 = vector.broadcast %cst_17 : f32 to vector<8x256xf32>
    %32 = arith.maximumf %30, %31 : vector<8x256xf32>
    %33 = vector.extract_strided_slice %23 {offsets = [0, 512], sizes = [8, 256], strides = [1, 1]} : vector<8x768xf32> to vector<8x256xf32>
    %34 = arith.mulf %29, %32 : vector<8x256xf32>
    %cst_18 = arith.constant 1.000000e+00 : f32
    %35 = vector.broadcast %cst_18 : f32 to vector<8x256xf32>
    %36 = arith.subf %35, %29 : vector<8x256xf32>
    %37 = arith.mulf %36, %33 : vector<8x256xf32>
    %38 = arith.addf %34, %37 : vector<8x256xf32>
    %39 = arith.truncf %38 : vector<8x256xf32> to vector<8x256xbf16>
    %c1_19 = arith.constant 1 : index
    %c0_20 = arith.constant 0 : index
    %c0_21 = arith.constant 0 : index
    %40 = vector.load %arg4[%c1_19, %c0_20, %c0_21] : memref<10x256x768xbf16, #tpu.memory_space<vmem>>, vector<1x256x768xbf16>
    %41 = vector.shape_cast %40 : vector<1x256x768xbf16> to vector<256x768xbf16>
    %cst_22 = arith.constant dense<0.000000e+00> : vector<8x768xf32>
    %42 = tpu.matmul %39, %41, %cst_22 {dimension_numbers = #tpu.dot_dimension_numbers<[1], [0], [0], [1], [0, 0, 1, 1], [], []>} : vector<8x256xbf16>, vector<256x768xbf16>, vector<8x768xf32> -> vector<8x768xf32>
    %c1_23 = arith.constant 1 : index
    %c0_24 = arith.constant 0 : index
    %43 = vector.load %arg5[%c1_23, %c0_24] : memref<10x768xf32, #tpu.memory_space<vmem>>, vector<1x768xf32>
    %44 = vector.broadcast %43 : vector<1x768xf32> to vector<8x768xf32>
    %45 = arith.addf %42, %44 : vector<8x768xf32>
    %46 = vector.extract_strided_slice %45 {offsets = [0, 0], sizes = [8, 256], strides = [1, 1]} : vector<8x768xf32> to vector<8x256xf32>
    %47 = arith.negf %46 : vector<8x256xf32>
    %48 = math.exp %47 : vector<8x256xf32>
    %cst_25 = arith.constant 1.000000e+00 : f32
    %49 = vector.broadcast %cst_25 : f32 to vector<8x256xf32>
    %50 = arith.addf %49, %48 : vector<8x256xf32>
    %51 = arith.divf %49, %50 : vector<8x256xf32>
    %52 = vector.extract_strided_slice %45 {offsets = [0, 256], sizes = [8, 256], strides = [1, 1]} : vector<8x768xf32> to vector<8x256xf32>
    %cst_26 = arith.constant 0.000000e+00 : f32
    %53 = vector.broadcast %cst_26 : f32 to vector<8x256xf32>
    %54 = arith.maximumf %52, %53 : vector<8x256xf32>
    %55 = vector.extract_strided_slice %45 {offsets = [0, 512], sizes = [8, 256], strides = [1, 1]} : vector<8x768xf32> to vector<8x256xf32>
    %56 = arith.mulf %51, %54 : vector<8x256xf32>
    %cst_27 = arith.constant 1.000000e+00 : f32
    %57 = vector.broadcast %cst_27 : f32 to vector<8x256xf32>
    %58 = arith.subf %57, %51 : vector<8x256xf32>
    %59 = arith.mulf %58, %55 : vector<8x256xf32>
    %60 = arith.addf %56, %59 : vector<8x256xf32>
    %61 = arith.truncf %60 : vector<8x256xf32> to vector<8x256xbf16>
    %c2_28 = arith.constant 2 : index
    %c0_29 = arith.constant 0 : index
    %c0_30 = arith.constant 0 : index
    %62 = vector.load %arg4[%c2_28, %c0_29, %c0_30] : memref<10x256x768xbf16, #tpu.memory_space<vmem>>, vector<1x256x768xbf16>
    %63 = vector.shape_cast %62 : vector<1x256x768xbf16> to vector<256x768xbf16>
    %cst_31 = arith.constant dense<0.000000e+00> : vector<8x768xf32>
    %64 = tpu.matmul %61, %63, %cst_31 {dimension_numbers = #tpu.dot_dimension_numbers<[1], [0], [0], [1], [0, 0, 1, 1], [], []>} : vector<8x256xbf16>, vector<256x768xbf16>, vector<8x768xf32> -> vector<8x768xf32>
    %c2_32 = arith.constant 2 : index
    %c0_33 = arith.constant 0 : index
    %65 = vector.load %arg5[%c2_32, %c0_33] : memref<10x768xf32, #tpu.memory_space<vmem>>, vector<1x768xf32>
    %66 = vector.broadcast %65 : vector<1x768xf32> to vector<8x768xf32>
    %67 = arith.addf %64, %66 : vector<8x768xf32>
    %68 = vector.extract_strided_slice %67 {offsets = [0, 0], sizes = [8, 256], strides = [1, 1]} : vector<8x768xf32> to vector<8x256xf32>
    %69 = arith.negf %68 : vector<8x256xf32>
    %70 = math.exp %69 : vector<8x256xf32>
    %cst_34 = arith.constant 1.000000e+00 : f32
    %71 = vector.broadcast %cst_34 : f32 to vector<8x256xf32>
    %72 = arith.addf %71, %70 : vector<8x256xf32>
    %73 = arith.divf %71, %72 : vector<8x256xf32>
    %74 = vector.extract_strided_slice %67 {offsets = [0, 256], sizes = [8, 256], strides = [1, 1]} : vector<8x768xf32> to vector<8x256xf32>
    %cst_35 = arith.constant 0.000000e+00 : f32
    %75 = vector.broadcast %cst_35 : f32 to vector<8x256xf32>
    %76 = arith.maximumf %74, %75 : vector<8x256xf32>
    %77 = vector.extract_strided_slice %67 {offsets = [0, 512], sizes = [8, 256], strides = [1, 1]} : vector<8x768xf32> to vector<8x256xf32>
    %78 = arith.mulf %73, %76 : vector<8x256xf32>
    %cst_36 = arith.constant 1.000000e+00 : f32
    %79 = vector.broadcast %cst_36 : f32 to vector<8x256xf32>
    %80 = arith.subf %79, %73 : vector<8x256xf32>
    %81 = arith.mulf %80, %77 : vector<8x256xf32>
    %82 = arith.addf %78, %81 : vector<8x256xf32>
    %83 = arith.truncf %82 : vector<8x256xf32> to vector<8x256xbf16>
    %c3_37 = arith.constant 3 : index
    %c0_38 = arith.constant 0 : index
    %c0_39 = arith.constant 0 : index
    %84 = vector.load %arg4[%c3_37, %c0_38, %c0_39] : memref<10x256x768xbf16, #tpu.memory_space<vmem>>, vector<1x256x768xbf16>
    %85 = vector.shape_cast %84 : vector<1x256x768xbf16> to vector<256x768xbf16>
    %cst_40 = arith.constant dense<0.000000e+00> : vector<8x768xf32>
    %86 = tpu.matmul %83, %85, %cst_40 {dimension_numbers = #tpu.dot_dimension_numbers<[1], [0], [0], [1], [0, 0, 1, 1], [], []>} : vector<8x256xbf16>, vector<256x768xbf16>, vector<8x768xf32> -> vector<8x768xf32>
    %c3_41 = arith.constant 3 : index
    %c0_42 = arith.constant 0 : index
    %87 = vector.load %arg5[%c3_41, %c0_42] : memref<10x768xf32, #tpu.memory_space<vmem>>, vector<1x768xf32>
    %88 = vector.broadcast %87 : vector<1x768xf32> to vector<8x768xf32>
    %89 = arith.addf %86, %88 : vector<8x768xf32>
    %90 = vector.extract_strided_slice %89 {offsets = [0, 0], sizes = [8, 256], strides = [1, 1]} : vector<8x768xf32> to vector<8x256xf32>
    %91 = arith.negf %90 : vector<8x256xf32>
    %92 = math.exp %91 : vector<8x256xf32>
    %cst_43 = arith.constant 1.000000e+00 : f32
    %93 = vector.broadcast %cst_43 : f32 to vector<8x256xf32>
    %94 = arith.addf %93, %92 : vector<8x256xf32>
    %95 = arith.divf %93, %94 : vector<8x256xf32>
    %96 = vector.extract_strided_slice %89 {offsets = [0, 256], sizes = [8, 256], strides = [1, 1]} : vector<8x768xf32> to vector<8x256xf32>
    %cst_44 = arith.constant 0.000000e+00 : f32
    %97 = vector.broadcast %cst_44 : f32 to vector<8x256xf32>
    %98 = arith.maximumf %96, %97 : vector<8x256xf32>
    %99 = vector.extract_strided_slice %89 {offsets = [0, 512], sizes = [8, 256], strides = [1, 1]} : vector<8x768xf32> to vector<8x256xf32>
    %100 = arith.mulf %95, %98 : vector<8x256xf32>
    %cst_45 = arith.constant 1.000000e+00 : f32
    %101 = vector.broadcast %cst_45 : f32 to vector<8x256xf32>
    %102 = arith.subf %101, %95 : vector<8x256xf32>
    %103 = arith.mulf %102, %99 : vector<8x256xf32>
    %104 = arith.addf %100, %103 : vector<8x256xf32>
    %105 = arith.truncf %104 : vector<8x256xf32> to vector<8x256xbf16>
    %c4_46 = arith.constant 4 : index
    %c0_47 = arith.constant 0 : index
    %c0_48 = arith.constant 0 : index
    %106 = vector.load %arg4[%c4_46, %c0_47, %c0_48] : memref<10x256x768xbf16, #tpu.memory_space<vmem>>, vector<1x256x768xbf16>
    %107 = vector.shape_cast %106 : vector<1x256x768xbf16> to vector<256x768xbf16>
    %cst_49 = arith.constant dense<0.000000e+00> : vector<8x768xf32>
    %108 = tpu.matmul %105, %107, %cst_49 {dimension_numbers = #tpu.dot_dimension_numbers<[1], [0], [0], [1], [0, 0, 1, 1], [], []>} : vector<8x256xbf16>, vector<256x768xbf16>, vector<8x768xf32> -> vector<8x768xf32>
    %c4_50 = arith.constant 4 : index
    %c0_51 = arith.constant 0 : index
    %109 = vector.load %arg5[%c4_50, %c0_51] : memref<10x768xf32, #tpu.memory_space<vmem>>, vector<1x768xf32>
    %110 = vector.broadcast %109 : vector<1x768xf32> to vector<8x768xf32>
    %111 = arith.addf %108, %110 : vector<8x768xf32>
    %112 = vector.extract_strided_slice %111 {offsets = [0, 0], sizes = [8, 256], strides = [1, 1]} : vector<8x768xf32> to vector<8x256xf32>
    %113 = arith.negf %112 : vector<8x256xf32>
    %114 = math.exp %113 : vector<8x256xf32>
    %cst_52 = arith.constant 1.000000e+00 : f32
    %115 = vector.broadcast %cst_52 : f32 to vector<8x256xf32>
    %116 = arith.addf %115, %114 : vector<8x256xf32>
    %117 = arith.divf %115, %116 : vector<8x256xf32>
    %118 = vector.extract_strided_slice %111 {offsets = [0, 256], sizes = [8, 256], strides = [1, 1]} : vector<8x768xf32> to vector<8x256xf32>
    %cst_53 = arith.constant 0.000000e+00 : f32
    %119 = vector.broadcast %cst_53 : f32 to vector<8x256xf32>
    %120 = arith.maximumf %118, %119 : vector<8x256xf32>
    %121 = vector.extract_strided_slice %111 {offsets = [0, 512], sizes = [8, 256], strides = [1, 1]} : vector<8x768xf32> to vector<8x256xf32>
    %122 = arith.mulf %117, %120 : vector<8x256xf32>
    %cst_54 = arith.constant 1.000000e+00 : f32
    %123 = vector.broadcast %cst_54 : f32 to vector<8x256xf32>
    %124 = arith.subf %123, %117 : vector<8x256xf32>
    %125 = arith.mulf %124, %121 : vector<8x256xf32>
    %126 = arith.addf %122, %125 : vector<8x256xf32>
    %127 = arith.truncf %126 : vector<8x256xf32> to vector<8x256xbf16>
    %c5_55 = arith.constant 5 : index
    %c0_56 = arith.constant 0 : index
    %c0_57 = arith.constant 0 : index
    %128 = vector.load %arg4[%c5_55, %c0_56, %c0_57] : memref<10x256x768xbf16, #tpu.memory_space<vmem>>, vector<1x256x768xbf16>
    %129 = vector.shape_cast %128 : vector<1x256x768xbf16> to vector<256x768xbf16>
    %cst_58 = arith.constant dense<0.000000e+00> : vector<8x768xf32>
    %130 = tpu.matmul %127, %129, %cst_58 {dimension_numbers = #tpu.dot_dimension_numbers<[1], [0], [0], [1], [0, 0, 1, 1], [], []>} : vector<8x256xbf16>, vector<256x768xbf16>, vector<8x768xf32> -> vector<8x768xf32>
    %c5_59 = arith.constant 5 : index
    %c0_60 = arith.constant 0 : index
    %131 = vector.load %arg5[%c5_59, %c0_60] : memref<10x768xf32, #tpu.memory_space<vmem>>, vector<1x768xf32>
    %132 = vector.broadcast %131 : vector<1x768xf32> to vector<8x768xf32>
    %133 = arith.addf %130, %132 : vector<8x768xf32>
    %134 = vector.extract_strided_slice %133 {offsets = [0, 0], sizes = [8, 256], strides = [1, 1]} : vector<8x768xf32> to vector<8x256xf32>
    %135 = arith.negf %134 : vector<8x256xf32>
    %136 = math.exp %135 : vector<8x256xf32>
    %cst_61 = arith.constant 1.000000e+00 : f32
    %137 = vector.broadcast %cst_61 : f32 to vector<8x256xf32>
    %138 = arith.addf %137, %136 : vector<8x256xf32>
    %139 = arith.divf %137, %138 : vector<8x256xf32>
    %140 = vector.extract_strided_slice %133 {offsets = [0, 256], sizes = [8, 256], strides = [1, 1]} : vector<8x768xf32> to vector<8x256xf32>
    %cst_62 = arith.constant 0.000000e+00 : f32
    %141 = vector.broadcast %cst_62 : f32 to vector<8x256xf32>
    %142 = arith.maximumf %140, %141 : vector<8x256xf32>
    %143 = vector.extract_strided_slice %133 {offsets = [0, 512], sizes = [8, 256], strides = [1, 1]} : vector<8x768xf32> to vector<8x256xf32>
    %144 = arith.mulf %139, %142 : vector<8x256xf32>
    %cst_63 = arith.constant 1.000000e+00 : f32
    %145 = vector.broadcast %cst_63 : f32 to vector<8x256xf32>
    %146 = arith.subf %145, %139 : vector<8x256xf32>
    %147 = arith.mulf %146, %143 : vector<8x256xf32>
    %148 = arith.addf %144, %147 : vector<8x256xf32>
    %149 = arith.truncf %148 : vector<8x256xf32> to vector<8x256xbf16>
    %c6 = arith.constant 6 : index
    %c0_64 = arith.constant 0 : index
    %c0_65 = arith.constant 0 : index
    %150 = vector.load %arg4[%c6, %c0_64, %c0_65] : memref<10x256x768xbf16, #tpu.memory_space<vmem>>, vector<1x256x768xbf16>
    %151 = vector.shape_cast %150 : vector<1x256x768xbf16> to vector<256x768xbf16>
    %cst_66 = arith.constant dense<0.000000e+00> : vector<8x768xf32>
    %152 = tpu.matmul %149, %151, %cst_66 {dimension_numbers = #tpu.dot_dimension_numbers<[1], [0], [0], [1], [0, 0, 1, 1], [], []>} : vector<8x256xbf16>, vector<256x768xbf16>, vector<8x768xf32> -> vector<8x768xf32>
    %c6_67 = arith.constant 6 : index
    %c0_68 = arith.constant 0 : index
    %153 = vector.load %arg5[%c6_67, %c0_68] : memref<10x768xf32, #tpu.memory_space<vmem>>, vector<1x768xf32>
    %154 = vector.broadcast %153 : vector<1x768xf32> to vector<8x768xf32>
    %155 = arith.addf %152, %154 : vector<8x768xf32>
    %156 = vector.extract_strided_slice %155 {offsets = [0, 0], sizes = [8, 256], strides = [1, 1]} : vector<8x768xf32> to vector<8x256xf32>
    %157 = arith.negf %156 : vector<8x256xf32>
    %158 = math.exp %157 : vector<8x256xf32>
    %cst_69 = arith.constant 1.000000e+00 : f32
    %159 = vector.broadcast %cst_69 : f32 to vector<8x256xf32>
    %160 = arith.addf %159, %158 : vector<8x256xf32>
    %161 = arith.divf %159, %160 : vector<8x256xf32>
    %162 = vector.extract_strided_slice %155 {offsets = [0, 256], sizes = [8, 256], strides = [1, 1]} : vector<8x768xf32> to vector<8x256xf32>
    %cst_70 = arith.constant 0.000000e+00 : f32
    %163 = vector.broadcast %cst_70 : f32 to vector<8x256xf32>
    %164 = arith.maximumf %162, %163 : vector<8x256xf32>
    %165 = vector.extract_strided_slice %155 {offsets = [0, 512], sizes = [8, 256], strides = [1, 1]} : vector<8x768xf32> to vector<8x256xf32>
    %166 = arith.mulf %161, %164 : vector<8x256xf32>
    %cst_71 = arith.constant 1.000000e+00 : f32
    %167 = vector.broadcast %cst_71 : f32 to vector<8x256xf32>
    %168 = arith.subf %167, %161 : vector<8x256xf32>
    %169 = arith.mulf %168, %165 : vector<8x256xf32>
    %170 = arith.addf %166, %169 : vector<8x256xf32>
    %171 = arith.truncf %170 : vector<8x256xf32> to vector<8x256xbf16>
    %c7 = arith.constant 7 : index
    %c0_72 = arith.constant 0 : index
    %c0_73 = arith.constant 0 : index
    %172 = vector.load %arg4[%c7, %c0_72, %c0_73] : memref<10x256x768xbf16, #tpu.memory_space<vmem>>, vector<1x256x768xbf16>
    %173 = vector.shape_cast %172 : vector<1x256x768xbf16> to vector<256x768xbf16>
    %cst_74 = arith.constant dense<0.000000e+00> : vector<8x768xf32>
    %174 = tpu.matmul %171, %173, %cst_74 {dimension_numbers = #tpu.dot_dimension_numbers<[1], [0], [0], [1], [0, 0, 1, 1], [], []>} : vector<8x256xbf16>, vector<256x768xbf16>, vector<8x768xf32> -> vector<8x768xf32>
    %c7_75 = arith.constant 7 : index
    %c0_76 = arith.constant 0 : index
    %175 = vector.load %arg5[%c7_75, %c0_76] : memref<10x768xf32, #tpu.memory_space<vmem>>, vector<1x768xf32>
    %176 = vector.broadcast %175 : vector<1x768xf32> to vector<8x768xf32>
    %177 = arith.addf %174, %176 : vector<8x768xf32>
    %178 = vector.extract_strided_slice %177 {offsets = [0, 0], sizes = [8, 256], strides = [1, 1]} : vector<8x768xf32> to vector<8x256xf32>
    %179 = arith.negf %178 : vector<8x256xf32>
    %180 = math.exp %179 : vector<8x256xf32>
    %cst_77 = arith.constant 1.000000e+00 : f32
    %181 = vector.broadcast %cst_77 : f32 to vector<8x256xf32>
    %182 = arith.addf %181, %180 : vector<8x256xf32>
    %183 = arith.divf %181, %182 : vector<8x256xf32>
    %184 = vector.extract_strided_slice %177 {offsets = [0, 256], sizes = [8, 256], strides = [1, 1]} : vector<8x768xf32> to vector<8x256xf32>
    %cst_78 = arith.constant 0.000000e+00 : f32
    %185 = vector.broadcast %cst_78 : f32 to vector<8x256xf32>
    %186 = arith.maximumf %184, %185 : vector<8x256xf32>
    %187 = vector.extract_strided_slice %177 {offsets = [0, 512], sizes = [8, 256], strides = [1, 1]} : vector<8x768xf32> to vector<8x256xf32>
    %188 = arith.mulf %183, %186 : vector<8x256xf32>
    %cst_79 = arith.constant 1.000000e+00 : f32
    %189 = vector.broadcast %cst_79 : f32 to vector<8x256xf32>
    %190 = arith.subf %189, %183 : vector<8x256xf32>
    %191 = arith.mulf %190, %187 : vector<8x256xf32>
    %192 = arith.addf %188, %191 : vector<8x256xf32>
    %193 = arith.truncf %192 : vector<8x256xf32> to vector<8x256xbf16>
    %c8 = arith.constant 8 : index
    %c0_80 = arith.constant 0 : index
    %c0_81 = arith.constant 0 : index
    %194 = vector.load %arg4[%c8, %c0_80, %c0_81] : memref<10x256x768xbf16, #tpu.memory_space<vmem>>, vector<1x256x768xbf16>
    %195 = vector.shape_cast %194 : vector<1x256x768xbf16> to vector<256x768xbf16>
    %cst_82 = arith.constant dense<0.000000e+00> : vector<8x768xf32>
    %196 = tpu.matmul %193, %195, %cst_82 {dimension_numbers = #tpu.dot_dimension_numbers<[1], [0], [0], [1], [0, 0, 1, 1], [], []>} : vector<8x256xbf16>, vector<256x768xbf16>, vector<8x768xf32> -> vector<8x768xf32>
    %c8_83 = arith.constant 8 : index
    %c0_84 = arith.constant 0 : index
    %197 = vector.load %arg5[%c8_83, %c0_84] : memref<10x768xf32, #tpu.memory_space<vmem>>, vector<1x768xf32>
    %198 = vector.broadcast %197 : vector<1x768xf32> to vector<8x768xf32>
    %199 = arith.addf %196, %198 : vector<8x768xf32>
    %200 = vector.extract_strided_slice %199 {offsets = [0, 0], sizes = [8, 256], strides = [1, 1]} : vector<8x768xf32> to vector<8x256xf32>
    %201 = arith.negf %200 : vector<8x256xf32>
    %202 = math.exp %201 : vector<8x256xf32>
    %cst_85 = arith.constant 1.000000e+00 : f32
    %203 = vector.broadcast %cst_85 : f32 to vector<8x256xf32>
    %204 = arith.addf %203, %202 : vector<8x256xf32>
    %205 = arith.divf %203, %204 : vector<8x256xf32>
    %206 = vector.extract_strided_slice %199 {offsets = [0, 256], sizes = [8, 256], strides = [1, 1]} : vector<8x768xf32> to vector<8x256xf32>
    %cst_86 = arith.constant 0.000000e+00 : f32
    %207 = vector.broadcast %cst_86 : f32 to vector<8x256xf32>
    %208 = arith.maximumf %206, %207 : vector<8x256xf32>
    %209 = vector.extract_strided_slice %199 {offsets = [0, 512], sizes = [8, 256], strides = [1, 1]} : vector<8x768xf32> to vector<8x256xf32>
    %210 = arith.mulf %205, %208 : vector<8x256xf32>
    %cst_87 = arith.constant 1.000000e+00 : f32
    %211 = vector.broadcast %cst_87 : f32 to vector<8x256xf32>
    %212 = arith.subf %211, %205 : vector<8x256xf32>
    %213 = arith.mulf %212, %209 : vector<8x256xf32>
    %214 = arith.addf %210, %213 : vector<8x256xf32>
    %215 = arith.truncf %214 : vector<8x256xf32> to vector<8x256xbf16>
    %c9 = arith.constant 9 : index
    %c0_88 = arith.constant 0 : index
    %c0_89 = arith.constant 0 : index
    %216 = vector.load %arg4[%c9, %c0_88, %c0_89] : memref<10x256x768xbf16, #tpu.memory_space<vmem>>, vector<1x256x768xbf16>
    %217 = vector.shape_cast %216 : vector<1x256x768xbf16> to vector<256x768xbf16>
    %cst_90 = arith.constant dense<0.000000e+00> : vector<8x768xf32>
    %218 = tpu.matmul %215, %217, %cst_90 {dimension_numbers = #tpu.dot_dimension_numbers<[1], [0], [0], [1], [0, 0, 1, 1], [], []>} : vector<8x256xbf16>, vector<256x768xbf16>, vector<8x768xf32> -> vector<8x768xf32>
    %c9_91 = arith.constant 9 : index
    %c0_92 = arith.constant 0 : index
    %219 = vector.load %arg5[%c9_91, %c0_92] : memref<10x768xf32, #tpu.memory_space<vmem>>, vector<1x768xf32>
    %220 = vector.broadcast %219 : vector<1x768xf32> to vector<8x768xf32>
    %221 = arith.addf %218, %220 : vector<8x768xf32>
    %222 = vector.extract_strided_slice %221 {offsets = [0, 0], sizes = [8, 256], strides = [1, 1]} : vector<8x768xf32> to vector<8x256xf32>
    %223 = arith.negf %222 : vector<8x256xf32>
    %224 = math.exp %223 : vector<8x256xf32>
    %cst_93 = arith.constant 1.000000e+00 : f32
    %225 = vector.broadcast %cst_93 : f32 to vector<8x256xf32>
    %226 = arith.addf %225, %224 : vector<8x256xf32>
    %227 = arith.divf %225, %226 : vector<8x256xf32>
    %228 = vector.extract_strided_slice %221 {offsets = [0, 256], sizes = [8, 256], strides = [1, 1]} : vector<8x768xf32> to vector<8x256xf32>
    %cst_94 = arith.constant 0.000000e+00 : f32
    %229 = vector.broadcast %cst_94 : f32 to vector<8x256xf32>
    %230 = arith.maximumf %228, %229 : vector<8x256xf32>
    %231 = vector.extract_strided_slice %221 {offsets = [0, 512], sizes = [8, 256], strides = [1, 1]} : vector<8x768xf32> to vector<8x256xf32>
    %232 = arith.mulf %227, %230 : vector<8x256xf32>
    %cst_95 = arith.constant 1.000000e+00 : f32
    %233 = vector.broadcast %cst_95 : f32 to vector<8x256xf32>
    %234 = arith.subf %233, %227 : vector<8x256xf32>
    %235 = arith.mulf %234, %231 : vector<8x256xf32>
    %236 = arith.addf %232, %235 : vector<8x256xf32>
    %237 = vector.broadcast %3 : vector<1x256xf32> to vector<8x256xf32>
    %238 = arith.mulf %236, %237 : vector<8x256xf32>
    %239 = vector.broadcast %4 : vector<1x256xf32> to vector<8x256xf32>
    %240 = arith.addf %238, %239 : vector<8x256xf32>
    %cst_96 = arith.constant dense<0.000000e+00> : vector<8xf32>
    %241 = vector.multi_reduction <add>, %240, %cst_96 [1] : vector<8x256xf32> to vector<8xf32>
    %242 = vector.shape_cast %241 : vector<8xf32> to vector<8x1xf32>
    %cst_97 = arith.constant 2.560000e+02 : f32
    %243 = vector.broadcast %cst_97 : f32 to vector<8x1xf32>
    %244 = arith.divf %242, %243 : vector<8x1xf32>
    %245 = vector.broadcast %244 : vector<8x1xf32> to vector<8x256xf32>
    %246 = arith.subf %240, %245 : vector<8x256xf32>
    %247 = arith.mulf %246, %246 : vector<8x256xf32>
    %cst_98 = arith.constant dense<0.000000e+00> : vector<8xf32>
    %248 = vector.multi_reduction <add>, %247, %cst_98 [1] : vector<8x256xf32> to vector<8xf32>
    %249 = vector.shape_cast %248 : vector<8xf32> to vector<8x1xf32>
    %cst_99 = arith.constant 2.560000e+02 : f32
    %250 = vector.broadcast %cst_99 : f32 to vector<8x1xf32>
    %251 = arith.divf %249, %250 : vector<8x1xf32>
    %252 = vector.broadcast %244 : vector<8x1xf32> to vector<8x256xf32>
    %253 = arith.subf %240, %252 : vector<8x256xf32>
    %cst_100 = arith.constant 9.99999974E-6 : f32
    %254 = vector.broadcast %cst_100 : f32 to vector<8x1xf32>
    %255 = arith.addf %251, %254 : vector<8x1xf32>
    %256 = math.rsqrt %255 : vector<8x1xf32>
    %257 = vector.broadcast %256 : vector<8x1xf32> to vector<8x256xf32>
    %258 = arith.mulf %253, %257 : vector<8x256xf32>
    %259 = arith.truncf %258 : vector<8x256xf32> to vector<8x256xbf16>
    %c0_101 = arith.constant 0 : index
    %c0_102 = arith.constant 0 : index
    %260 = vector.load %arg6[%c0_101, %c0_102] : memref<256x128xbf16, #tpu.memory_space<vmem>>, vector<256x128xbf16>
    %cst_103 = arith.constant dense<0.000000e+00> : vector<8x128xf32>
    %261 = tpu.matmul %259, %260, %cst_103 {dimension_numbers = #tpu.dot_dimension_numbers<[1], [0], [0], [1], [0, 0, 1, 1], [], []>} : vector<8x256xbf16>, vector<256x128xbf16>, vector<8x128xf32> -> vector<8x128xf32>
    %262 = vector.broadcast %5 : vector<1x128xf32> to vector<8x128xf32>
    %263 = arith.addf %261, %262 : vector<8x128xf32>
    %c0_104 = arith.constant 0 : index
    %c0_105 = arith.constant 0 : index
    %264 = vector.load %arg7[%c0_104, %c0_105] : memref<8x128xf32, #tpu.memory_space<vmem>>, vector<8x128xf32>
    tpu.vector_store %arg7[%c0_104, %c0_105], %263 {strides = array<i32>} : memref<8x128xf32, #tpu.memory_space<vmem>>, vector<8x128xf32>,
    return
  }
  func.func @transform_0(%arg0: i32) -> (i32, i32) {
    %c0_i32 = arith.constant 0 : i32
    %c0_i32_0 = arith.constant 0 : i32
    %c0_i32_1 = arith.constant 0 : i32
    return %c0_i32, %c0_i32_0 : i32, i32
  }
  func.func @transform_1(%arg0: i32) -> (i32, i32) {
    %c0_i32 = arith.constant 0 : i32
    %c0_i32_0 = arith.constant 0 : i32
    %c0_i32_1 = arith.constant 0 : i32
    return %c0_i32, %c0_i32_0 : i32, i32
  }
  func.func @transform_2(%arg0: i32) -> (i32, i32) {
    %c0_i32 = arith.constant 0 : i32
    %c0_i32_0 = arith.constant 0 : i32
    %c0_i32_1 = arith.constant 0 : i32
    return %c0_i32, %c0_i32_0 : i32, i32
  }
  func.func @transform_3(%arg0: i32) -> (i32, i32, i32) {
    %c0_i32 = arith.constant 0 : i32
    %c0_i32_0 = arith.constant 0 : i32
    %c0_i32_1 = arith.constant 0 : i32
    %c0_i32_2 = arith.constant 0 : i32
    return %c0_i32, %c0_i32_0, %c0_i32_1 : i32, i32, i32
  }
  func.func @transform_4(%arg0: i32) -> (i32, i32) {
    %c0_i32 = arith.constant 0 : i32
    %c0_i32_0 = arith.constant 0 : i32
    %c0_i32_1 = arith.constant 0 : i32
    return %c0_i32, %c0_i32_0 : i32, i32
  }
  func.func @transform_5(%arg0: i32) -> (i32, i32) {
    %c0_i32 = arith.constant 0 : i32
    %c0_i32_0 = arith.constant 0 : i32
    %c0_i32_1 = arith.constant 0 : i32
    return %c0_i32, %c0_i32_0 : i32, i32
  }
  func.func @transform_6(%arg0: i32) -> (i32, i32) {
    %c0_i32 = arith.constant 0 : i32
    %c0_i32_0 = arith.constant 0 : i32
    %c0_i32_1 = arith.constant 0 : i32
    return %c0_i32, %c0_i32_0 : i32, i32
  }
}

</mosaic_0001>

<bundles_post_ra>
// kernel: tpu_custom_call.1
= control target key start
LH: loop header
LB: loop body
LE: loop exit
PB: predicated region body
PF: predicated region fallthrough
CT: control target
= control target key end

     0   :  { %11 = vsyncpa [#allocation3], 0  ;;  %s11406_s0 = inlined_call_operand.hbm [shape: f32[8,384], index: 0, kind: input, shape index: {}]   ;;  %s11407_s1 = inlined_call_operand.hbm [shape: bf16[384,256], index: 1, kind: input, shape index: {}]   ;;  %s11408_s2 = inlined_call_operand.hbm [shape: f32[8,256], index: 2, kind: input, shape index: {}]   ;;  %s11409_s3 = inlined_call_operand.hbm [shape: bf16[10,256,768], index: 3, kind: input, shape index: {}]   ;;  %s11410_s4 = inlined_call_operand.hbm [shape: f32[10,768], index: 4, kind: input, shape index: {}]   ;;  %s11411_s5 = inlined_call_operand.hbm [shape: bf16[256,128], index: 5, kind: input, shape index: {}]   ;;  %s11412_s6 = inlined_call_operand.hbm [shape: f32[8,128], index: 6, kind: output, shape index: {}]  }
   0x1   :  { %12 = vsyncpa [#allocation6], 0 }
   0x2   :  { %13 = vsyncpa [#allocation9], 0 }
   0x3   :  { %14 = vsyncpa [#allocation12], 0 }
   0x4   :  { %15 = vsyncpa [#allocation4], 0  ;;  %s11194_s21 = smov [#allocation5]  }
   0x5   :  { %s31_s22 = sshll.u32 %s11194_s21, 4  ;;  %s32_s22 = int_to_ptr.vmem [resolvable:$true] %s31_s22 }
   0x6   :  { %s11052_s23 = scalar_lea.vmem %s32_s22, 6144  ;;  %p11057_p1 = scmp.lt.s32.totalorder %s32_s22, %s32_s22 }
   0x7   :  { %p11053_p0 = scmp.ne.s32.totalorder %s32_s22, %s11052_s23  ;;  %p11058_p2 = scmp.lt.s32.totalorder %s11052_s23, %s11052_s23 }
   0x9   :  { %p11059_p3 = por %p11058_p2, %p11057_p1 }
   0xb   :  { %p11060_p4 = pnand %p11059_p3, %p11053_p0 }
   0xd   :  { %11063 = shalt.err (!%p11060_p4)
}
   0xe   :  { %s11195_s24 = smov 128   ;;  %s11196_s25 = smov 8  }
   0xf   :  { %37 = dma.hbm_to_vmem [thread:$0]  %s11407_s1, 6144, %s32_s22, [#allocation6], %s11195_s24, %s11195_s24, %s11196_s25  }
  0x10   :  { %s11197_s28 = smov [#allocation8]  }
  0x11   :  { %s53_s29 = sshll.u32 %s11197_s28, 4  ;;  %s54_s29 = int_to_ptr.vmem [resolvable:$true] %s53_s29 }
  0x12   :  { %s11072_s30 = scalar_lea.vmem %s54_s29, 122880  ;;  %p11077_p6 = scmp.lt.s32.totalorder %s54_s29, %s54_s29 }
  0x13   :  { %p11073_p5 = scmp.ne.s32.totalorder %s54_s29, %s11072_s30  ;;  %p11078_p7 = scmp.lt.s32.totalorder %s11072_s30, %s11072_s30 }
  0x15   :  { %p11079_p8 = por %p11078_p7, %p11077_p6 }
  0x17   :  { %p11080_p9 = pnand %p11079_p8, %p11073_p5 }
  0x19   :  { %11083 = shalt.err (!%p11080_p9)
}
  0x1a   :  { %s11198_s7 = smov 384   ;;  %s11199_s8 = smov 24  }
  0x1b   :  { %59 = dma.hbm_to_vmem [thread:$0]  %s11409_s3, 122880, %s54_s29, [#allocation9], %s11198_s7, %s11198_s7, %s11199_s8  }
  0x1c   :  { %s11200_s11 = smov [#allocation2]   ;;  %s11201_s13 = smov [#allocation7]  }
  0x1d   :  { %s22_s12 = sshll.u32 %s11200_s11, 4  ;;  %s44_s1 = sshll.u32 %s11201_s13, 4  ;;  %s23_s12 = int_to_ptr.vmem [resolvable:$true] %s22_s12  ;;  %s45_s1 = int_to_ptr.vmem [resolvable:$true] %s44_s1 }
  0x1e   :  { %s11092_s14 = scalar_lea.vmem %s23_s12, 384  ;;  %p11097_p11 = scmp.lt.s32.totalorder %s23_s12, %s23_s12 }
  0x1f   :  { %p11093_p10 = scmp.ne.s32.totalorder %s23_s12, %s11092_s14  ;;  %p11098_p12 = scmp.lt.s32.totalorder %s11092_s14, %s11092_s14 }
  0x21   :  { %p11099_p13 = por %p11098_p12, %p11097_p11 }
  0x23   :  { %p11100_p0 = pnand %p11099_p13, %p11093_p10 }
  0x25   :  { %11103 = shalt.err (!%p11100_p0)
}
  0x26   :  { %25 = dma.hbm_to_vmem [thread:$0]  %s11406_s0, 384, %s23_s12, [#allocation3]  }
  0x27   :  { %s11112_s17 = scalar_lea.vmem %s45_s1, 256  ;;  %p11117_p2 = scmp.lt.s32.totalorder %s45_s1, %s45_s1 }
  0x28   :  { %p11113_p1 = scmp.ne.s32.totalorder %s45_s1, %s11112_s17  ;;  %p11118_p3 = scmp.lt.s32.totalorder %s11112_s17, %s11112_s17 }
  0x2a   :  { %p11119_p4 = por %p11118_p3, %p11117_p2 }
  0x2c   :  { %p11120_p5 = pnand %p11119_p4, %p11113_p1 }
  0x2e   :  { %11123 = shalt.err (!%p11120_p5)
}
  0x2f   :  { %47 = dma.hbm_to_vmem [thread:$0]  %s11408_s2, 256, %s45_s1, [#allocation6]  }
  0x30   :  { %s11202_s19 = smov [#allocation10]  }
  0x31   :  { %s65_s20 = sshll.u32 %s11202_s19, 4  ;;  %s66_s20 = int_to_ptr.vmem [resolvable:$true] %s65_s20 }
  0x32   :  { %s11132_s21 = scalar_lea.vmem %s66_s20, 1536  ;;  %p11137_p7 = scmp.lt.s32.totalorder %s66_s20, %s66_s20 }
  0x33   :  { %p11133_p6 = scmp.ne.s32.totalorder %s66_s20, %s11132_s21  ;;  %p11138_p8 = scmp.lt.s32.totalorder %s11132_s21, %s11132_s21 }
  0x35   :  { %p11139_p9 = por %p11138_p8, %p11137_p7 }
  0x37   :  { %p11140_p10 = pnand %p11139_p9, %p11133_p6 }
  0x39   :  { %11143 = shalt.err (!%p11140_p10)
}
  0x3a   :  { %s11203_s0 = smov 768   ;;  %s11204_s22 = smov 48  }
  0x3b   :  { %71 = dma.hbm_to_vmem [thread:$0]  %s11410_s4, 1536, %s66_s20, [#allocation9], %s11203_s0, %s11203_s0, %s11204_s22  }
  0x3c   :  { %s11205_s25 = smov [#allocation11]  }
  0x3d   :  { %s77_s26 = sshll.u32 %s11205_s25, 4  ;;  %s78_s26 = int_to_ptr.vmem [resolvable:$true] %s77_s26 }
  0x3e   :  { %s11152_s2 = scalar_lea.vmem %s78_s26, 2048  ;;  %p11157_p12 = scmp.lt.s32.totalorder %s78_s26, %s78_s26 }
  0x3f   :  { %p11153_p11 = scmp.ne.s32.totalorder %s78_s26, %s11152_s2  ;;  %p11158_p13 = scmp.lt.s32.totalorder %s11152_s2, %s11152_s2 }
  0x41   :  { %p11159_p0 = por %p11158_p13, %p11157_p12 }
  0x43   :  { %p11160_p1 = pnand %p11159_p0, %p11153_p11 }
  0x45   :  { %11163 = shalt.err (!%p11160_p1)
}
  0x46   :  { %s11206_s27 = smov 64   ;;  %s11207_s28 = smov 4  }
  0x47   :  { %83 = dma.hbm_to_vmem [thread:$0]  %s11411_s5, 2048, %s78_s26, [#allocation12], %s11206_s27, %s11206_s27, %s11207_s28  }
  0x48   :  { %11184 = dma.done.wait [#allocation3], 384  }
  0x49   :  { %11185 = vsyncadd [#allocation3], 4294966912 }
  0x4a   :  { %11186 = dma.done.wait [#allocation6], 6400  }
  0x4b   :  { %11187 = vsyncadd [#allocation6], 4294960896 }
  0x4c   :  { %11188 = dma.done.wait [#allocation9], 124416  }
  0x4d   :  { %11189 = vsyncadd [#allocation9], 4294842880 }
  0x4e   :  { %11190 = dma.done.wait [#allocation12], 2048  }
  0x4f   :  { %11191 = vsyncadd [#allocation12], 4294965248  ;;  %v11208_v0 = vmov 0   ;;  %v9430_v1 = vld [vmem:[#allocation5 + $0x74] ss:$8 sps:$4 sm:$0xff]   ;;  %v113_v63 = vld [vmem:[#allocation2] sm:$0xff] }
  0x50   :  { %491 = vmatprep.mubr.bf16.mxu1 %v11208_v0  ;;  %v9432_v2 = vld [vmem:[#allocation5 + $0x70] ss:$8 sps:$4 sm:$0xff]   ;;  %418 = vmatprep.subr.bf16.mxu0 %v9430_v1  ;;  %v9433_v3 = vld [vmem:[#allocation5 + $0x64] ss:$8 sps:$4 sm:$0xff]   ;;  %v9435_v4 = vld [vmem:[#allocation5 + $0x60] ss:$8 sps:$4 sm:$0xff]  }
  0x51   :  { %419 = vmatpush1.bf16.msra.mxu0 %v9432_v2  ;;  %v9436_v5 = vld [vmem:[#allocation5 + $0x54] ss:$8 sps:$4 sm:$0xff]   ;;  %v9438_v6 = vld [vmem:[#allocation5 + $0x50] ss:$8 sps:$4 sm:$0xff]   ;;  %v9439_v7 = vld [vmem:[#allocation5 + $0x44] ss:$8 sps:$4 sm:$0xff]  }
  0x52   :  { %420 = vmatprep.subr.bf16.mxu0 %v9433_v3  ;;  %v9441_v8 = vld [vmem:[#allocation5 + $0x40] ss:$8 sps:$4 sm:$0xff]   ;;  %v9453_v9 = vld [vmem:[#allocation5 + $0x174] ss:$8 sps:$4 sm:$0xff]   ;;  %v9456_v10 = vld [vmem:[#allocation5 + $0x170] ss:$8 sps:$4 sm:$0xff]  }
  0x53   :  { %v9442_v11 = vld [vmem:[#allocation5 + $0x34] ss:$8 sps:$4 sm:$0xff]   ;;  %459 = vmatprep.subr.bf16.mxu1 %v9453_v9  ;;  %v9459_v12 = vld [vmem:[#allocation5 + $0x164] ss:$8 sps:$4 sm:$0xff]   ;;  %v9462_v13 = vld [vmem:[#allocation5 + $0x160] ss:$8 sps:$4 sm:$0xff]  }
  0x54   :  { %460 = vmatpush1.bf16.msra.mxu1 %v9456_v10  ;;  %v9444_v14 = vld [vmem:[#allocation5 + $0x30] ss:$8 sps:$4 sm:$0xff]   ;;  %v9445_v15 = vld [vmem:[#allocation5 + $0x24] ss:$8 sps:$4 sm:$0xff]   ;;  %v9465_v16 = vld [vmem:[#allocation5 + $0x154] ss:$8 sps:$4 sm:$0xff]  }
  0x55   :  { %421 = vmatpush1.bf16.msra.mxu0 %v9435_v4  ;;  %461 = vmatprep.subr.bf16.mxu1 %v9459_v12  ;;  %v9468_v17 = vld [vmem:[#allocation5 + $0x150] ss:$8 sps:$4 sm:$0xff]   ;;  %v9447_v18 = vld [vmem:[#allocation5 + $0x20] ss:$8 sps:$4 sm:$0xff]   ;;  %v9471_v19 = vld [vmem:[#allocation5 + $0x144] ss:$8 sps:$4 sm:$0xff]  }
  0x56   :  { %422 = vmatprep.subr.bf16.mxu0 %v9436_v5  ;;  %v9448_v20 = vld [vmem:[#allocation5 + $0x14] ss:$8 sps:$4 sm:$0xff]   ;;  %v9450_v21 = vld [vmem:[#allocation5 + $0x10] ss:$8 sps:$4 sm:$0xff]   ;;  %v9474_v22 = vld [vmem:[#allocation5 + $0x140] ss:$8 sps:$4 sm:$0xff]   ;;  %v116_v5 = vpack.c.bf16 %v113_v63, %v113_v63 }
  0x57   :  { %v9477_v23 = vld [vmem:[#allocation5 + $0x134] ss:$8 sps:$4 sm:$0xff]   ;;  %v9451_v24 = vld [vmem:[#allocation5 + $0x4] ss:$8 sps:$4 sm:$0xff]   ;;  %v9480_v25 = vld [vmem:[#allocation5 + $0x130] ss:$8 sps:$4 sm:$0xff]  }
  0x58   :  { %462 = vmatpush1.bf16.msra.mxu1 %v9462_v13  ;;  %v9455_v26 = vld [vmem:[#allocation5] ss:$8 sps:$4 sm:$0xff]   ;;  %v9483_v27 = vld [vmem:[#allocation5 + $0x124] ss:$8 sps:$4 sm:$0xff]   ;;  %v9457_v28 = vld [vmem:[#allocation5 + $0xf4] ss:$8 sps:$4 sm:$0xff]  }
  0x59   :  { %423 = vmatpush1.bf16.msra.mxu0 %v9438_v6  ;;  %463 = vmatprep.subr.bf16.mxu1 %v9465_v16  ;;  %v9486_v29 = vld [vmem:[#allocation5 + $0x120] ss:$8 sps:$4 sm:$0xff]   ;;  %v9461_v30 = vld [vmem:[#allocation5 + $0xf0] ss:$8 sps:$4 sm:$0xff]   ;;  %v9489_v31 = vld [vmem:[#allocation5 + $0x114] ss:$8 sps:$4 sm:$0xff]  }
  0x5a   :  { %424 = vmatprep.subr.bf16.mxu0 %v9439_v7  ;;  %v9463_v32 = vld [vmem:[#allocation5 + $0xe4] ss:$8 sps:$4 sm:$0xff]   ;;  %v114_v33 = vld [vmem:[#allocation2 + $0x8] sm:$0xff]  ;;  %v9467_v36 = vld [vmem:[#allocation5 + $0xe0] ss:$8 sps:$4 sm:$0xff]   ;;  %s11209_s4 = smov [#allocation13]  }
  0x5b   :  { %v117_v34 = vpack.c.bf16 %v114_v33, %v114_v33  ;;  %v9492_v35 = vld [vmem:[#allocation5 + $0x110] ss:$8 sps:$4 sm:$0xff]   ;;  %v9495_v37 = vld [vmem:[#allocation5 + $0x104] ss:$8 sps:$4 sm:$0xff]   ;;  %v9469_v38 = vld [vmem:[#allocation5 + $0xd4] ss:$8 sps:$4 sm:$0xff]  }
  0x5c   :  { %464 = vmatpush1.bf16.msra.mxu1 %v9468_v17  ;;  %v9498_v39 = vld [vmem:[#allocation5 + $0x100] ss:$8 sps:$4 sm:$0xff]   ;;  %v115_v40 = vld [vmem:[#allocation2 + $0x10] sm:$0xff]  ;;  %v9475_v43 = vld [vmem:[#allocation5 + $0xc4] ss:$8 sps:$4 sm:$0xff]   ;;  %s8336_s5 = sshll.u32 %s11209_s4, 4  ;;  %s8337_s5 = int_to_ptr.vmem [resolvable:$true] %s8336_s5 }
  0x5d   :  { %425 = vmatpush1.bf16.msra.mxu0 %v9441_v8  ;;  %465 = vmatprep.subr.bf16.mxu1 %v9471_v19  ;;  %v9473_v41 = vld [vmem:[#allocation5 + $0xd0] ss:$8 sps:$4 sm:$0xff]   ;;  %v9504_v42 = vld [vmem:[#allocation8 + $0x154] ss:$24 sps:$4 sm:$0xff]   ;;  %v118_v44 = vpack.c.bf16 %v115_v40, %v115_v40  ;;  %v9479_v46 = vld [vmem:[#allocation5 + $0xc0] ss:$8 sps:$4 sm:$0xff]   ;;  %p11169_p3 = scmp.lt.s32.totalorder %s8337_s5, %s8337_s5 }
  0x5e   :  { %426 = vmatprep.subr.bf16.mxu0 %v9442_v11  ;;  %450 = vmatprep.mubr.bf16.mxu0 %v117_v34  ;;  %v9502_v45 = vld [vmem:[#allocation8 + $0x150] ss:$24 sps:$4 sm:$0xff]   ;;  %v9510_v47 = vld [vmem:[#allocation8 + $0x124] ss:$24 sps:$4 sm:$0xff]   ;;  %v9508_v49 = vld [vmem:[#allocation8 + $0x120] ss:$24 sps:$4 sm:$0xff]  }
  0x5f   :  { %v9481_v48 = vld [vmem:[#allocation5 + $0xb4] ss:$8 sps:$4 sm:$0xff]   ;;  %v9485_v50 = vld [vmem:[#allocation5 + $0xb0] ss:$8 sps:$4 sm:$0xff]   ;;  %v9487_v52 = vld [vmem:[#allocation5 + $0xa4] ss:$8 sps:$4 sm:$0xff]  }
  0x60   :  { %466 = vmatpush1.bf16.msra.mxu1 %v9474_v22  ;;  %v9516_v51 = vld [vmem:[#allocation8 + $0xf4] ss:$24 sps:$4 sm:$0xff]   ;;  %v9514_v53 = vld [vmem:[#allocation8 + $0xf0] ss:$24 sps:$4 sm:$0xff]   ;;  %v9522_v55 = vld [vmem:[#allocation8 + $0xc4] ss:$24 sps:$4 sm:$0xff]  }
  0x61   :  { %427 = vmatpush1.bf16.msra.mxu0 %v9444_v14  ;;  %467 = vmatprep.subr.bf16.mxu1 %v9477_v23  ;;  %v9491_v54 = vld [vmem:[#allocation5 + $0xa0] ss:$8 sps:$4 sm:$0xff]   ;;  %v9493_v56 = vld [vmem:[#allocation5 + $0x94] ss:$8 sps:$4 sm:$0xff]   ;;  %v9497_v57 = vld [vmem:[#allocation5 + $0x90] ss:$8 sps:$4 sm:$0xff]  }
  0x62   :  { %428 = vmatprep.subr.bf16.mxu0 %v9445_v15  ;;  %v9520_v58 = vld [vmem:[#allocation8 + $0xc0] ss:$24 sps:$4 sm:$0xff]   ;;  %v9499_v59 = vld [vmem:[#allocation5 + $0x84] ss:$8 sps:$4 sm:$0xff]   ;;  %v9526_v61 = vld [vmem:[#allocation8 + $0x90] ss:$24 sps:$4 sm:$0xff]  }
  0x63   :  { %v9528_v60 = vld [vmem:[#allocation8 + $0x94] ss:$24 sps:$4 sm:$0xff]   ;;  %v9501_v62 = vld [vmem:[#allocation5 + $0x80] ss:$8 sps:$4 sm:$0xff]   ;;  %v9534_v0 = vld [vmem:[#allocation8 + $0x64] ss:$24 sps:$4 sm:$0xff]  }
  0x64   :  { %468 = vmatpush1.bf16.msra.mxu1 %v9480_v25  ;;  %v9507_v1 = vld [vmem:[#allocation8 + $0x15c] ss:$24 sps:$4 sm:$0xff]   ;;  %v9532_v2 = vld [vmem:[#allocation8 + $0x60] ss:$24 sps:$4 sm:$0xff]   ;;  %v9513_v6 = vld [vmem:[#allocation8 + $0x12c] ss:$24 sps:$4 sm:$0xff]  }
  0x65   :  { %429 = vmatpush1.bf16.msra.mxu0 %v9447_v18  ;;  %469 = vmatprep.subr.bf16.mxu1 %v9483_v27  ;;  %v9505_v3 = vld [vmem:[#allocation8 + $0x158] ss:$24 sps:$4 sm:$0xff]   ;;  %v9540_v4 = vld [vmem:[#allocation8 + $0x34] ss:$24 sps:$4 sm:$0xff]   ;;  %v9511_v8 = vld [vmem:[#allocation8 + $0x128] ss:$24 sps:$4 sm:$0xff]  }
  0x66   :  { %430 = vmatprep.subr.bf16.mxu0 %v9448_v20  ;;  %v9538_v7 = vld [vmem:[#allocation8 + $0x30] ss:$24 sps:$4 sm:$0xff]   ;;  %v9546_v9 = vld [vmem:[#allocation8 + $0x4] ss:$24 sps:$4 sm:$0xff]   ;;  %v9544_v11 = vld [vmem:[#allocation8] ss:$24 sps:$4 sm:$0xff]  }
  0x67   :  { %v9519_v10 = vld [vmem:[#allocation8 + $0xfc] ss:$24 sps:$4 sm:$0xff]   ;;  %v9517_v12 = vld [vmem:[#allocation8 + $0xf8] ss:$24 sps:$4 sm:$0xff]   ;;  %v9525_v14 = vld [vmem:[#allocation8 + $0xcc] ss:$24 sps:$4 sm:$0xff]  }
  0x68   :  { %470 = vmatpush1.bf16.msra.mxu1 %v9486_v29  ;;  %v9552_v13 = vld [vmem:[#allocation8 + $0x2d4] ss:$24 sps:$4 sm:$0xff]   ;;  %v9550_v15 = vld [vmem:[#allocation8 + $0x2d0] ss:$24 sps:$4 sm:$0xff]   ;;  %v9556_v27 = vld [vmem:[#allocation8 + $0x2a0] ss:$24 sps:$4 sm:$0xff]  }
  0x69   :  { %431 = vmatpush1.bf16.msra.mxu0 %v9450_v21  ;;  %471 = vmatprep.subr.bf16.mxu1 %v9489_v31  ;;  %v9523_v16 = vld [vmem:[#allocation8 + $0xc8] ss:$24 sps:$4 sm:$0xff]   ;;  %v9531_v17 = vld [vmem:[#allocation8 + $0x9c] ss:$24 sps:$4 sm:$0xff]   ;;  %v9529_v18 = vld [vmem:[#allocation8 + $0x98] ss:$24 sps:$4 sm:$0xff]  }
  0x6a   :  { %432 = vmatprep.subr.bf16.mxu0 %v9451_v24  ;;  %v9537_v19 = vld [vmem:[#allocation8 + $0x6c] ss:$24 sps:$4 sm:$0xff]   ;;  %v9535_v20 = vld [vmem:[#allocation8 + $0x68] ss:$24 sps:$4 sm:$0xff]   ;;  %v9543_v21 = vld [vmem:[#allocation8 + $0x3c] ss:$24 sps:$4 sm:$0xff]  }
  0x6b   :  { %v9541_v22 = vld [vmem:[#allocation8 + $0x38] ss:$24 sps:$4 sm:$0xff]   ;;  %v9549_v23 = vld [vmem:[#allocation8 + $0xc] ss:$24 sps:$4 sm:$0xff]   ;;  %v9547_v24 = vld [vmem:[#allocation8 + $0x8] ss:$24 sps:$4 sm:$0xff]  }
  0x6c   :  { %472 = vmatpush1.bf16.msra.mxu1 %v9492_v35  ;;  %v9553_v25 = vld [vmem:[#allocation8 + $0x2d8] ss:$24 sps:$4 sm:$0xff]   ;;  %v9561_v29 = vld [vmem:[#allocation8 + $0x2ac] ss:$24 sps:$4 sm:$0xff]   ;;  %v9567_v33 = vld [vmem:[#allocation8 + $0x27c] ss:$24 sps:$4 sm:$0xff]  }
  0x6d   :  { %433 = vmatpush1.bf16.msra.mxu0 %v9455_v26  ;;  %473 = vmatprep.subr.bf16.mxu1 %v9495_v37  ;;  %v9555_v26 = vld [vmem:[#allocation8 + $0x2dc] ss:$24 sps:$4 sm:$0xff]   ;;  %v9565_v34 = vld [vmem:[#allocation8 + $0x278] ss:$24 sps:$4 sm:$0xff]   ;;  %v9573_v37 = vld [vmem:[#allocation8 + $0x24c] ss:$24 sps:$4 sm:$0xff]  }
  0x6e   :  { %434 = vmatprep.subr.bf16.mxu0 %v9457_v28  ;;  %v9558_v28 = vld [vmem:[#allocation8 + $0x2a4] ss:$24 sps:$4 sm:$0xff]   ;;  %v9564_v31 = vld [vmem:[#allocation8 + $0x274] ss:$24 sps:$4 sm:$0xff]   ;;  %v9574_v40 = vld [vmem:[#allocation8 + $0x210] ss:$24 sps:$4 sm:$0xff]  }
  0x6f   :  { %v9570_v35 = vld [vmem:[#allocation8 + $0x244] ss:$24 sps:$4 sm:$0xff]   ;;  %s11164_s7 = scalar_lea.vmem %s8337_s5, 128 }
  0x70   :  { %474 = vmatpush1.bf16.msra.mxu1 %v9498_v39  ;;  %v9576_v39 = vld [vmem:[#allocation8 + $0x214] ss:$24 sps:$4 sm:$0xff]   ;;  %p11165_p2 = scmp.ne.s32.totalorder %s8337_s5, %s11164_s7  ;;  %p11170_p4 = scmp.lt.s32.totalorder %s11164_s7, %s11164_s7 }
  0x71   :  { %435 = vmatpush2.bf16.msra.mxu0 %v9461_v30  ;;  %1140 = vmatprep.subr.bf16.mxu1 %v9504_v42  ;;  %v9559_v30 = vld [vmem:[#allocation8 + $0x2a8] ss:$24 sps:$4 sm:$0xff]   ;;  %v9577_v42 = vld [vmem:[#allocation8 + $0x218] ss:$24 sps:$4 sm:$0xff]  }
  0x72   :  { %436 = vmatprep.subr.bf16.mxu0 %v9463_v32  ;;  %v9562_v32 = vld [vmem:[#allocation8 + $0x270] ss:$24 sps:$4 sm:$0xff]   ;;  %p11171_p5 = por %p11170_p4, %p11169_p3 }
  0x73   :  { %492 = vmatmul.mubr.bf16.vlgmr.msra.gmra.mxu1 %v118_v44  ;;  %v9585_v44 = vld [vmem:[#allocation8 + $0x1ec] ss:$24 sps:$4 sm:$0xff]  }
  0x74   :  { %1141 = vmatpush1.bf16.msra.mxu1 %v9502_v45  ;;  %v9580_v45 = vld [vmem:[#allocation8 + $0x1e0] ss:$24 sps:$4 sm:$0xff]   ;;  %p11172_p6 = pnand %p11171_p5, %p11165_p2 }
  0x75   :  { %437 = vmatpush2.bf16.msra.mxu0 %v9467_v36  ;;  %1142 = vmatprep.subr.bf16.mxu1 %v9510_v47  ;;  %v9568_v36 = vld [vmem:[#allocation8 + $0x240] ss:$24 sps:$4 sm:$0xff]   ;;  %v9588_v47 = vld [vmem:[#allocation8 + $0x1b4] ss:$24 sps:$4 sm:$0xff]  }
  0x76   :  { %438 = vmatprep.subr.bf16.mxu0 %v9469_v38  ;;  %v9571_v38 = vld [vmem:[#allocation8 + $0x248] ss:$24 sps:$4 sm:$0xff]  }
  0x78   :  { %1143 = vmatpush1.bf16.msra.mxu1 %v9508_v49  ;;  %v9586_v49 = vld [vmem:[#allocation8 + $0x1b0] ss:$24 sps:$4 sm:$0xff]  }
  0x79   :  { %439 = vmatpush2.bf16.msra.mxu0 %v9473_v41  ;;  %1144 = vmatprep.subr.bf16.mxu1 %v9516_v51  ;;  %v9579_v41 = vld [vmem:[#allocation8 + $0x21c] ss:$24 sps:$4 sm:$0xff]  }
  0x7a   :  { %440 = vmatprep.subr.bf16.mxu0 %v9475_v43  ;;  %v9582_v43 = vld [vmem:[#allocation8 + $0x1e4] ss:$24 sps:$4 sm:$0xff]  }
  0x7b   :  { %v9594_v51 = vld [vmem:[#allocation8 + $0x184] ss:$24 sps:$4 sm:$0xff]  }
  0x7c   :  { %1145 = vmatpush1.bf16.msra.mxu1 %v9514_v53  ;;  %v9592_v53 = vld [vmem:[#allocation8 + $0x180] ss:$24 sps:$4 sm:$0xff]  }
  0x7d   :  { %441 = vmatpush2.bf16.msra.mxu0 %v9479_v46  ;;  %1146 = vmatprep.subr.bf16.mxu1 %v9522_v55  ;;  %v9583_v46 = vld [vmem:[#allocation8 + $0x1e8] ss:$24 sps:$4 sm:$0xff]   ;;  %v9600_v55 = vld [vmem:[#allocation8 + $0x164] ss:$24 sps:$4 sm:$0xff]  }
  0x7e   :  { %442 = vmatprep.subr.bf16.mxu0 %v9481_v48  ;;  %v9591_v48 = vld [vmem:[#allocation8 + $0x1bc] ss:$24 sps:$4 sm:$0xff]  }
  0x80   :  { %1147 = vmatpush1.bf16.msra.mxu1 %v9520_v58 }
  0x81   :  { %443 = vmatpush2.bf16.msra.mxu0 %v9485_v50  ;;  %1148 = vmatprep.subr.bf16.mxu1 %v9528_v60  ;;  %v9589_v50 = vld [vmem:[#allocation8 + $0x1b8] ss:$24 sps:$4 sm:$0xff]  }
  0x82   :  { %444 = vmatprep.subr.bf16.mxu0 %v9487_v52  ;;  %v9597_v52 = vld [vmem:[#allocation8 + $0x18c] ss:$24 sps:$4 sm:$0xff]  }
  0x84   :  { %1149 = vmatpush1.bf16.msra.mxu1 %v9526_v61 }
  0x85   :  { %445 = vmatpush2.bf16.msra.mxu0 %v9491_v54  ;;  %1150 = vmatprep.subr.bf16.mxu1 %v9534_v0  ;;  %v9595_v54 = vld [vmem:[#allocation8 + $0x188] ss:$24 sps:$4 sm:$0xff]  }
  0x86   :  { %446 = vmatprep.subr.bf16.mxu0 %v9493_v56 }
  0x88   :  { %1151 = vmatpush1.bf16.msra.mxu1 %v9532_v2 }
  0x89   :  { %447 = vmatpush2.bf16.msra.mxu0 %v9497_v57  ;;  %1152 = vmatprep.subr.bf16.mxu1 %v9540_v4 }
  0x8a   :  { %448 = vmatprep.subr.bf16.mxu0 %v9499_v59  ;;  %v168_v59 = vlaneseq }
  0x8c   :  { %1153 = vmatpush1.bf16.msra.mxu1 %v9538_v7  ;;  %v11263_v61 = vshrl.u32 %v168_v59, 7  ;;  %v9649_v59 = vld [vmem:[#allocation8 + $0x458] ss:$24 sps:$4 sm:$0xff]  }
  0x8d   :  { %449 = vmatpush2.bf16.msra.mxu0 %v9501_v62  ;;  %1154 = vmatprep.subr.bf16.mxu1 %v9546_v9  ;;  %v103_v62 = vld [vmem:[#allocation7] ss:$8 sm:$0x3] }
  0x8e   :  { %1181 = vmatprep.subr.bf16.mxu0 %v9507_v1  ;;  %v11266_v63 = vsub.s32 0, %v11263_v61  ;;  %v11269_v0 = vsub.s32 1, %v11263_v61 }
  0x90   :  { %451 = vmatmul.mubr.bf16.vlgmr.msra.gmra.mxu0 %v116_v5  ;;  %1155 = vmatpush1.bf16.msra.mxu1 %v9544_v11  ;;  %v171_v1 = vrot.slane %v103_v62, %v11266_v63  ;;  %v175_v2 = vrot.slane %v103_v62, %v11269_v0  ;;  %v105_v11 = vld [vmem:[#allocation7 + $0x1] ss:$8 sm:$0x3] }
  0x91   :  { %1182 = vmatpush1.bf16.msra.mxu0 %v9505_v3  ;;  %1156 = vmatprep.subr.bf16.mxu1 %v9552_v13  ;;  %v506_v13 = vrot.slane %v105_v11, %v11266_v63  ;;  %v9652_v62 = vld [vmem:[#allocation8 + $0x420] ss:$24 sps:$4 sm:$0xff]  }
  0x92   :  { %1183 = vmatprep.subr.bf16.mxu0 %v9513_v6 }
  0x94   :  { %1157 = vmatpush2.bf16.msra.mxu1 %v9550_v15 }
  0x95   :  { %1184 = vmatpush1.bf16.msra.mxu0 %v9511_v8  ;;  %1158 = vmatprep.subr.bf16.mxu1 %v9558_v28  ;;  %v9606_v28 = vld [vmem:[#allocation8 + $0x104] ss:$24 sps:$4 sm:$0xff]  }
  0x96   :  { %1185 = vmatprep.subr.bf16.mxu0 %v9519_v10 }
  0x98   :  { %1159 = vmatpush2.bf16.msra.mxu1 %v9556_v27  ;;  %v9601_v27 = vld [vmem:[#allocation8 + $0x130] ss:$24 sps:$4 sm:$0xff]  }
  0x99   :  { %1186 = vmatpush1.bf16.msra.mxu0 %v9517_v12  ;;  %1160 = vmatprep.subr.bf16.mxu1 %v9564_v31  ;;  %v107_v12 = vld [vmem:[#allocation7 + $0x2] ss:$8 sm:$0x3] }
  0x9a   :  { %1187 = vmatprep.subr.bf16.mxu0 %v9525_v14  ;;  %v510_v14 = vrot.slane %v105_v11, %v11269_v0  ;;  %v9607_v31 = vld [vmem:[#allocation8 + $0xd0] ss:$24 sps:$4 sm:$0xff]   ;;  %v9672_v11 = vld [vmem:[#allocation8 + $0x394] ss:$24 sps:$4 sm:$0xff]  }
  0x9c   :  { %1161 = vmatpush2.bf16.msra.mxu1 %v9562_v32  ;;  %v9612_v32 = vld [vmem:[#allocation8 + $0xa4] ss:$24 sps:$4 sm:$0xff]  }
  0x9d   :  { %1188 = vmatpush1.bf16.msra.mxu0 %v9523_v16  ;;  %1162 = vmatprep.subr.bf16.mxu1 %v9570_v35  ;;  %v519_v16 = vrot.slane %v107_v12, %v11266_v63  ;;  %v9613_v35 = vld [vmem:[#allocation8 + $0x70] ss:$24 sps:$4 sm:$0xff]  }
  0x9e   :  { %1189 = vmatprep.subr.bf16.mxu0 %v9531_v17  ;;  %v523_v17 = vrot.slane %v107_v12, %v11269_v0  ;;  %v9670_v12 = vld [vmem:[#allocation8 + $0x390] ss:$24 sps:$4 sm:$0xff]  }
  0xa0   :  { %1163 = vmatpush2.bf16.msra.mxu1 %v9568_v36  ;;  %v9618_v36 = vld [vmem:[#allocation8 + $0x44] ss:$24 sps:$4 sm:$0xff]  }
  0xa1   :  { %1190 = vmatpush1.bf16.msra.mxu0 %v9529_v18  ;;  %1164 = vmatprep.subr.bf16.mxu1 %v9576_v39  ;;  %v9619_v39 = vld [vmem:[#allocation8 + $0x10] ss:$24 sps:$4 sm:$0xff]  }
  0xa2   :  { %1191 = vmatprep.subr.bf16.mxu0 %v9537_v19 }
  0xa4   :  { %1165 = vmatpush2.bf16.msra.mxu1 %v9574_v40  ;;  %v9624_v40 = vld [vmem:[#allocation8 + $0x2e4] ss:$24 sps:$4 sm:$0xff]  }
  0xa5   :  { %1192 = vmatpush1.bf16.msra.mxu0 %v9535_v20  ;;  %1166 = vmatprep.subr.bf16.mxu1 %v9582_v43  ;;  %v9625_v43 = vld [vmem:[#allocation8 + $0x2b0] ss:$24 sps:$4 sm:$0xff]  }
  0xa6   :  { %1193 = vmatprep.subr.bf16.mxu0 %v9543_v21 }
  0xa8   :  { %1167 = vmatpush2.bf16.msra.mxu1 %v9580_v45  ;;  %v9628_v45 = vld [vmem:[#allocation8 + $0x280] ss:$24 sps:$4 sm:$0xff]  }
  0xa9   :  { %1194 = vmatpush1.bf16.msra.mxu0 %v9541_v22  ;;  %1168 = vmatprep.subr.bf16.mxu1 %v9588_v47  ;;  %v9631_v47 = vld [vmem:[#allocation8 + $0x250] ss:$24 sps:$4 sm:$0xff]  }
  0xaa   :  { %1195 = vmatprep.subr.bf16.mxu0 %v9549_v23  ;;  %v9598_v23 = vld [vmem:[#allocation8 + $0x160] ss:$24 sps:$4 sm:$0xff]  }
  0xac   :  { %1169 = vmatpush2.bf16.msra.mxu1 %v9586_v49  ;;  %v9634_v49 = vld [vmem:[#allocation8 + $0x220] ss:$24 sps:$4 sm:$0xff]  }
  0xad   :  { %1196 = vmatpush1.bf16.msra.mxu0 %v9547_v24  ;;  %1170 = vmatprep.subr.bf16.mxu1 %v9594_v51  ;;  %v9603_v24 = vld [vmem:[#allocation8 + $0x134] ss:$24 sps:$4 sm:$0xff]   ;;  %v9637_v51 = vld [vmem:[#allocation8 + $0x1f0] ss:$24 sps:$4 sm:$0xff]  }
  0xae   :  { %1197 = vmatprep.subr.bf16.mxu0 %v9555_v26 }
  0xb0   :  { %1171 = vmatpush2.bf16.msra.mxu1 %v9592_v53  ;;  %v9640_v53 = vld [vmem:[#allocation8 + $0x1c0] ss:$24 sps:$4 sm:$0xff]  }
  0xb1   :  { %1198 = vmatpush2.bf16.msra.mxu0 %v9553_v25  ;;  %1222 = vmatprep.subr.bf16.mxu1 %v9600_v55  ;;  %v9643_v55 = vld [vmem:[#allocation8 + $0x190] ss:$24 sps:$4 sm:$0xff]  }
  0xb2   :  { %1199 = vmatprep.subr.bf16.mxu0 %v9561_v29  ;;  %v9604_v29 = vld [vmem:[#allocation8 + $0x100] ss:$24 sps:$4 sm:$0xff]  }
  0xb5   :  { %1200 = vmatpush2.bf16.msra.mxu0 %v9559_v30  ;;  %v9609_v30 = vld [vmem:[#allocation8 + $0xd4] ss:$24 sps:$4 sm:$0xff]  }
  0xb6   :  { %1201 = vmatprep.subr.bf16.mxu0 %v9567_v33  ;;  %v9610_v33 = vld [vmem:[#allocation8 + $0xa0] ss:$24 sps:$4 sm:$0xff]  }
  0xb9   :  { %1202 = vmatpush2.bf16.msra.mxu0 %v9565_v34  ;;  %v9615_v34 = vld [vmem:[#allocation8 + $0x74] ss:$24 sps:$4 sm:$0xff]  }
  0xba   :  { %1203 = vmatprep.subr.bf16.mxu0 %v9573_v37  ;;  %v9616_v37 = vld [vmem:[#allocation8 + $0x40] ss:$24 sps:$4 sm:$0xff]  }
  0xbd   :  { %1204 = vmatpush2.bf16.msra.mxu0 %v9571_v38  ;;  %v9621_v38 = vld [vmem:[#allocation8 + $0x14] ss:$24 sps:$4 sm:$0xff]  }
  0xbe   :  { %1205 = vmatprep.subr.bf16.mxu0 %v9579_v41  ;;  %v9622_v41 = vld [vmem:[#allocation8 + $0x2e0] ss:$24 sps:$4 sm:$0xff]  }
  0xc1   :  { %1206 = vmatpush2.bf16.msra.mxu0 %v9577_v42  ;;  %v9627_v42 = vld [vmem:[#allocation8 + $0x2b4] ss:$24 sps:$4 sm:$0xff]  }
  0xc2   :  { %1207 = vmatprep.subr.bf16.mxu0 %v9585_v44  ;;  %v9630_v44 = vld [vmem:[#allocation8 + $0x284] ss:$24 sps:$4 sm:$0xff]  }
  0xc5   :  { %1208 = vmatpush2.bf16.msra.mxu0 %v9583_v46  ;;  %v9633_v46 = vld [vmem:[#allocation8 + $0x254] ss:$24 sps:$4 sm:$0xff]  }
  0xc6   :  { %1209 = vmatprep.subr.bf16.mxu0 %v9591_v48  ;;  %v9636_v48 = vld [vmem:[#allocation8 + $0x224] ss:$24 sps:$4 sm:$0xff]  }
  0xc9   :  { %1210 = vmatpush2.bf16.msra.mxu0 %v9589_v50  ;;  %v9639_v50 = vld [vmem:[#allocation8 + $0x1f4] ss:$24 sps:$4 sm:$0xff]  }
  0xca   :  { %1211 = vmatprep.subr.bf16.mxu0 %v9597_v52  ;;  %v9642_v52 = vld [vmem:[#allocation8 + $0x1c4] ss:$24 sps:$4 sm:$0xff]  }
  0xcd   :  { %1212 = vmatpush2.bf16.msra.mxu0 %v9595_v54  ;;  %v9645_v54 = vld [vmem:[#allocation8 + $0x194] ss:$24 sps:$4 sm:$0xff]  }
 0x133   :  { %v493_v56 = vpop.f32.mrf.mxu1 }
 0x135   :  { %v495_v57 = vpop.f32.mrf.mxu1 }
 0x137   :  { %v497_v58 = vpop.f32.mrf.mxu1 }
 0x138   :  { %v9651_v58 = vld [vmem:[#allocation8 + $0x45c] ss:$24 sps:$4 sm:$0xff]  }
 0x139   :  { %v498_v60 = vpop.f32.mrf.mxu1 }
 0x13a   :  { %v9654_v60 = vld [vmem:[#allocation8 + $0x424] ss:$24 sps:$4 sm:$0xff]  }
 0x150   :  { %v452_v3 = vpop.f32.mrf.mxu0 }
 0x151   :  { %v453_v4 = vadd.f32 %v452_v3, %v171_v1  ;;  %v9657_v1 = vld [vmem:[#allocation8 + $0x42c] ss:$24 sps:$4 sm:$0xff]  }
 0x152   :  { %v454_v5 = vpop.f32.mrf.mxu0  ;;  %v9660_v3 = vld [vmem:[#allocation8 + $0x3f4] ss:$24 sps:$4 sm:$0xff]  }
 0x153   :  { %v494_v6 = vadd.f32 %v493_v56, %v453_v4  ;;  %v455_v7 = vadd.f32 %v454_v5, %v175_v2  ;;  %v9648_v56 = vld [vmem:[#allocation8 + $0x454] ss:$24 sps:$4 sm:$0xff]   ;;  %v9655_v2 = vld [vmem:[#allocation8 + $0x428] ss:$24 sps:$4 sm:$0xff]  }
 0x154   :  { %v456_v8 = vpop.f32.mrf.mxu0  ;;  %1899 = vmatprep.subr.bf16.mxu0 %v9648_v56  ;;  %v9658_v4 = vld [vmem:[#allocation8 + $0x3f0] ss:$24 sps:$4 sm:$0xff]   ;;  %v9663_v5 = vld [vmem:[#allocation8 + $0x3fc] ss:$24 sps:$4 sm:$0xff]   ;;  %v9736_v56 = vld [vmem:[#allocation8 + $0x480] ss:$24 sps:$4 sm:$0xff]  }
 0x155   :  { %10958 = vtanh.f32 %v494_v6  ;;  %v496_v9 = vadd.f32 %v495_v57, %v455_v7  ;;  %v9646_v57 = vld [vmem:[#allocation8 + $0x450] ss:$24 sps:$4 sm:$0xff]   ;;  %v9666_v7 = vld [vmem:[#allocation8 + $0x3c4] ss:$24 sps:$4 sm:$0xff]   ;;  %v9664_v8 = vld [vmem:[#allocation8 + $0x3c0] ss:$24 sps:$4 sm:$0xff]  }
 0x156   :  { %v457_v10 = vpop.f32.mrf.mxu0  ;;  %v9661_v6 = vld [vmem:[#allocation8 + $0x3f8] ss:$24 sps:$4 sm:$0xff]  }
 0x157   :  { %10960 = vtanh.f32 %v496_v9  ;;  %v9669_v9 = vld [vmem:[#allocation8 + $0x3cc] ss:$24 sps:$4 sm:$0xff]   ;;  %v9667_v10 = vld [vmem:[#allocation8 + $0x3c8] ss:$24 sps:$4 sm:$0xff]  }
 0x162   :  { %v10959_v15 = vpop.eup %10958 }
 0x163   :  { %v513_v18 = vmul.f32 %v10959_v15, %v506_v13  ;;  %v9675_v13 = vld [vmem:[#allocation8 + $0x39c] ss:$24 sps:$4 sm:$0xff]  }
 0x164   :  { %v10961_v19 = vpop.eup %10960  ;;  %v9678_v15 = vld [vmem:[#allocation8 + $0x364] ss:$24 sps:$4 sm:$0xff]  }
 0x165   :  { %v514_v20 = vmul.f32 %v10961_v19, %v510_v14  ;;  %v526_v21 = vadd.f32 %v519_v16, %v513_v18  ;;  %v9673_v14 = vld [vmem:[#allocation8 + $0x398] ss:$24 sps:$4 sm:$0xff]   ;;  %v9679_v18 = vld [vmem:[#allocation8 + $0x368] ss:$24 sps:$4 sm:$0xff]   ;;  %v9684_v19 = vld [vmem:[#allocation8 + $0x334] ss:$24 sps:$4 sm:$0xff]  }
 0x166   :  { %v9676_v16 = vld [vmem:[#allocation8 + $0x360] ss:$24 sps:$4 sm:$0xff]  }
 0x167   :  { %v527_v22 = vadd.f32 %v523_v17, %v514_v20  ;;  %v11277_v26 = vpack.c.bf16 %v526_v21, %v526_v21  ;;  %v9681_v17 = vld [vmem:[#allocation8 + $0x36c] ss:$24 sps:$4 sm:$0xff]   ;;  %v9682_v20 = vld [vmem:[#allocation8 + $0x330] ss:$24 sps:$4 sm:$0xff]   ;;  %v9687_v21 = vld [vmem:[#allocation8 + $0x33c] ss:$24 sps:$4 sm:$0xff]  }
 0x169   :  { %v529_v25 = vpack.c.bf16 %v527_v22, %v527_v22  ;;  %v9685_v22 = vld [vmem:[#allocation8 + $0x338] ss:$24 sps:$4 sm:$0xff]  }
 0x16b   :  { %1172 = vmatprep.mubr.bf16.mxu1 %v529_v25  ;;  %1213 = vmatprep.mubr.bf16.mxu0 %v529_v25 }
 0x16c   :  { %1173 = vmatmul.mubr.bf16.vlgmr.msra.gmra.mxu1 %v11277_v26  ;;  %1214 = vmatmul.mubr.bf16.vlgmr.msra.gmra.mxu0 %v11277_v26 }
 0x16d   :  { %1223 = vmatpush1.bf16.msra.mxu1 %v9598_v23  ;;  %1254 = vmatprep.mubr.bf16.mxu1 %v529_v25  ;;  %v9688_v23 = vld [vmem:[#allocation8 + $0x300] ss:$24 sps:$4 sm:$0xff]  }
 0x16e   :  { %1224 = vmatprep.subr.bf16.mxu1 %v9603_v24  ;;  %1900 = vmatpush1.bf16.msra.mxu0 %v9646_v57  ;;  %v9690_v24 = vld [vmem:[#allocation8 + $0x304] ss:$24 sps:$4 sm:$0xff]   ;;  %v9691_v25 = vld [vmem:[#allocation8 + $0x308] ss:$24 sps:$4 sm:$0xff]  }
 0x16f   :  { %1901 = vmatprep.subr.bf16.mxu0 %v9654_v60  ;;  %v9741_v57 = vld [vmem:[#allocation8 + $0x48c] ss:$24 sps:$4 sm:$0xff]  }
 0x171   :  { %1225 = vmatpush1.bf16.msra.mxu1 %v9601_v27  ;;  %v9696_v27 = vld [vmem:[#allocation8 + $0x5d4] ss:$24 sps:$4 sm:$0xff]  }
 0x172   :  { %1226 = vmatprep.subr.bf16.mxu1 %v9606_v28  ;;  %1902 = vmatpush1.bf16.msra.mxu0 %v9652_v62  ;;  %v9699_v28 = vld [vmem:[#allocation8 + $0x5dc] ss:$24 sps:$4 sm:$0xff]  }
 0x173   :  { %1903 = vmatprep.subr.bf16.mxu0 %v9660_v3 }
 0x175   :  { %1227 = vmatpush1.bf16.msra.mxu1 %v9604_v29  ;;  %v9694_v29 = vld [vmem:[#allocation8 + $0x5d0] ss:$24 sps:$4 sm:$0xff]  }
 0x176   :  { %1228 = vmatprep.subr.bf16.mxu1 %v9609_v30  ;;  %1904 = vmatpush1.bf16.msra.mxu0 %v9658_v4  ;;  %v9697_v30 = vld [vmem:[#allocation8 + $0x5d8] ss:$24 sps:$4 sm:$0xff]  }
 0x177   :  { %1905 = vmatprep.subr.bf16.mxu0 %v9666_v7  ;;  %v626_v7 = vld [vmem:[#allocation10] ss:$8 sm:$0xf] }
 0x179   :  { %1229 = vmatpush1.bf16.msra.mxu1 %v9607_v31  ;;  %v9702_v31 = vld [vmem:[#allocation8 + $0x5a4] ss:$24 sps:$4 sm:$0xff]  }
 0x17a   :  { %1230 = vmatprep.subr.bf16.mxu1 %v9612_v32  ;;  %1906 = vmatpush1.bf16.msra.mxu0 %v9664_v8  ;;  %v9705_v32 = vld [vmem:[#allocation8 + $0x5ac] ss:$24 sps:$4 sm:$0xff]   ;;  %v627_v8 = vld [vmem:[#allocation10] ss:$8 sm:$0x30] }
 0x17b   :  { %1907 = vmatprep.subr.bf16.mxu0 %v9672_v11 }
 0x17d   :  { %1231 = vmatpush1.bf16.msra.mxu1 %v9610_v33  ;;  %v9700_v33 = vld [vmem:[#allocation8 + $0x5a0] ss:$24 sps:$4 sm:$0xff]  }
 0x17e   :  { %1232 = vmatprep.subr.bf16.mxu1 %v9615_v34  ;;  %1908 = vmatpush1.bf16.msra.mxu0 %v9670_v12  ;;  %v9703_v34 = vld [vmem:[#allocation8 + $0x5a8] ss:$24 sps:$4 sm:$0xff]  }
 0x17f   :  { %1909 = vmatprep.subr.bf16.mxu0 %v9678_v15 }
 0x181   :  { %1233 = vmatpush1.bf16.msra.mxu1 %v9613_v35  ;;  %v9708_v35 = vld [vmem:[#allocation8 + $0x574] ss:$24 sps:$4 sm:$0xff]  }
 0x182   :  { %1234 = vmatprep.subr.bf16.mxu1 %v9618_v36  ;;  %1910 = vmatpush1.bf16.msra.mxu0 %v9676_v16  ;;  %v9711_v36 = vld [vmem:[#allocation8 + $0x57c] ss:$24 sps:$4 sm:$0xff]  }
 0x183   :  { %1911 = vmatprep.subr.bf16.mxu0 %v9684_v19 }
 0x185   :  { %1235 = vmatpush1.bf16.msra.mxu1 %v9616_v37  ;;  %v9706_v37 = vld [vmem:[#allocation8 + $0x570] ss:$24 sps:$4 sm:$0xff]  }
 0x186   :  { %1236 = vmatprep.subr.bf16.mxu1 %v9621_v38  ;;  %1912 = vmatpush1.bf16.msra.mxu0 %v9682_v20  ;;  %v9709_v38 = vld [vmem:[#allocation8 + $0x578] ss:$24 sps:$4 sm:$0xff]   ;;  %v11285_v20 = vsub.s32 2, %v11263_v61 }
 0x187   :  { %1913 = vmatprep.subr.bf16.mxu0 %v9690_v24 }
 0x189   :  { %1237 = vmatpush1.bf16.msra.mxu1 %v9619_v39  ;;  %v9714_v39 = vld [vmem:[#allocation8 + $0x544] ss:$24 sps:$4 sm:$0xff]  }
 0x18a   :  { %1238 = vmatprep.subr.bf16.mxu1 %v9624_v40  ;;  %1914 = vmatpush1.bf16.msra.mxu0 %v9688_v23  ;;  %v9717_v40 = vld [vmem:[#allocation8 + $0x54c] ss:$24 sps:$4 sm:$0xff]  }
 0x18b   :  { %1915 = vmatprep.subr.bf16.mxu0 %v9696_v27 }
 0x18d   :  { %1239 = vmatpush2.bf16.msra.mxu1 %v9622_v41  ;;  %v9712_v41 = vld [vmem:[#allocation8 + $0x540] ss:$24 sps:$4 sm:$0xff]  }
 0x18e   :  { %1240 = vmatprep.subr.bf16.mxu1 %v9627_v42  ;;  %1916 = vmatpush2.bf16.msra.mxu0 %v9694_v29  ;;  %v9715_v42 = vld [vmem:[#allocation8 + $0x548] ss:$24 sps:$4 sm:$0xff]  }
 0x18f   :  { %1917 = vmatprep.subr.bf16.mxu0 %v9702_v31 }
 0x191   :  { %1241 = vmatpush2.bf16.msra.mxu1 %v9625_v43  ;;  %v9720_v43 = vld [vmem:[#allocation8 + $0x514] ss:$24 sps:$4 sm:$0xff]  }
 0x192   :  { %1242 = vmatprep.subr.bf16.mxu1 %v9630_v44  ;;  %1918 = vmatpush2.bf16.msra.mxu0 %v9700_v33  ;;  %v9723_v44 = vld [vmem:[#allocation8 + $0x51c] ss:$24 sps:$4 sm:$0xff]  }
 0x193   :  { %1919 = vmatprep.subr.bf16.mxu0 %v9708_v35 }
 0x195   :  { %1243 = vmatpush2.bf16.msra.mxu1 %v9628_v45  ;;  %v9718_v45 = vld [vmem:[#allocation8 + $0x510] ss:$24 sps:$4 sm:$0xff]  }
 0x196   :  { %1244 = vmatprep.subr.bf16.mxu1 %v9633_v46  ;;  %1920 = vmatpush2.bf16.msra.mxu0 %v9706_v37  ;;  %v9721_v46 = vld [vmem:[#allocation8 + $0x518] ss:$24 sps:$4 sm:$0xff]  }
 0x197   :  { %1921 = vmatprep.subr.bf16.mxu0 %v9714_v39 }
 0x199   :  { %1245 = vmatpush2.bf16.msra.mxu1 %v9631_v47  ;;  %v9726_v47 = vld [vmem:[#allocation8 + $0x4e4] ss:$24 sps:$4 sm:$0xff]  }
 0x19a   :  { %1246 = vmatprep.subr.bf16.mxu1 %v9636_v48  ;;  %1922 = vmatpush2.bf16.msra.mxu0 %v9712_v41  ;;  %v9724_v48 = vld [vmem:[#allocation8 + $0x4e0] ss:$24 sps:$4 sm:$0xff]  }
 0x19b   :  { %1923 = vmatprep.subr.bf16.mxu0 %v9720_v43 }
 0x19d   :  { %1247 = vmatpush2.bf16.msra.mxu1 %v9634_v49  ;;  %v9729_v49 = vld [vmem:[#allocation8 + $0x4ec] ss:$24 sps:$4 sm:$0xff]  }
 0x19e   :  { %1248 = vmatprep.subr.bf16.mxu1 %v9639_v50  ;;  %1924 = vmatpush2.bf16.msra.mxu0 %v9718_v45  ;;  %v9727_v50 = vld [vmem:[#allocation8 + $0x4e8] ss:$24 sps:$4 sm:$0xff]  }
 0x19f   :  { %1925 = vmatprep.subr.bf16.mxu0 %v9726_v47 }
 0x1a1   :  { %1249 = vmatpush2.bf16.msra.mxu1 %v9637_v51  ;;  %v9732_v51 = vld [vmem:[#allocation8 + $0x4b4] ss:$24 sps:$4 sm:$0xff]  }
 0x1a2   :  { %1250 = vmatprep.subr.bf16.mxu1 %v9642_v52  ;;  %1926 = vmatpush2.bf16.msra.mxu0 %v9724_v48  ;;  %v9730_v52 = vld [vmem:[#allocation8 + $0x4b0] ss:$24 sps:$4 sm:$0xff]   ;;  %v9742_v48 = vld [vmem:[#allocation8 + $0x460] ss:$24 sps:$4 sm:$0xff]  }
 0x1a3   :  { %1927 = vmatprep.subr.bf16.mxu0 %v9732_v51  ;;  %v9745_v51 = vld [vmem:[#allocation8 + $0x430] ss:$24 sps:$4 sm:$0xff]  }
 0x1a5   :  { %1251 = vmatpush2.bf16.msra.mxu1 %v9640_v53  ;;  %v9735_v53 = vld [vmem:[#allocation8 + $0x4bc] ss:$24 sps:$4 sm:$0xff]  }
 0x1a6   :  { %1252 = vmatprep.subr.bf16.mxu1 %v9645_v54  ;;  %v9733_v54 = vld [vmem:[#allocation8 + $0x4b8] ss:$24 sps:$4 sm:$0xff]   ;;  %1928 = vmatpush2.bf16.msra.mxu0 %v9730_v52  ;;  %v9750_v52 = vld [vmem:[#allocation8 + $0x404] ss:$24 sps:$4 sm:$0xff]  }
 0x1a9   :  { %1253 = vmatpush2.bf16.msra.mxu1 %v9643_v55  ;;  %v9738_v55 = vld [vmem:[#allocation8 + $0x484] ss:$24 sps:$4 sm:$0xff]  }
 0x1aa   :  { %1940 = vmatprep.subr.bf16.mxu1 %v9651_v58  ;;  %1929 = vmatprep.subr.bf16.mxu0 %v9738_v55  ;;  %v9739_v58 = vld [vmem:[#allocation8 + $0x488] ss:$24 sps:$4 sm:$0xff]  }
 0x1ab   :  { %1930 = vmatpush2.bf16.msra.mxu0 %v9736_v56  ;;  %v9751_v55 = vld [vmem:[#allocation8 + $0x3d0] ss:$24 sps:$4 sm:$0xff]   ;;  %v9756_v56 = vld [vmem:[#allocation8 + $0x3a4] ss:$24 sps:$4 sm:$0xff]  }
 0x1ac   :  { %1255 = vmatmul.mubr.bf16.vlgmr.msra.gmra.mxu1 %v11277_v26  ;;  %v9693_v26 = vld [vmem:[#allocation8 + $0x30c] ss:$24 sps:$4 sm:$0xff]  }
 0x1ad   :  { %1941 = vmatpush1.bf16.msra.mxu1 %v9649_v59  ;;  %v9744_v59 = vld [vmem:[#allocation8 + $0x464] ss:$24 sps:$4 sm:$0xff]  }
 0x1ae   :  { %1942 = vmatprep.subr.bf16.mxu1 %v9657_v1  ;;  %1981 = vmatprep.subr.bf16.mxu0 %v9744_v59  ;;  %v9757_v59 = vld [vmem:[#allocation8 + $0x370] ss:$24 sps:$4 sm:$0xff]  }
 0x1b1   :  { %1943 = vmatpush1.bf16.msra.mxu1 %v9655_v2 }
 0x1b2   :  { %1944 = vmatprep.subr.bf16.mxu1 %v9663_v5 }
 0x1b5   :  { %1945 = vmatpush1.bf16.msra.mxu1 %v9661_v6 }
 0x1b6   :  { %1946 = vmatprep.subr.bf16.mxu1 %v9669_v9  ;;  %v628_v9 = vor.u32 %v627_v8, %v626_v7  ;;  %v9774_v7 = vld [vmem:[#allocation8 + $0x584] ss:$24 sps:$4 sm:$0xff]   ;;  %v9772_v8 = vld [vmem:[#allocation8 + $0x580] ss:$24 sps:$4 sm:$0xff]  }
 0x1b8   :  { %v637_v11 = vrot.slane %v628_v9, %v11269_v0  ;;  %v641_v23 = vrot.slane %v628_v9, %v11285_v20 }
 0x1b9   :  { %1947 = vmatpush1.bf16.msra.mxu1 %v9667_v10  ;;  %v633_v10 = vrot.slane %v628_v9, %v11266_v63 }
 0x1ba   :  { %1948 = vmatprep.subr.bf16.mxu1 %v9675_v13 }
 0x1bd   :  { %1949 = vmatpush1.bf16.msra.mxu1 %v9673_v14 }
 0x1be   :  { %1950 = vmatprep.subr.bf16.mxu1 %v9681_v17 }
 0x1c1   :  { %1951 = vmatpush1.bf16.msra.mxu1 %v9679_v18 }
 0x1c2   :  { %1952 = vmatprep.subr.bf16.mxu1 %v9687_v21  ;;  %v11288_v21 = vsub.s32 3, %v11263_v61 }
 0x1c4   :  { %v645_v24 = vrot.slane %v628_v9, %v11288_v21 }
 0x1c5   :  { %1953 = vmatpush1.bf16.msra.mxu1 %v9685_v22  ;;  %v11291_v22 = vsub.s32 4, %v11263_v61 }
 0x1c6   :  { %1954 = vmatprep.subr.bf16.mxu1 %v9693_v26 }
 0x1c7   :  { %v649_v26 = vrot.slane %v628_v9, %v11291_v22 }
 0x1c9   :  { %1955 = vmatpush1.bf16.msra.mxu1 %v9691_v25  ;;  %v11296_v25 = vsub.s32 5, %v11263_v61 }
 0x1ca   :  { %1956 = vmatprep.subr.bf16.mxu1 %v9699_v28 }
 0x1cd   :  { %1957 = vmatpush2.bf16.msra.mxu1 %v9697_v30  ;;  %v653_v30 = vrot.slane %v628_v9, %v11296_v25  ;;  %v9777_v9 = vld [vmem:[#allocation8 + $0x554] ss:$24 sps:$4 sm:$0xff]  }
 0x1ce   :  { %1958 = vmatprep.subr.bf16.mxu1 %v9705_v32 }
 0x1d1   :  { %1959 = vmatpush2.bf16.msra.mxu1 %v9703_v34 }
 0x1d2   :  { %1960 = vmatprep.subr.bf16.mxu1 %v9711_v36 }
 0x1d5   :  { %1961 = vmatpush2.bf16.msra.mxu1 %v9709_v38 }
 0x1d6   :  { %1962 = vmatprep.subr.bf16.mxu1 %v9717_v40 }
 0x1d9   :  { %1963 = vmatpush2.bf16.msra.mxu1 %v9715_v42 }
 0x1da   :  { %1964 = vmatprep.subr.bf16.mxu1 %v9723_v44 }
 0x1dd   :  { %1965 = vmatpush2.bf16.msra.mxu1 %v9721_v46 }
 0x1de   :  { %1966 = vmatprep.subr.bf16.mxu1 %v9729_v49 }
 0x1e1   :  { %1967 = vmatpush2.bf16.msra.mxu1 %v9727_v50  ;;  %v9747_v50 = vld [vmem:[#allocation8 + $0x434] ss:$24 sps:$4 sm:$0xff]  }
 0x1e2   :  { %1968 = vmatprep.subr.bf16.mxu1 %v9735_v53  ;;  %v9748_v53 = vld [vmem:[#allocation8 + $0x400] ss:$24 sps:$4 sm:$0xff]  }
 0x1e5   :  { %1969 = vmatpush2.bf16.msra.mxu1 %v9733_v54  ;;  %v9753_v54 = vld [vmem:[#allocation8 + $0x3d4] ss:$24 sps:$4 sm:$0xff]  }
 0x1e6   :  { %1970 = vmatprep.subr.bf16.mxu1 %v9741_v57  ;;  %v9754_v57 = vld [vmem:[#allocation8 + $0x3a0] ss:$24 sps:$4 sm:$0xff]  }
 0x1e9   :  { %1971 = vmatpush2.bf16.msra.mxu1 %v9739_v58  ;;  %v9759_v58 = vld [vmem:[#allocation8 + $0x374] ss:$24 sps:$4 sm:$0xff]  }
 0x22c   :  { %v1174_v60 = vpop.f32.mrf.mxu1  ;;  %v1215_v62 = vpop.f32.mrf.mxu0 }
 0x22d   :  { %v1175_v12 = vadd.f32 %v1174_v60, %v633_v10  ;;  %v1216_v28 = vadd.f32 %v1215_v62, %v641_v23  ;;  %v9762_v60 = vld [vmem:[#allocation8 + $0x344] ss:$24 sps:$4 sm:$0xff]   ;;  %v9760_v62 = vld [vmem:[#allocation8 + $0x340] ss:$24 sps:$4 sm:$0xff]   ;;  %v9775_v10 = vld [vmem:[#allocation8 + $0x550] ss:$24 sps:$4 sm:$0xff]  }
 0x22e   :  { %v1176_v1 = vpop.f32.mrf.mxu1  ;;  %v1217_v2 = vpop.f32.mrf.mxu0  ;;  %v9790_v23 = vld [vmem:[#allocation8 + $0x750] ss:$24 sps:$4 sm:$0xff]  }
 0x22f   :  { %v1177_v13 = vadd.f32 %v1176_v1, %v637_v11  ;;  %v8492_v14 = vmul.f32 -1.442695, %v1175_v12  ;;  %v1218_v29 = vadd.f32 %v1217_v2, %v645_v24  ;;  %v1275_v35 = vmax.f32 %v1216_v28, 0.0  ;;  %v9765_v1 = vld [vmem:[#allocation8 + $0x314] ss:$24 sps:$4 sm:$0xff]  }
 0x230   :  { %v1178_v3 = vpop.f32.mrf.mxu1  ;;  %v1219_v4 = vpop.f32.mrf.mxu0  ;;  %v9763_v2 = vld [vmem:[#allocation8 + $0x310] ss:$24 sps:$4 sm:$0xff]   ;;  %v9780_v11 = vld [vmem:[#allocation8 + $0x524] ss:$24 sps:$4 sm:$0xff]   ;;  %v9778_v12 = vld [vmem:[#allocation8 + $0x520] ss:$24 sps:$4 sm:$0xff]  }
 0x231   :  { %v8493_v15 = vmul.f32 -1.442695, %v1177_v13  ;;  %10962 = vpow2.f32 %v8492_v14  ;;  %v1276_v37 = vmax.f32 %v1218_v29, 0.0  ;;  %v9768_v3 = vld [vmem:[#allocation8 + $0x5e4] ss:$24 sps:$4 sm:$0xff]  }
 0x232   :  { %v1179_v5 = vpop.f32.mrf.mxu1  ;;  %v1220_v6 = vpop.f32.mrf.mxu0  ;;  %v9766_v4 = vld [vmem:[#allocation8 + $0x5e0] ss:$24 sps:$4 sm:$0xff]   ;;  %v9783_v13 = vld [vmem:[#allocation8 + $0x4f4] ss:$24 sps:$4 sm:$0xff]   ;;  %v9781_v14 = vld [vmem:[#allocation8 + $0x4f0] ss:$24 sps:$4 sm:$0xff]  }
 0x233   :  { %10964 = vpow2.f32 %v8493_v15  ;;  %v9771_v5 = vld [vmem:[#allocation8 + $0x5b4] ss:$24 sps:$4 sm:$0xff]   ;;  %v9769_v6 = vld [vmem:[#allocation8 + $0x5b0] ss:$24 sps:$4 sm:$0xff]   ;;  %v9786_v15 = vld [vmem:[#allocation8 + $0x4c4] ss:$24 sps:$4 sm:$0xff]  }
 0x234   :  { %v9795_v24 = vld [vmem:[#allocation8 + $0x75c] ss:$24 sps:$4 sm:$0xff]   ;;  %v9796_v28 = vld [vmem:[#allocation8 + $0x720] ss:$24 sps:$4 sm:$0xff]   ;;  %v9801_v29 = vld [vmem:[#allocation8 + $0x72c] ss:$24 sps:$4 sm:$0xff]  }
 0x23e   :  { %v10963_v16 = vpop.eup %10962 }
 0x23f   :  { %v1269_v18 = vadd.f32 1.0, %v10963_v16  ;;  %v9784_v16 = vld [vmem:[#allocation8 + $0x4c0] ss:$24 sps:$4 sm:$0xff]  }
 0x240   :  { %v10965_v17 = vpop.eup %10964 }
 0x241   :  { %v1270_v19 = vadd.f32 1.0, %v10965_v17  ;;  %10966 = vrcp.f32 %v1269_v18  ;;  %v9789_v17 = vld [vmem:[#allocation8 + $0x494] ss:$24 sps:$4 sm:$0xff]   ;;  %v9787_v18 = vld [vmem:[#allocation8 + $0x490] ss:$24 sps:$4 sm:$0xff]  }
 0x243   :  { %10968 = vrcp.f32 %v1270_v19  ;;  %v9792_v19 = vld [vmem:[#allocation8 + $0x754] ss:$24 sps:$4 sm:$0xff]  }
 0x244   :  { %2658 = vmatprep.subr.bf16.mxu1 %v9792_v19  ;;  %v9879_v19 = vld [vmem:[#allocation8 + $0x7bc] ss:$24 sps:$4 sm:$0xff]  }
 0x24e   :  { %v10967_v27 = vpop.eup %10966 }
 0x24f   :  { %v1279_v34 = vsub.f32 1.0, %v10967_v27  ;;  %v1277_v41 = vmul.f32 %v10967_v27, %v1275_v35  ;;  %v9798_v27 = vld [vmem:[#allocation8 + $0x724] ss:$24 sps:$4 sm:$0xff]  }
 0x250   :  { %v10969_v31 = vpop.eup %10968  ;;  %v9810_v35 = vld [vmem:[#allocation8 + $0x6c4] ss:$24 sps:$4 sm:$0xff]  }
 0x251   :  { %v1280_v40 = vsub.f32 1.0, %v10969_v31  ;;  %v1278_v42 = vmul.f32 %v10969_v31, %v1276_v37  ;;  %v9804_v31 = vld [vmem:[#allocation8 + $0x6f4] ss:$24 sps:$4 sm:$0xff]  }
 0x252   :  { %v9813_v37 = vld [vmem:[#allocation8 + $0x6cc] ss:$24 sps:$4 sm:$0xff]  }
 0x26c   :  { %v1256_v32 = vpop.f32.mrf.mxu1 }
 0x26d   :  { %v1257_v33 = vadd.f32 %v1256_v32, %v649_v26  ;;  %v9793_v26 = vld [vmem:[#allocation8 + $0x758] ss:$24 sps:$4 sm:$0xff]  }
 0x26e   :  { %v1258_v36 = vpop.f32.mrf.mxu1  ;;  %v9802_v32 = vld [vmem:[#allocation8 + $0x6f0] ss:$24 sps:$4 sm:$0xff]  }
 0x26f   :  { %v1281_v38 = vmul.f32 %v1279_v34, %v1257_v33  ;;  %v1259_v39 = vadd.f32 %v1258_v36, %v653_v30  ;;  %v9799_v30 = vld [vmem:[#allocation8 + $0x728] ss:$24 sps:$4 sm:$0xff]   ;;  %v9807_v33 = vld [vmem:[#allocation8 + $0x6fc] ss:$24 sps:$4 sm:$0xff]   ;;  %v9805_v34 = vld [vmem:[#allocation8 + $0x6f8] ss:$24 sps:$4 sm:$0xff]  }
 0x270   :  { %v1260_v61 = vpop.f32.mrf.mxu1  ;;  %v9808_v36 = vld [vmem:[#allocation8 + $0x6c0] ss:$24 sps:$4 sm:$0xff]  }
 0x271   :  { %v1282_v43 = vmul.f32 %v1280_v40, %v1259_v39  ;;  %v1283_v44 = vadd.f32 %v1281_v38, %v1277_v41  ;;  %v9811_v38 = vld [vmem:[#allocation8 + $0x6c8] ss:$24 sps:$4 sm:$0xff]   ;;  %v9816_v39 = vld [vmem:[#allocation8 + $0x694] ss:$24 sps:$4 sm:$0xff]   ;;  %v9817_v61 = vld [vmem:[#allocation8 + $0x698] ss:$24 sps:$4 sm:$0xff]  }
 0x272   :  { %v1261_v45 = vpop.f32.mrf.mxu1  ;;  %v9814_v40 = vld [vmem:[#allocation8 + $0x690] ss:$24 sps:$4 sm:$0xff]   ;;  %v9819_v41 = vld [vmem:[#allocation8 + $0x69c] ss:$24 sps:$4 sm:$0xff]  }
 0x273   :  { %v1284_v46 = vadd.f32 %v1282_v43, %v1278_v42  ;;  %v11300_v49 = vpack.c.bf16 %v1283_v44, %v1283_v44  ;;  %v9822_v42 = vld [vmem:[#allocation8 + $0x664] ss:$24 sps:$4 sm:$0xff]   ;;  %v9820_v43 = vld [vmem:[#allocation8 + $0x660] ss:$24 sps:$4 sm:$0xff]  }
 0x274   :  { %v9825_v44 = vld [vmem:[#allocation8 + $0x66c] ss:$24 sps:$4 sm:$0xff]   ;;  %v9823_v45 = vld [vmem:[#allocation8 + $0x668] ss:$24 sps:$4 sm:$0xff]  }
 0x275   :  { %v1286_v47 = vpack.c.bf16 %v1284_v46, %v1284_v46  ;;  %v9828_v46 = vld [vmem:[#allocation8 + $0x634] ss:$24 sps:$4 sm:$0xff]  }
 0x277   :  { %1931 = vmatprep.mubr.bf16.mxu0 %v1286_v47  ;;  %1972 = vmatprep.mubr.bf16.mxu1 %v1286_v47 }
 0x278   :  { %1932 = vmatmul.mubr.bf16.vlgmr.msra.gmra.mxu0 %v11300_v49  ;;  %1973 = vmatmul.mubr.bf16.vlgmr.msra.gmra.mxu1 %v11300_v49 }
 0x279   :  { %1982 = vmatpush1.bf16.msra.mxu0 %v9742_v48  ;;  %2013 = vmatprep.mubr.bf16.mxu0 %v1286_v47  ;;  %v9826_v47 = vld [vmem:[#allocation8 + $0x630] ss:$24 sps:$4 sm:$0xff]   ;;  %v9831_v48 = vld [vmem:[#allocation8 + $0x63c] ss:$24 sps:$4 sm:$0xff]  }
 0x27a   :  { %1983 = vmatprep.subr.bf16.mxu0 %v9747_v50  ;;  %2659 = vmatpush1.bf16.msra.mxu1 %v9790_v23  ;;  %v9832_v50 = vld [vmem:[#allocation8 + $0x600] ss:$24 sps:$4 sm:$0xff]  }
 0x27b   :  { %2660 = vmatprep.subr.bf16.mxu1 %v9798_v27  ;;  %v9877_v23 = vld [vmem:[#allocation8 + $0x7b8] ss:$24 sps:$4 sm:$0xff]   ;;  %v9885_v27 = vld [vmem:[#allocation8 + $0x78c] ss:$24 sps:$4 sm:$0xff]  }
 0x27d   :  { %1984 = vmatpush1.bf16.msra.mxu0 %v9745_v51  ;;  %v9834_v51 = vld [vmem:[#allocation8 + $0x604] ss:$24 sps:$4 sm:$0xff]  }
 0x27e   :  { %1985 = vmatprep.subr.bf16.mxu0 %v9750_v52  ;;  %2661 = vmatpush1.bf16.msra.mxu1 %v9796_v28  ;;  %v9835_v52 = vld [vmem:[#allocation8 + $0x608] ss:$24 sps:$4 sm:$0xff]  }
 0x27f   :  { %2662 = vmatprep.subr.bf16.mxu1 %v9804_v31  ;;  %v9883_v28 = vld [vmem:[#allocation8 + $0x788] ss:$24 sps:$4 sm:$0xff]  }
 0x281   :  { %1986 = vmatpush1.bf16.msra.mxu0 %v9748_v53  ;;  %v9837_v53 = vld [vmem:[#allocation8 + $0x60c] ss:$24 sps:$4 sm:$0xff]  }
 0x282   :  { %1987 = vmatprep.subr.bf16.mxu0 %v9753_v54  ;;  %2663 = vmatpush1.bf16.msra.mxu1 %v9802_v32  ;;  %v9840_v54 = vld [vmem:[#allocation8 + $0x8d4] ss:$24 sps:$4 sm:$0xff]  }
 0x283   :  { %2664 = vmatprep.subr.bf16.mxu1 %v9810_v35 }
 0x285   :  { %1988 = vmatpush1.bf16.msra.mxu0 %v9751_v55  ;;  %v9843_v55 = vld [vmem:[#allocation8 + $0x8dc] ss:$24 sps:$4 sm:$0xff]  }
 0x286   :  { %1989 = vmatprep.subr.bf16.mxu0 %v9756_v56  ;;  %2665 = vmatpush1.bf16.msra.mxu1 %v9808_v36  ;;  %v9838_v56 = vld [vmem:[#allocation8 + $0x8d0] ss:$24 sps:$4 sm:$0xff]  }
 0x287   :  { %2666 = vmatprep.subr.bf16.mxu1 %v9816_v39  ;;  %v1386_v39 = vld [vmem:[#allocation10 + $0x1] ss:$8 sm:$0x30] }
 0x289   :  { %1990 = vmatpush1.bf16.msra.mxu0 %v9754_v57  ;;  %v9841_v57 = vld [vmem:[#allocation8 + $0x8d8] ss:$24 sps:$4 sm:$0xff]  }
 0x28a   :  { %1991 = vmatprep.subr.bf16.mxu0 %v9759_v58  ;;  %2667 = vmatpush1.bf16.msra.mxu1 %v9814_v40  ;;  %v9846_v58 = vld [vmem:[#allocation8 + $0x8a4] ss:$24 sps:$4 sm:$0xff]  }
 0x28b   :  { %2668 = vmatprep.subr.bf16.mxu1 %v9822_v42 }
 0x28d   :  { %1992 = vmatpush1.bf16.msra.mxu0 %v9757_v59  ;;  %v9849_v59 = vld [vmem:[#allocation8 + $0x8ac] ss:$24 sps:$4 sm:$0xff]  }
 0x28e   :  { %1993 = vmatprep.subr.bf16.mxu0 %v9762_v60  ;;  %2669 = vmatpush1.bf16.msra.mxu1 %v9820_v43  ;;  %v9844_v60 = vld [vmem:[#allocation8 + $0x8a0] ss:$24 sps:$4 sm:$0xff]  }
 0x28f   :  { %2670 = vmatprep.subr.bf16.mxu1 %v9828_v46 }
 0x291   :  { %1994 = vmatpush1.bf16.msra.mxu0 %v9760_v62  ;;  %v9847_v62 = vld [vmem:[#allocation8 + $0x8a8] ss:$24 sps:$4 sm:$0xff]  }
 0x292   :  { %1995 = vmatprep.subr.bf16.mxu0 %v9765_v1  ;;  %2671 = vmatpush1.bf16.msra.mxu1 %v9826_v47  ;;  %v9852_v1 = vld [vmem:[#allocation8 + $0x874] ss:$24 sps:$4 sm:$0xff]  }
 0x293   :  { %2672 = vmatprep.subr.bf16.mxu1 %v9834_v51 }
 0x295   :  { %1996 = vmatpush1.bf16.msra.mxu0 %v9763_v2  ;;  %v9855_v2 = vld [vmem:[#allocation8 + $0x87c] ss:$24 sps:$4 sm:$0xff]  }
 0x296   :  { %1997 = vmatprep.subr.bf16.mxu0 %v9768_v3  ;;  %2673 = vmatpush1.bf16.msra.mxu1 %v9832_v50  ;;  %v9850_v3 = vld [vmem:[#allocation8 + $0x870] ss:$24 sps:$4 sm:$0xff]  }
 0x297   :  { %2674 = vmatprep.subr.bf16.mxu1 %v9840_v54 }
 0x299   :  { %1998 = vmatpush2.bf16.msra.mxu0 %v9766_v4  ;;  %v9853_v4 = vld [vmem:[#allocation8 + $0x878] ss:$24 sps:$4 sm:$0xff]  }
 0x29a   :  { %1999 = vmatprep.subr.bf16.mxu0 %v9771_v5  ;;  %2675 = vmatpush2.bf16.msra.mxu1 %v9838_v56  ;;  %v9858_v5 = vld [vmem:[#allocation8 + $0x844] ss:$24 sps:$4 sm:$0xff]  }
 0x29b   :  { %2676 = vmatprep.subr.bf16.mxu1 %v9846_v58 }
 0x29d   :  { %2000 = vmatpush2.bf16.msra.mxu0 %v9769_v6  ;;  %v9861_v6 = vld [vmem:[#allocation8 + $0x84c] ss:$24 sps:$4 sm:$0xff]  }
 0x29e   :  { %2001 = vmatprep.subr.bf16.mxu0 %v9774_v7  ;;  %2677 = vmatpush2.bf16.msra.mxu1 %v9844_v60  ;;  %v9856_v7 = vld [vmem:[#allocation8 + $0x840] ss:$24 sps:$4 sm:$0xff]  }
 0x29f   :  { %2678 = vmatprep.subr.bf16.mxu1 %v9852_v1 }
 0x2a1   :  { %2002 = vmatpush2.bf16.msra.mxu0 %v9772_v8  ;;  %v9859_v8 = vld [vmem:[#allocation8 + $0x848] ss:$24 sps:$4 sm:$0xff]  }
 0x2a2   :  { %2003 = vmatprep.subr.bf16.mxu0 %v9777_v9  ;;  %2679 = vmatpush2.bf16.msra.mxu1 %v9850_v3  ;;  %v9864_v9 = vld [vmem:[#allocation8 + $0x814] ss:$24 sps:$4 sm:$0xff]  }
 0x2a3   :  { %2680 = vmatprep.subr.bf16.mxu1 %v9858_v5 }
 0x2a5   :  { %2004 = vmatpush2.bf16.msra.mxu0 %v9775_v10  ;;  %v9867_v10 = vld [vmem:[#allocation8 + $0x81c] ss:$24 sps:$4 sm:$0xff]  }
 0x2a6   :  { %2005 = vmatprep.subr.bf16.mxu0 %v9780_v11  ;;  %2681 = vmatpush2.bf16.msra.mxu1 %v9856_v7  ;;  %v9862_v11 = vld [vmem:[#allocation8 + $0x810] ss:$24 sps:$4 sm:$0xff]  }
 0x2a7   :  { %2682 = vmatprep.subr.bf16.mxu1 %v9864_v9 }
 0x2a9   :  { %2006 = vmatpush2.bf16.msra.mxu0 %v9778_v12  ;;  %v9865_v12 = vld [vmem:[#allocation8 + $0x818] ss:$24 sps:$4 sm:$0xff]  }
 0x2aa   :  { %2007 = vmatprep.subr.bf16.mxu0 %v9783_v13  ;;  %v9870_v13 = vld [vmem:[#allocation8 + $0x7e4] ss:$24 sps:$4 sm:$0xff]   ;;  %2683 = vmatpush2.bf16.msra.mxu1 %v9862_v11 }
 0x2ab   :  { %2684 = vmatprep.subr.bf16.mxu1 %v9870_v13 }
 0x2ad   :  { %2008 = vmatpush2.bf16.msra.mxu0 %v9781_v14  ;;  %v9868_v14 = vld [vmem:[#allocation8 + $0x7e0] ss:$24 sps:$4 sm:$0xff]  }
 0x2ae   :  { %2009 = vmatprep.subr.bf16.mxu0 %v9786_v15  ;;  %v9873_v15 = vld [vmem:[#allocation8 + $0x7ec] ss:$24 sps:$4 sm:$0xff]   ;;  %2685 = vmatpush2.bf16.msra.mxu1 %v9868_v14  ;;  %v9886_v14 = vld [vmem:[#allocation8 + $0x760] ss:$24 sps:$4 sm:$0xff]  }
 0x2b1   :  { %2010 = vmatpush2.bf16.msra.mxu0 %v9784_v16  ;;  %v9871_v16 = vld [vmem:[#allocation8 + $0x7e8] ss:$24 sps:$4 sm:$0xff]  }
 0x2b2   :  { %2011 = vmatprep.subr.bf16.mxu0 %v9789_v17  ;;  %v9876_v17 = vld [vmem:[#allocation8 + $0x7b4] ss:$24 sps:$4 sm:$0xff]  }
 0x2b3   :  { %2686 = vmatprep.subr.bf16.mxu1 %v9876_v17  ;;  %v9889_v17 = vld [vmem:[#allocation8 + $0x730] ss:$24 sps:$4 sm:$0xff]  }
 0x2b5   :  { %2012 = vmatpush2.bf16.msra.mxu0 %v9787_v18  ;;  %v9874_v18 = vld [vmem:[#allocation8 + $0x7b0] ss:$24 sps:$4 sm:$0xff]  }
 0x2b6   :  { %2699 = vmatprep.subr.bf16.mxu0 %v9795_v24  ;;  %2687 = vmatpush2.bf16.msra.mxu1 %v9874_v18  ;;  %v9882_v24 = vld [vmem:[#allocation8 + $0x784] ss:$24 sps:$4 sm:$0xff]  }
 0x2b7   :  { %2688 = vmatprep.subr.bf16.mxu1 %v9882_v24  ;;  %v9894_v18 = vld [vmem:[#allocation8 + $0x704] ss:$24 sps:$4 sm:$0xff]   ;;  %v9895_v24 = vld [vmem:[#allocation8 + $0x6d0] ss:$24 sps:$4 sm:$0xff]  }
 0x2b8   :  { %2014 = vmatmul.mubr.bf16.vlgmr.msra.gmra.mxu0 %v11300_v49  ;;  %v9829_v49 = vld [vmem:[#allocation8 + $0x638] ss:$24 sps:$4 sm:$0xff]  }
 0x2b9   :  { %2700 = vmatpush1.bf16.msra.mxu0 %v9793_v26  ;;  %v9880_v26 = vld [vmem:[#allocation8 + $0x780] ss:$24 sps:$4 sm:$0xff]  }
 0x2ba   :  { %2701 = vmatprep.subr.bf16.mxu0 %v9801_v29  ;;  %2689 = vmatpush2.bf16.msra.mxu1 %v9880_v26  ;;  %v9888_v29 = vld [vmem:[#allocation8 + $0x764] ss:$24 sps:$4 sm:$0xff]  }
 0x2bb   :  { %2740 = vmatprep.subr.bf16.mxu1 %v9888_v29  ;;  %v9900_v26 = vld [vmem:[#allocation8 + $0x6a4] ss:$24 sps:$4 sm:$0xff]   ;;  %v9901_v29 = vld [vmem:[#allocation8 + $0x670] ss:$24 sps:$4 sm:$0xff]  }
 0x2bd   :  { %2702 = vmatpush1.bf16.msra.mxu0 %v9799_v30 }
 0x2be   :  { %2703 = vmatprep.subr.bf16.mxu0 %v9807_v33 }
 0x2c1   :  { %2704 = vmatpush1.bf16.msra.mxu0 %v9805_v34 }
 0x2c2   :  { %2705 = vmatprep.subr.bf16.mxu0 %v9813_v37 }
 0x2c5   :  { %2706 = vmatpush1.bf16.msra.mxu0 %v9811_v38  ;;  %v1385_v38 = vld [vmem:[#allocation10 + $0x1] ss:$8 sm:$0xf] }
 0x2c6   :  { %2707 = vmatprep.subr.bf16.mxu0 %v9819_v41  ;;  %v1387_v40 = vor.u32 %v1386_v39, %v1385_v38  ;;  %v9918_v38 = vld [vmem:[#allocation8 + $0x884] ss:$24 sps:$4 sm:$0xff]   ;;  %v9916_v39 = vld [vmem:[#allocation8 + $0x880] ss:$24 sps:$4 sm:$0xff]  }
 0x2c8   :  { %v1392_v41 = vrot.slane %v1387_v40, %v11266_v63  ;;  %v1400_v50 = vrot.slane %v1387_v40, %v11285_v20  ;;  %v1404_v51 = vrot.slane %v1387_v40, %v11288_v21  ;;  %v1412_v56 = vrot.slane %v1387_v40, %v11296_v25 }
 0x2c9   :  { %2708 = vmatpush1.bf16.msra.mxu0 %v9817_v61  ;;  %v1396_v61 = vrot.slane %v1387_v40, %v11269_v0 }
 0x2ca   :  { %2709 = vmatprep.subr.bf16.mxu0 %v9825_v44 }
 0x2cd   :  { %2710 = vmatpush1.bf16.msra.mxu0 %v9823_v45 }
 0x2ce   :  { %2711 = vmatprep.subr.bf16.mxu0 %v9831_v48 }
 0x2d1   :  { %2712 = vmatpush1.bf16.msra.mxu0 %v9829_v49 }
 0x2d2   :  { %2713 = vmatprep.subr.bf16.mxu0 %v9837_v53 }
 0x2d5   :  { %2714 = vmatpush1.bf16.msra.mxu0 %v9835_v52  ;;  %v1408_v52 = vrot.slane %v1387_v40, %v11291_v22  ;;  %v9921_v40 = vld [vmem:[#allocation8 + $0x854] ss:$24 sps:$4 sm:$0xff]  }
 0x2d6   :  { %2715 = vmatprep.subr.bf16.mxu0 %v9843_v55 }
 0x2d9   :  { %2716 = vmatpush2.bf16.msra.mxu0 %v9841_v57 }
 0x2da   :  { %2717 = vmatprep.subr.bf16.mxu0 %v9849_v59 }
 0x2dd   :  { %2718 = vmatpush2.bf16.msra.mxu0 %v9847_v62 }
 0x2de   :  { %2719 = vmatprep.subr.bf16.mxu0 %v9855_v2 }
 0x2e1   :  { %2720 = vmatpush2.bf16.msra.mxu0 %v9853_v4 }
 0x2e2   :  { %2721 = vmatprep.subr.bf16.mxu0 %v9861_v6 }
 0x2e5   :  { %2722 = vmatpush2.bf16.msra.mxu0 %v9859_v8 }
 0x2e6   :  { %2723 = vmatprep.subr.bf16.mxu0 %v9867_v10 }
 0x2e9   :  { %2724 = vmatpush2.bf16.msra.mxu0 %v9865_v12 }
 0x2ea   :  { %2725 = vmatprep.subr.bf16.mxu0 %v9873_v15 }
 0x2ed   :  { %2726 = vmatpush2.bf16.msra.mxu0 %v9871_v16  ;;  %v9891_v16 = vld [vmem:[#allocation8 + $0x734] ss:$24 sps:$4 sm:$0xff]  }
 0x2ee   :  { %2727 = vmatprep.subr.bf16.mxu0 %v9879_v19  ;;  %v9892_v19 = vld [vmem:[#allocation8 + $0x700] ss:$24 sps:$4 sm:$0xff]  }
 0x2f1   :  { %2728 = vmatpush2.bf16.msra.mxu0 %v9877_v23  ;;  %v9897_v23 = vld [vmem:[#allocation8 + $0x6d4] ss:$24 sps:$4 sm:$0xff]  }
 0x2f2   :  { %2729 = vmatprep.subr.bf16.mxu0 %v9885_v27  ;;  %v9898_v27 = vld [vmem:[#allocation8 + $0x6a0] ss:$24 sps:$4 sm:$0xff]  }
 0x2f5   :  { %2730 = vmatpush2.bf16.msra.mxu0 %v9883_v28  ;;  %v9903_v28 = vld [vmem:[#allocation8 + $0x674] ss:$24 sps:$4 sm:$0xff]  }
 0x338   :  { %v1933_v30 = vpop.f32.mrf.mxu0  ;;  %v1974_v31 = vpop.f32.mrf.mxu1 }
 0x339   :  { %v1934_v42 = vadd.f32 %v1933_v30, %v1392_v41  ;;  %v1975_v54 = vadd.f32 %v1974_v31, %v1400_v50  ;;  %v9906_v30 = vld [vmem:[#allocation8 + $0x644] ss:$24 sps:$4 sm:$0xff]   ;;  %v9904_v31 = vld [vmem:[#allocation8 + $0x640] ss:$24 sps:$4 sm:$0xff]   ;;  %v9919_v41 = vld [vmem:[#allocation8 + $0x850] ss:$24 sps:$4 sm:$0xff]  }
 0x33a   :  { %v1935_v32 = vpop.f32.mrf.mxu0  ;;  %v1976_v33 = vpop.f32.mrf.mxu1  ;;  %v9934_v50 = vld [vmem:[#allocation8 + $0xa50] ss:$24 sps:$4 sm:$0xff]  }
 0x33b   :  { %v1936_v43 = vadd.f32 %v1935_v32, %v1396_v61  ;;  %v8590_v44 = vmul.f32 -1.442695, %v1934_v42  ;;  %v1977_v55 = vadd.f32 %v1976_v33, %v1404_v51  ;;  %v2034_v62 = vmax.f32 %v1975_v54, 0.0  ;;  %v9909_v32 = vld [vmem:[#allocation8 + $0x614] ss:$24 sps:$4 sm:$0xff]  }
 0x33c   :  { %v1937_v34 = vpop.f32.mrf.mxu0  ;;  %v1978_v35 = vpop.f32.mrf.mxu1  ;;  %v9907_v33 = vld [vmem:[#allocation8 + $0x610] ss:$24 sps:$4 sm:$0xff]   ;;  %v9924_v61 = vld [vmem:[#allocation8 + $0x824] ss:$24 sps:$4 sm:$0xff]   ;;  %v9922_v42 = vld [vmem:[#allocation8 + $0x820] ss:$24 sps:$4 sm:$0xff]  }
 0x33d   :  { %v8591_v45 = vmul.f32 -1.442695, %v1936_v43  ;;  %10970 = vpow2.f32 %v8590_v44  ;;  %v2035_v2 = vmax.f32 %v1977_v55, 0.0  ;;  %v9912_v34 = vld [vmem:[#allocation8 + $0x8e4] ss:$24 sps:$4 sm:$0xff]  }
 0x33e   :  { %v1938_v36 = vpop.f32.mrf.mxu0  ;;  %v1979_v37 = vpop.f32.mrf.mxu1  ;;  %v9910_v35 = vld [vmem:[#allocation8 + $0x8e0] ss:$24 sps:$4 sm:$0xff]   ;;  %v9927_v43 = vld [vmem:[#allocation8 + $0x7f4] ss:$24 sps:$4 sm:$0xff]   ;;  %v9925_v44 = vld [vmem:[#allocation8 + $0x7f0] ss:$24 sps:$4 sm:$0xff]  }
 0x33f   :  { %10972 = vpow2.f32 %v8591_v45  ;;  %v9915_v36 = vld [vmem:[#allocation8 + $0x8b4] ss:$24 sps:$4 sm:$0xff]   ;;  %v9913_v37 = vld [vmem:[#allocation8 + $0x8b0] ss:$24 sps:$4 sm:$0xff]   ;;  %v9930_v45 = vld [vmem:[#allocation8 + $0x7c4] ss:$24 sps:$4 sm:$0xff]  }
 0x340   :  { %v9939_v51 = vld [vmem:[#allocation8 + $0xa5c] ss:$24 sps:$4 sm:$0xff]   ;;  %v9940_v54 = vld [vmem:[#allocation8 + $0xa20] ss:$24 sps:$4 sm:$0xff]   ;;  %v9945_v55 = vld [vmem:[#allocation8 + $0xa2c] ss:$24 sps:$4 sm:$0xff]  }
 0x34a   :  { %v10971_v46 = vpop.eup %10970 }
 0x34b   :  { %v2028_v48 = vadd.f32 1.0, %v10971_v46  ;;  %v9928_v46 = vld [vmem:[#allocation8 + $0x7c0] ss:$24 sps:$4 sm:$0xff]  }
 0x34c   :  { %v10973_v47 = vpop.eup %10972 }
 0x34d   :  { %v2029_v49 = vadd.f32 1.0, %v10973_v47  ;;  %10974 = vrcp.f32 %v2028_v48  ;;  %v9933_v47 = vld [vmem:[#allocation8 + $0x794] ss:$24 sps:$4 sm:$0xff]   ;;  %v9931_v48 = vld [vmem:[#allocation8 + $0x790] ss:$24 sps:$4 sm:$0xff]  }
 0x34f   :  { %10976 = vrcp.f32 %v2029_v49  ;;  %v9936_v49 = vld [vmem:[#allocation8 + $0xa54] ss:$24 sps:$4 sm:$0xff]  }
 0x350   :  { %3417 = vmatprep.subr.bf16.mxu0 %v9936_v49  ;;  %v10023_v49 = vld [vmem:[#allocation8 + $0xabc] ss:$24 sps:$4 sm:$0xff]  }
 0x35a   :  { %v10975_v53 = vpop.eup %10974 }
 0x35b   :  { %v2038_v60 = vsub.f32 1.0, %v10975_v53  ;;  %v2036_v6 = vmul.f32 %v10975_v53, %v2034_v62  ;;  %v9942_v53 = vld [vmem:[#allocation8 + $0xa24] ss:$24 sps:$4 sm:$0xff]  }
 0x35c   :  { %v10977_v57 = vpop.eup %10976  ;;  %v9954_v62 = vld [vmem:[#allocation8 + $0x9c4] ss:$24 sps:$4 sm:$0xff]  }
 0x35d   :  { %v2039_v5 = vsub.f32 1.0, %v10977_v57  ;;  %v2037_v8 = vmul.f32 %v10977_v57, %v2035_v2  ;;  %v9948_v57 = vld [vmem:[#allocation8 + $0x9f4] ss:$24 sps:$4 sm:$0xff]  }
 0x35e   :  { %v9957_v2 = vld [vmem:[#allocation8 + $0x9cc] ss:$24 sps:$4 sm:$0xff]  }
 0x378   :  { %v2015_v58 = vpop.f32.mrf.mxu0 }
 0x379   :  { %v2016_v59 = vadd.f32 %v2015_v58, %v1408_v52  ;;  %v9937_v52 = vld [vmem:[#allocation8 + $0xa58] ss:$24 sps:$4 sm:$0xff]  }
 0x37a   :  { %v2017_v1 = vpop.f32.mrf.mxu0  ;;  %v9946_v58 = vld [vmem:[#allocation8 + $0x9f0] ss:$24 sps:$4 sm:$0xff]  }
 0x37b   :  { %v2040_v3 = vmul.f32 %v2038_v60, %v2016_v59  ;;  %v2018_v4 = vadd.f32 %v2017_v1, %v1412_v56  ;;  %v9943_v56 = vld [vmem:[#allocation8 + $0xa28] ss:$24 sps:$4 sm:$0xff]   ;;  %v9951_v59 = vld [vmem:[#allocation8 + $0x9fc] ss:$24 sps:$4 sm:$0xff]   ;;  %v9949_v60 = vld [vmem:[#allocation8 + $0x9f8] ss:$24 sps:$4 sm:$0xff]  }
 0x37c   :  { %v2019_v7 = vpop.f32.mrf.mxu0  ;;  %v9952_v1 = vld [vmem:[#allocation8 + $0x9c0] ss:$24 sps:$4 sm:$0xff]  }
 0x37d   :  { %v2041_v9 = vmul.f32 %v2039_v5, %v2018_v4  ;;  %v2042_v10 = vadd.f32 %v2040_v3, %v2036_v6  ;;  %v9955_v3 = vld [vmem:[#allocation8 + $0x9c8] ss:$24 sps:$4 sm:$0xff]   ;;  %v9960_v4 = vld [vmem:[#allocation8 + $0x994] ss:$24 sps:$4 sm:$0xff]   ;;  %v9961_v7 = vld [vmem:[#allocation8 + $0x998] ss:$24 sps:$4 sm:$0xff]  }
 0x37e   :  { %v2020_v11 = vpop.f32.mrf.mxu0  ;;  %v9958_v5 = vld [vmem:[#allocation8 + $0x990] ss:$24 sps:$4 sm:$0xff]   ;;  %v9963_v6 = vld [vmem:[#allocation8 + $0x99c] ss:$24 sps:$4 sm:$0xff]  }
 0x37f   :  { %v2043_v12 = vadd.f32 %v2041_v9, %v2037_v8  ;;  %v11311_v15 = vpack.c.bf16 %v2042_v10, %v2042_v10  ;;  %v9966_v8 = vld [vmem:[#allocation8 + $0x964] ss:$24 sps:$4 sm:$0xff]   ;;  %v9964_v9 = vld [vmem:[#allocation8 + $0x960] ss:$24 sps:$4 sm:$0xff]  }
 0x380   :  { %v9969_v10 = vld [vmem:[#allocation8 + $0x96c] ss:$24 sps:$4 sm:$0xff]   ;;  %v9967_v11 = vld [vmem:[#allocation8 + $0x968] ss:$24 sps:$4 sm:$0xff]  }
 0x381   :  { %v2045_v13 = vpack.c.bf16 %v2043_v12, %v2043_v12  ;;  %v9972_v12 = vld [vmem:[#allocation8 + $0x934] ss:$24 sps:$4 sm:$0xff]  }
 0x383   :  { %2690 = vmatprep.mubr.bf16.mxu1 %v2045_v13  ;;  %2731 = vmatprep.mubr.bf16.mxu0 %v2045_v13 }
 0x384   :  { %2691 = vmatmul.mubr.bf16.vlgmr.msra.gmra.mxu1 %v11311_v15  ;;  %2732 = vmatmul.mubr.bf16.vlgmr.msra.gmra.mxu0 %v11311_v15 }
 0x385   :  { %2741 = vmatpush1.bf16.msra.mxu1 %v9886_v14  ;;  %2772 = vmatprep.mubr.bf16.mxu1 %v2045_v13  ;;  %v9970_v13 = vld [vmem:[#allocation8 + $0x930] ss:$24 sps:$4 sm:$0xff]   ;;  %v9975_v14 = vld [vmem:[#allocation8 + $0x93c] ss:$24 sps:$4 sm:$0xff]  }
 0x386   :  { %2742 = vmatprep.subr.bf16.mxu1 %v9891_v16  ;;  %3418 = vmatpush1.bf16.msra.mxu0 %v9934_v50  ;;  %v9976_v16 = vld [vmem:[#allocation8 + $0x900] ss:$24 sps:$4 sm:$0xff]  }
 0x387   :  { %3419 = vmatprep.subr.bf16.mxu0 %v9942_v53  ;;  %v10021_v50 = vld [vmem:[#allocation8 + $0xab8] ss:$24 sps:$4 sm:$0xff]   ;;  %v10029_v53 = vld [vmem:[#allocation8 + $0xa8c] ss:$24 sps:$4 sm:$0xff]  }
 0x389   :  { %2743 = vmatpush1.bf16.msra.mxu1 %v9889_v17  ;;  %v9978_v17 = vld [vmem:[#allocation8 + $0x904] ss:$24 sps:$4 sm:$0xff]  }
 0x38a   :  { %2744 = vmatprep.subr.bf16.mxu1 %v9894_v18  ;;  %3420 = vmatpush1.bf16.msra.mxu0 %v9940_v54  ;;  %v9979_v18 = vld [vmem:[#allocation8 + $0x908] ss:$24 sps:$4 sm:$0xff]  }
 0x38b   :  { %3421 = vmatprep.subr.bf16.mxu0 %v9948_v57  ;;  %v10027_v54 = vld [vmem:[#allocation8 + $0xa88] ss:$24 sps:$4 sm:$0xff]  }
 0x38d   :  { %2745 = vmatpush1.bf16.msra.mxu1 %v9892_v19  ;;  %v9981_v19 = vld [vmem:[#allocation8 + $0x90c] ss:$24 sps:$4 sm:$0xff]  }
 0x38e   :  { %2746 = vmatprep.subr.bf16.mxu1 %v9897_v23  ;;  %3422 = vmatpush1.bf16.msra.mxu0 %v9946_v58  ;;  %v9984_v23 = vld [vmem:[#allocation8 + $0xbd4] ss:$24 sps:$4 sm:$0xff]  }
 0x38f   :  { %3423 = vmatprep.subr.bf16.mxu0 %v9954_v62 }
 0x391   :  { %2747 = vmatpush1.bf16.msra.mxu1 %v9895_v24  ;;  %v9987_v24 = vld [vmem:[#allocation8 + $0xbdc] ss:$24 sps:$4 sm:$0xff]  }
 0x392   :  { %2748 = vmatprep.subr.bf16.mxu1 %v9900_v26  ;;  %3424 = vmatpush1.bf16.msra.mxu0 %v9952_v1  ;;  %v9982_v26 = vld [vmem:[#allocation8 + $0xbd0] ss:$24 sps:$4 sm:$0xff]  }
 0x393   :  { %3425 = vmatprep.subr.bf16.mxu0 %v9960_v4  ;;  %v2145_v4 = vld [vmem:[#allocation10 + $0x2] ss:$8 sm:$0x30] }
 0x395   :  { %2749 = vmatpush1.bf16.msra.mxu1 %v9898_v27  ;;  %v9985_v27 = vld [vmem:[#allocation8 + $0xbd8] ss:$24 sps:$4 sm:$0xff]  }
 0x396   :  { %2750 = vmatprep.subr.bf16.mxu1 %v9903_v28  ;;  %3426 = vmatpush1.bf16.msra.mxu0 %v9958_v5  ;;  %v9990_v28 = vld [vmem:[#allocation8 + $0xba4] ss:$24 sps:$4 sm:$0xff]  }
 0x397   :  { %3427 = vmatprep.subr.bf16.mxu0 %v9966_v8 }
 0x399   :  { %2751 = vmatpush1.bf16.msra.mxu1 %v9901_v29  ;;  %v9993_v29 = vld [vmem:[#allocation8 + $0xbac] ss:$24 sps:$4 sm:$0xff]  }
 0x39a   :  { %2752 = vmatprep.subr.bf16.mxu1 %v9906_v30  ;;  %3428 = vmatpush1.bf16.msra.mxu0 %v9964_v9  ;;  %v9988_v30 = vld [vmem:[#allocation8 + $0xba0] ss:$24 sps:$4 sm:$0xff]  }
 0x39b   :  { %3429 = vmatprep.subr.bf16.mxu0 %v9972_v12 }
 0x39d   :  { %2753 = vmatpush1.bf16.msra.mxu1 %v9904_v31  ;;  %v9991_v31 = vld [vmem:[#allocation8 + $0xba8] ss:$24 sps:$4 sm:$0xff]  }
 0x39e   :  { %2754 = vmatprep.subr.bf16.mxu1 %v9909_v32  ;;  %3430 = vmatpush1.bf16.msra.mxu0 %v9970_v13  ;;  %v9996_v32 = vld [vmem:[#allocation8 + $0xb74] ss:$24 sps:$4 sm:$0xff]  }
 0x39f   :  { %3431 = vmatprep.subr.bf16.mxu0 %v9978_v17 }
 0x3a1   :  { %2755 = vmatpush1.bf16.msra.mxu1 %v9907_v33  ;;  %v9999_v33 = vld [vmem:[#allocation8 + $0xb7c] ss:$24 sps:$4 sm:$0xff]  }
 0x3a2   :  { %2756 = vmatprep.subr.bf16.mxu1 %v9912_v34  ;;  %3432 = vmatpush1.bf16.msra.mxu0 %v9976_v16  ;;  %v9994_v34 = vld [vmem:[#allocation8 + $0xb70] ss:$24 sps:$4 sm:$0xff]  }
 0x3a3   :  { %3433 = vmatprep.subr.bf16.mxu0 %v9984_v23 }
 0x3a5   :  { %2757 = vmatpush2.bf16.msra.mxu1 %v9910_v35  ;;  %v9997_v35 = vld [vmem:[#allocation8 + $0xb78] ss:$24 sps:$4 sm:$0xff]  }
 0x3a6   :  { %2758 = vmatprep.subr.bf16.mxu1 %v9915_v36  ;;  %3434 = vmatpush2.bf16.msra.mxu0 %v9982_v26  ;;  %v10002_v36 = vld [vmem:[#allocation8 + $0xb44] ss:$24 sps:$4 sm:$0xff]  }
 0x3a7   :  { %3435 = vmatprep.subr.bf16.mxu0 %v9990_v28 }
 0x3a9   :  { %2759 = vmatpush2.bf16.msra.mxu1 %v9913_v37  ;;  %v10005_v37 = vld [vmem:[#allocation8 + $0xb4c] ss:$24 sps:$4 sm:$0xff]  }
 0x3aa   :  { %2760 = vmatprep.subr.bf16.mxu1 %v9918_v38  ;;  %3436 = vmatpush2.bf16.msra.mxu0 %v9988_v30  ;;  %v10000_v38 = vld [vmem:[#allocation8 + $0xb40] ss:$24 sps:$4 sm:$0xff]  }
 0x3ab   :  { %3437 = vmatprep.subr.bf16.mxu0 %v9996_v32 }
 0x3ad   :  { %2761 = vmatpush2.bf16.msra.mxu1 %v9916_v39  ;;  %v10003_v39 = vld [vmem:[#allocation8 + $0xb48] ss:$24 sps:$4 sm:$0xff]  }
 0x3ae   :  { %2762 = vmatprep.subr.bf16.mxu1 %v9921_v40  ;;  %3438 = vmatpush2.bf16.msra.mxu0 %v9994_v34  ;;  %v10008_v40 = vld [vmem:[#allocation8 + $0xb14] ss:$24 sps:$4 sm:$0xff]  }
 0x3af   :  { %3439 = vmatprep.subr.bf16.mxu0 %v10002_v36 }
 0x3b1   :  { %2763 = vmatpush2.bf16.msra.mxu1 %v9919_v41  ;;  %v10011_v41 = vld [vmem:[#allocation8 + $0xb1c] ss:$24 sps:$4 sm:$0xff]  }
 0x3b2   :  { %2764 = vmatprep.subr.bf16.mxu1 %v9924_v61  ;;  %3440 = vmatpush2.bf16.msra.mxu0 %v10000_v38  ;;  %v10006_v61 = vld [vmem:[#allocation8 + $0xb10] ss:$24 sps:$4 sm:$0xff]  }
 0x3b3   :  { %3441 = vmatprep.subr.bf16.mxu0 %v10008_v40 }
 0x3b5   :  { %2765 = vmatpush2.bf16.msra.mxu1 %v9922_v42  ;;  %v10009_v42 = vld [vmem:[#allocation8 + $0xb18] ss:$24 sps:$4 sm:$0xff]  }
 0x3b6   :  { %2766 = vmatprep.subr.bf16.mxu1 %v9927_v43  ;;  %v10014_v43 = vld [vmem:[#allocation8 + $0xae4] ss:$24 sps:$4 sm:$0xff]   ;;  %3442 = vmatpush2.bf16.msra.mxu0 %v10006_v61 }
 0x3b7   :  { %3443 = vmatprep.subr.bf16.mxu0 %v10014_v43 }
 0x3b9   :  { %2767 = vmatpush2.bf16.msra.mxu1 %v9925_v44  ;;  %v10012_v44 = vld [vmem:[#allocation8 + $0xae0] ss:$24 sps:$4 sm:$0xff]  }
 0x3ba   :  { %2768 = vmatprep.subr.bf16.mxu1 %v9930_v45  ;;  %v10017_v45 = vld [vmem:[#allocation8 + $0xaec] ss:$24 sps:$4 sm:$0xff]   ;;  %3444 = vmatpush2.bf16.msra.mxu0 %v10012_v44  ;;  %v10030_v44 = vld [vmem:[#allocation8 + $0xa60] ss:$24 sps:$4 sm:$0xff]  }
 0x3bd   :  { %2769 = vmatpush2.bf16.msra.mxu1 %v9928_v46  ;;  %v10015_v46 = vld [vmem:[#allocation8 + $0xae8] ss:$24 sps:$4 sm:$0xff]  }
 0x3be   :  { %2770 = vmatprep.subr.bf16.mxu1 %v9933_v47  ;;  %v10020_v47 = vld [vmem:[#allocation8 + $0xab4] ss:$24 sps:$4 sm:$0xff]  }
 0x3bf   :  { %3445 = vmatprep.subr.bf16.mxu0 %v10020_v47  ;;  %v10033_v47 = vld [vmem:[#allocation8 + $0xa30] ss:$24 sps:$4 sm:$0xff]  }
 0x3c1   :  { %2771 = vmatpush2.bf16.msra.mxu1 %v9931_v48  ;;  %v10018_v48 = vld [vmem:[#allocation8 + $0xab0] ss:$24 sps:$4 sm:$0xff]  }
 0x3c2   :  { %3458 = vmatprep.subr.bf16.mxu1 %v9939_v51  ;;  %3446 = vmatpush2.bf16.msra.mxu0 %v10018_v48  ;;  %v10026_v51 = vld [vmem:[#allocation8 + $0xa84] ss:$24 sps:$4 sm:$0xff]  }
 0x3c3   :  { %3447 = vmatprep.subr.bf16.mxu0 %v10026_v51  ;;  %v10038_v48 = vld [vmem:[#allocation8 + $0xa04] ss:$24 sps:$4 sm:$0xff]   ;;  %v10039_v51 = vld [vmem:[#allocation8 + $0x9d0] ss:$24 sps:$4 sm:$0xff]  }
 0x3c4   :  { %2773 = vmatmul.mubr.bf16.vlgmr.msra.gmra.mxu1 %v11311_v15  ;;  %v9973_v15 = vld [vmem:[#allocation8 + $0x938] ss:$24 sps:$4 sm:$0xff]  }
 0x3c5   :  { %3459 = vmatpush1.bf16.msra.mxu1 %v9937_v52  ;;  %v10024_v52 = vld [vmem:[#allocation8 + $0xa80] ss:$24 sps:$4 sm:$0xff]  }
 0x3c6   :  { %3460 = vmatprep.subr.bf16.mxu1 %v9945_v55  ;;  %3448 = vmatpush2.bf16.msra.mxu0 %v10024_v52  ;;  %v10032_v55 = vld [vmem:[#allocation8 + $0xa64] ss:$24 sps:$4 sm:$0xff]  }
 0x3c7   :  { %3499 = vmatprep.subr.bf16.mxu0 %v10032_v55  ;;  %v10044_v52 = vld [vmem:[#allocation8 + $0x9a4] ss:$24 sps:$4 sm:$0xff]   ;;  %v10045_v55 = vld [vmem:[#allocation8 + $0x970] ss:$24 sps:$4 sm:$0xff]  }
 0x3c9   :  { %3461 = vmatpush1.bf16.msra.mxu1 %v9943_v56 }
 0x3ca   :  { %3462 = vmatprep.subr.bf16.mxu1 %v9951_v59 }
 0x3cd   :  { %3463 = vmatpush1.bf16.msra.mxu1 %v9949_v60 }
 0x3ce   :  { %3464 = vmatprep.subr.bf16.mxu1 %v9957_v2 }
 0x3d1   :  { %3465 = vmatpush1.bf16.msra.mxu1 %v9955_v3  ;;  %v2144_v3 = vld [vmem:[#allocation10 + $0x2] ss:$8 sm:$0xf] }
 0x3d2   :  { %3466 = vmatprep.subr.bf16.mxu1 %v9963_v6  ;;  %v2146_v5 = vor.u32 %v2145_v4, %v2144_v3  ;;  %v10062_v3 = vld [vmem:[#allocation8 + $0xb84] ss:$24 sps:$4 sm:$0xff]   ;;  %v10060_v4 = vld [vmem:[#allocation8 + $0xb80] ss:$24 sps:$4 sm:$0xff]  }
 0x3d4   :  { %v2151_v6 = vrot.slane %v2146_v5, %v11266_v63  ;;  %v2159_v16 = vrot.slane %v2146_v5, %v11285_v20  ;;  %v2163_v17 = vrot.slane %v2146_v5, %v11288_v21  ;;  %v2171_v26 = vrot.slane %v2146_v5, %v11296_v25 }
 0x3d5   :  { %3467 = vmatpush1.bf16.msra.mxu1 %v9961_v7  ;;  %v2155_v7 = vrot.slane %v2146_v5, %v11269_v0 }
 0x3d6   :  { %3468 = vmatprep.subr.bf16.mxu1 %v9969_v10 }
 0x3d9   :  { %3469 = vmatpush1.bf16.msra.mxu1 %v9967_v11 }
 0x3da   :  { %3470 = vmatprep.subr.bf16.mxu1 %v9975_v14 }
 0x3dd   :  { %3471 = vmatpush1.bf16.msra.mxu1 %v9973_v15 }
 0x3de   :  { %3472 = vmatprep.subr.bf16.mxu1 %v9981_v19 }
 0x3e1   :  { %3473 = vmatpush1.bf16.msra.mxu1 %v9979_v18  ;;  %v2167_v18 = vrot.slane %v2146_v5, %v11291_v22  ;;  %v10065_v5 = vld [vmem:[#allocation8 + $0xb54] ss:$24 sps:$4 sm:$0xff]  }
 0x3e2   :  { %3474 = vmatprep.subr.bf16.mxu1 %v9987_v24 }
 0x3e5   :  { %3475 = vmatpush2.bf16.msra.mxu1 %v9985_v27 }
 0x3e6   :  { %3476 = vmatprep.subr.bf16.mxu1 %v9993_v29 }
 0x3e9   :  { %3477 = vmatpush2.bf16.msra.mxu1 %v9991_v31 }
 0x3ea   :  { %3478 = vmatprep.subr.bf16.mxu1 %v9999_v33 }
 0x3ed   :  { %3479 = vmatpush2.bf16.msra.mxu1 %v9997_v35 }
 0x3ee   :  { %3480 = vmatprep.subr.bf16.mxu1 %v10005_v37 }
 0x3f1   :  { %3481 = vmatpush2.bf16.msra.mxu1 %v10003_v39 }
 0x3f2   :  { %3482 = vmatprep.subr.bf16.mxu1 %v10011_v41 }
 0x3f5   :  { %3483 = vmatpush2.bf16.msra.mxu1 %v10009_v42 }
 0x3f6   :  { %3484 = vmatprep.subr.bf16.mxu1 %v10017_v45 }
 0x3f9   :  { %3485 = vmatpush2.bf16.msra.mxu1 %v10015_v46  ;;  %v10035_v46 = vld [vmem:[#allocation8 + $0xa34] ss:$24 sps:$4 sm:$0xff]  }
 0x3fa   :  { %3486 = vmatprep.subr.bf16.mxu1 %v10023_v49  ;;  %v10036_v49 = vld [vmem:[#allocation8 + $0xa00] ss:$24 sps:$4 sm:$0xff]  }
 0x3fd   :  { %3487 = vmatpush2.bf16.msra.mxu1 %v10021_v50  ;;  %v10041_v50 = vld [vmem:[#allocation8 + $0x9d4] ss:$24 sps:$4 sm:$0xff]  }
 0x3fe   :  { %3488 = vmatprep.subr.bf16.mxu1 %v10029_v53  ;;  %v10042_v53 = vld [vmem:[#allocation8 + $0x9a0] ss:$24 sps:$4 sm:$0xff]  }
 0x401   :  { %3489 = vmatpush2.bf16.msra.mxu1 %v10027_v54  ;;  %v10047_v54 = vld [vmem:[#allocation8 + $0x974] ss:$24 sps:$4 sm:$0xff]  }
 0x444   :  { %v2692_v56 = vpop.f32.mrf.mxu1  ;;  %v2733_v57 = vpop.f32.mrf.mxu0 }
 0x445   :  { %v2693_v8 = vadd.f32 %v2692_v56, %v2151_v6  ;;  %v2734_v23 = vadd.f32 %v2733_v57, %v2159_v16  ;;  %v10050_v56 = vld [vmem:[#allocation8 + $0x944] ss:$24 sps:$4 sm:$0xff]   ;;  %v10048_v57 = vld [vmem:[#allocation8 + $0x940] ss:$24 sps:$4 sm:$0xff]   ;;  %v10063_v6 = vld [vmem:[#allocation8 + $0xb50] ss:$24 sps:$4 sm:$0xff]  }
 0x446   :  { %v2694_v58 = vpop.f32.mrf.mxu1  ;;  %v2735_v59 = vpop.f32.mrf.mxu0  ;;  %v10078_v16 = vld [vmem:[#allocation8 + $0xd50] ss:$24 sps:$4 sm:$0xff]  }
 0x447   :  { %v2695_v9 = vadd.f32 %v2694_v58, %v2155_v7  ;;  %v8688_v10 = vmul.f32 -1.442695, %v2693_v8  ;;  %v2736_v24 = vadd.f32 %v2735_v59, %v2163_v17  ;;  %v2793_v31 = vmax.f32 %v2734_v23, 0.0  ;;  %v10053_v58 = vld [vmem:[#allocation8 + $0x914] ss:$24 sps:$4 sm:$0xff]  }
 0x448   :  { %v2696_v60 = vpop.f32.mrf.mxu1  ;;  %v2737_v62 = vpop.f32.mrf.mxu0  ;;  %v10051_v59 = vld [vmem:[#allocation8 + $0x910] ss:$24 sps:$4 sm:$0xff]   ;;  %v10068_v7 = vld [vmem:[#allocation8 + $0xb24] ss:$24 sps:$4 sm:$0xff]   ;;  %v10066_v8 = vld [vmem:[#allocation8 + $0xb20] ss:$24 sps:$4 sm:$0xff]  }
 0x449   :  { %v8689_v11 = vmul.f32 -1.442695, %v2695_v9  ;;  %10978 = vpow2.f32 %v8688_v10  ;;  %v2794_v33 = vmax.f32 %v2736_v24, 0.0  ;;  %v10056_v60 = vld [vmem:[#allocation8 + $0xbe4] ss:$24 sps:$4 sm:$0xff]  }
 0x44a   :  { %v2697_v1 = vpop.f32.mrf.mxu1  ;;  %v2738_v2 = vpop.f32.mrf.mxu0  ;;  %v10054_v62 = vld [vmem:[#allocation8 + $0xbe0] ss:$24 sps:$4 sm:$0xff]   ;;  %v10071_v9 = vld [vmem:[#allocation8 + $0xaf4] ss:$24 sps:$4 sm:$0xff]   ;;  %v10069_v10 = vld [vmem:[#allocation8 + $0xaf0] ss:$24 sps:$4 sm:$0xff]  }
 0x44b   :  { %10980 = vpow2.f32 %v8689_v11  ;;  %v10059_v1 = vld [vmem:[#allocation8 + $0xbb4] ss:$24 sps:$4 sm:$0xff]   ;;  %v10057_v2 = vld [vmem:[#allocation8 + $0xbb0] ss:$24 sps:$4 sm:$0xff]   ;;  %v10074_v11 = vld [vmem:[#allocation8 + $0xac4] ss:$24 sps:$4 sm:$0xff]  }
 0x44c   :  { %v10083_v17 = vld [vmem:[#allocation8 + $0xd5c] ss:$24 sps:$4 sm:$0xff]   ;;  %v10084_v23 = vld [vmem:[#allocation8 + $0xd20] ss:$24 sps:$4 sm:$0xff]   ;;  %v10089_v24 = vld [vmem:[#allocation8 + $0xd2c] ss:$24 sps:$4 sm:$0xff]  }
 0x456   :  { %v10979_v12 = vpop.eup %10978 }
 0x457   :  { %v2787_v14 = vadd.f32 1.0, %v10979_v12  ;;  %v10072_v12 = vld [vmem:[#allocation8 + $0xac0] ss:$24 sps:$4 sm:$0xff]  }
 0x458   :  { %v10981_v13 = vpop.eup %10980 }
 0x459   :  { %v2788_v15 = vadd.f32 1.0, %v10981_v13  ;;  %10982 = vrcp.f32 %v2787_v14  ;;  %v10077_v13 = vld [vmem:[#allocation8 + $0xa94] ss:$24 sps:$4 sm:$0xff]   ;;  %v10075_v14 = vld [vmem:[#allocation8 + $0xa90] ss:$24 sps:$4 sm:$0xff]  }
 0x45b   :  { %10984 = vrcp.f32 %v2788_v15  ;;  %v10080_v15 = vld [vmem:[#allocation8 + $0xd54] ss:$24 sps:$4 sm:$0xff]  }
 0x45c   :  { %4176 = vmatprep.subr.bf16.mxu1 %v10080_v15  ;;  %v10167_v15 = vld [vmem:[#allocation8 + $0xdbc] ss:$24 sps:$4 sm:$0xff]  }
 0x466   :  { %v10983_v19 = vpop.eup %10982 }
 0x467   :  { %v2797_v30 = vsub.f32 1.0, %v10983_v19  ;;  %v2795_v37 = vmul.f32 %v10983_v19, %v2793_v31  ;;  %v10086_v19 = vld [vmem:[#allocation8 + $0xd24] ss:$24 sps:$4 sm:$0xff]  }
 0x468   :  { %v10985_v27 = vpop.eup %10984  ;;  %v10098_v31 = vld [vmem:[#allocation8 + $0xcc4] ss:$24 sps:$4 sm:$0xff]  }
 0x469   :  { %v2798_v36 = vsub.f32 1.0, %v10985_v27  ;;  %v2796_v39 = vmul.f32 %v10985_v27, %v2794_v33  ;;  %v10092_v27 = vld [vmem:[#allocation8 + $0xcf4] ss:$24 sps:$4 sm:$0xff]  }
 0x46a   :  { %v10101_v33 = vld [vmem:[#allocation8 + $0xccc] ss:$24 sps:$4 sm:$0xff]  }
 0x484   :  { %v2774_v28 = vpop.f32.mrf.mxu1 }
 0x485   :  { %v2775_v29 = vadd.f32 %v2774_v28, %v2167_v18  ;;  %v10081_v18 = vld [vmem:[#allocation8 + $0xd58] ss:$24 sps:$4 sm:$0xff]  }
 0x486   :  { %v2776_v32 = vpop.f32.mrf.mxu1  ;;  %v10090_v28 = vld [vmem:[#allocation8 + $0xcf0] ss:$24 sps:$4 sm:$0xff]  }
 0x487   :  { %v2799_v34 = vmul.f32 %v2797_v30, %v2775_v29  ;;  %v2777_v35 = vadd.f32 %v2776_v32, %v2171_v26  ;;  %v10087_v26 = vld [vmem:[#allocation8 + $0xd28] ss:$24 sps:$4 sm:$0xff]   ;;  %v10095_v29 = vld [vmem:[#allocation8 + $0xcfc] ss:$24 sps:$4 sm:$0xff]   ;;  %v10093_v30 = vld [vmem:[#allocation8 + $0xcf8] ss:$24 sps:$4 sm:$0xff]  }
 0x488   :  { %v2778_v38 = vpop.f32.mrf.mxu1  ;;  %v10096_v32 = vld [vmem:[#allocation8 + $0xcc0] ss:$24 sps:$4 sm:$0xff]  }
 0x489   :  { %v2800_v40 = vmul.f32 %v2798_v36, %v2777_v35  ;;  %v2801_v41 = vadd.f32 %v2799_v34, %v2795_v37  ;;  %v10099_v34 = vld [vmem:[#allocation8 + $0xcc8] ss:$24 sps:$4 sm:$0xff]   ;;  %v10104_v35 = vld [vmem:[#allocation8 + $0xc94] ss:$24 sps:$4 sm:$0xff]   ;;  %v10105_v38 = vld [vmem:[#allocation8 + $0xc98] ss:$24 sps:$4 sm:$0xff]  }
 0x48a   :  { %v2779_v61 = vpop.f32.mrf.mxu1  ;;  %v10102_v36 = vld [vmem:[#allocation8 + $0xc90] ss:$24 sps:$4 sm:$0xff]   ;;  %v10107_v37 = vld [vmem:[#allocation8 + $0xc9c] ss:$24 sps:$4 sm:$0xff]  }
 0x48b   :  { %v2802_v42 = vadd.f32 %v2800_v40, %v2796_v39  ;;  %v11322_v45 = vpack.c.bf16 %v2801_v41, %v2801_v41  ;;  %v10110_v39 = vld [vmem:[#allocation8 + $0xc64] ss:$24 sps:$4 sm:$0xff]   ;;  %v10108_v40 = vld [vmem:[#allocation8 + $0xc60] ss:$24 sps:$4 sm:$0xff]  }
 0x48c   :  { %v10113_v41 = vld [vmem:[#allocation8 + $0xc6c] ss:$24 sps:$4 sm:$0xff]   ;;  %v10111_v61 = vld [vmem:[#allocation8 + $0xc68] ss:$24 sps:$4 sm:$0xff]  }
 0x48d   :  { %v2804_v43 = vpack.c.bf16 %v2802_v42, %v2802_v42  ;;  %v10116_v42 = vld [vmem:[#allocation8 + $0xc34] ss:$24 sps:$4 sm:$0xff]  }
 0x48f   :  { %3449 = vmatprep.mubr.bf16.mxu0 %v2804_v43  ;;  %3490 = vmatprep.mubr.bf16.mxu1 %v2804_v43 }
 0x490   :  { %3450 = vmatmul.mubr.bf16.vlgmr.msra.gmra.mxu0 %v11322_v45  ;;  %3491 = vmatmul.mubr.bf16.vlgmr.msra.gmra.mxu1 %v11322_v45 }
 0x491   :  { %3500 = vmatpush1.bf16.msra.mxu0 %v10030_v44  ;;  %3531 = vmatprep.mubr.bf16.mxu0 %v2804_v43  ;;  %v10114_v43 = vld [vmem:[#allocation8 + $0xc30] ss:$24 sps:$4 sm:$0xff]   ;;  %v10119_v44 = vld [vmem:[#allocation8 + $0xc3c] ss:$24 sps:$4 sm:$0xff]  }
 0x492   :  { %3501 = vmatprep.subr.bf16.mxu0 %v10035_v46  ;;  %4177 = vmatpush1.bf16.msra.mxu1 %v10078_v16  ;;  %v10120_v46 = vld [vmem:[#allocation8 + $0xc00] ss:$24 sps:$4 sm:$0xff]  }
 0x493   :  { %4178 = vmatprep.subr.bf16.mxu1 %v10086_v19  ;;  %v10165_v16 = vld [vmem:[#allocation8 + $0xdb8] ss:$24 sps:$4 sm:$0xff]   ;;  %v10173_v19 = vld [vmem:[#allocation8 + $0xd8c] ss:$24 sps:$4 sm:$0xff]  }
 0x495   :  { %3502 = vmatpush1.bf16.msra.mxu0 %v10033_v47  ;;  %v10122_v47 = vld [vmem:[#allocation8 + $0xc04] ss:$24 sps:$4 sm:$0xff]  }
 0x496   :  { %3503 = vmatprep.subr.bf16.mxu0 %v10038_v48  ;;  %4179 = vmatpush1.bf16.msra.mxu1 %v10084_v23  ;;  %v10123_v48 = vld [vmem:[#allocation8 + $0xc08] ss:$24 sps:$4 sm:$0xff]  }
 0x497   :  { %4180 = vmatprep.subr.bf16.mxu1 %v10092_v27  ;;  %v10171_v23 = vld [vmem:[#allocation8 + $0xd88] ss:$24 sps:$4 sm:$0xff]  }
 0x499   :  { %3504 = vmatpush1.bf16.msra.mxu0 %v10036_v49  ;;  %v10125_v49 = vld [vmem:[#allocation8 + $0xc0c] ss:$24 sps:$4 sm:$0xff]  }
 0x49a   :  { %3505 = vmatprep.subr.bf16.mxu0 %v10041_v50  ;;  %4181 = vmatpush1.bf16.msra.mxu1 %v10090_v28  ;;  %v10128_v50 = vld [vmem:[#allocation8 + $0xed4] ss:$24 sps:$4 sm:$0xff]  }
 0x49b   :  { %4182 = vmatprep.subr.bf16.mxu1 %v10098_v31 }
 0x49d   :  { %3506 = vmatpush1.bf16.msra.mxu0 %v10039_v51  ;;  %v10131_v51 = vld [vmem:[#allocation8 + $0xedc] ss:$24 sps:$4 sm:$0xff]  }
 0x49e   :  { %3507 = vmatprep.subr.bf16.mxu0 %v10044_v52  ;;  %4183 = vmatpush1.bf16.msra.mxu1 %v10096_v32  ;;  %v10126_v52 = vld [vmem:[#allocation8 + $0xed0] ss:$24 sps:$4 sm:$0xff]  }
 0x49f   :  { %4184 = vmatprep.subr.bf16.mxu1 %v10104_v35  ;;  %v2904_v35 = vld [vmem:[#allocation10 + $0x3] ss:$8 sm:$0x30] }
 0x4a1   :  { %3508 = vmatpush1.bf16.msra.mxu0 %v10042_v53  ;;  %v10129_v53 = vld [vmem:[#allocation8 + $0xed8] ss:$24 sps:$4 sm:$0xff]  }
 0x4a2   :  { %3509 = vmatprep.subr.bf16.mxu0 %v10047_v54  ;;  %4185 = vmatpush1.bf16.msra.mxu1 %v10102_v36  ;;  %v10134_v54 = vld [vmem:[#allocation8 + $0xea4] ss:$24 sps:$4 sm:$0xff]  }
 0x4a3   :  { %4186 = vmatprep.subr.bf16.mxu1 %v10110_v39 }
 0x4a5   :  { %3510 = vmatpush1.bf16.msra.mxu0 %v10045_v55  ;;  %v10137_v55 = vld [vmem:[#allocation8 + $0xeac] ss:$24 sps:$4 sm:$0xff]  }
 0x4a6   :  { %3511 = vmatprep.subr.bf16.mxu0 %v10050_v56  ;;  %4187 = vmatpush1.bf16.msra.mxu1 %v10108_v40  ;;  %v10132_v56 = vld [vmem:[#allocation8 + $0xea0] ss:$24 sps:$4 sm:$0xff]  }
 0x4a7   :  { %4188 = vmatprep.subr.bf16.mxu1 %v10116_v42 }
 0x4a9   :  { %3512 = vmatpush1.bf16.msra.mxu0 %v10048_v57  ;;  %v10135_v57 = vld [vmem:[#allocation8 + $0xea8] ss:$24 sps:$4 sm:$0xff]  }
 0x4aa   :  { %3513 = vmatprep.subr.bf16.mxu0 %v10053_v58  ;;  %4189 = vmatpush1.bf16.msra.mxu1 %v10114_v43  ;;  %v10140_v58 = vld [vmem:[#allocation8 + $0xe74] ss:$24 sps:$4 sm:$0xff]  }
 0x4ab   :  { %4190 = vmatprep.subr.bf16.mxu1 %v10122_v47 }
 0x4ad   :  { %3514 = vmatpush1.bf16.msra.mxu0 %v10051_v59  ;;  %v10143_v59 = vld [vmem:[#allocation8 + $0xe7c] ss:$24 sps:$4 sm:$0xff]  }
 0x4ae   :  { %3515 = vmatprep.subr.bf16.mxu0 %v10056_v60  ;;  %4191 = vmatpush1.bf16.msra.mxu1 %v10120_v46  ;;  %v10138_v60 = vld [vmem:[#allocation8 + $0xe70] ss:$24 sps:$4 sm:$0xff]  }
 0x4af   :  { %4192 = vmatprep.subr.bf16.mxu1 %v10128_v50 }
 0x4b1   :  { %3516 = vmatpush2.bf16.msra.mxu0 %v10054_v62  ;;  %v10141_v62 = vld [vmem:[#allocation8 + $0xe78] ss:$24 sps:$4 sm:$0xff]  }
 0x4b2   :  { %3517 = vmatprep.subr.bf16.mxu0 %v10059_v1  ;;  %4193 = vmatpush2.bf16.msra.mxu1 %v10126_v52  ;;  %v10146_v1 = vld [vmem:[#allocation8 + $0xe44] ss:$24 sps:$4 sm:$0xff]  }
 0x4b3   :  { %4194 = vmatprep.subr.bf16.mxu1 %v10134_v54 }
 0x4b5   :  { %3518 = vmatpush2.bf16.msra.mxu0 %v10057_v2  ;;  %v10149_v2 = vld [vmem:[#allocation8 + $0xe4c] ss:$24 sps:$4 sm:$0xff]  }
 0x4b6   :  { %3519 = vmatprep.subr.bf16.mxu0 %v10062_v3  ;;  %4195 = vmatpush2.bf16.msra.mxu1 %v10132_v56  ;;  %v10144_v3 = vld [vmem:[#allocation8 + $0xe40] ss:$24 sps:$4 sm:$0xff]  }
 0x4b7   :  { %4196 = vmatprep.subr.bf16.mxu1 %v10140_v58 }
 0x4b9   :  { %3520 = vmatpush2.bf16.msra.mxu0 %v10060_v4  ;;  %v10147_v4 = vld [vmem:[#allocation8 + $0xe48] ss:$24 sps:$4 sm:$0xff]  }
 0x4ba   :  { %3521 = vmatprep.subr.bf16.mxu0 %v10065_v5  ;;  %4197 = vmatpush2.bf16.msra.mxu1 %v10138_v60  ;;  %v10152_v5 = vld [vmem:[#allocation8 + $0xe14] ss:$24 sps:$4 sm:$0xff]  }
 0x4bb   :  { %4198 = vmatprep.subr.bf16.mxu1 %v10146_v1 }
 0x4bd   :  { %3522 = vmatpush2.bf16.msra.mxu0 %v10063_v6  ;;  %v10155_v6 = vld [vmem:[#allocation8 + $0xe1c] ss:$24 sps:$4 sm:$0xff]  }
 0x4be   :  { %3523 = vmatprep.subr.bf16.mxu0 %v10068_v7  ;;  %4199 = vmatpush2.bf16.msra.mxu1 %v10144_v3  ;;  %v10150_v7 = vld [vmem:[#allocation8 + $0xe10] ss:$24 sps:$4 sm:$0xff]  }
 0x4bf   :  { %4200 = vmatprep.subr.bf16.mxu1 %v10152_v5 }
 0x4c1   :  { %3524 = vmatpush2.bf16.msra.mxu0 %v10066_v8  ;;  %v10153_v8 = vld [vmem:[#allocation8 + $0xe18] ss:$24 sps:$4 sm:$0xff]  }
 0x4c2   :  { %3525 = vmatprep.subr.bf16.mxu0 %v10071_v9  ;;  %v10158_v9 = vld [vmem:[#allocation8 + $0xde4] ss:$24 sps:$4 sm:$0xff]   ;;  %4201 = vmatpush2.bf16.msra.mxu1 %v10150_v7 }
 0x4c3   :  { %4202 = vmatprep.subr.bf16.mxu1 %v10158_v9 }
 0x4c5   :  { %3526 = vmatpush2.bf16.msra.mxu0 %v10069_v10  ;;  %v10156_v10 = vld [vmem:[#allocation8 + $0xde0] ss:$24 sps:$4 sm:$0xff]  }
 0x4c6   :  { %3527 = vmatprep.subr.bf16.mxu0 %v10074_v11  ;;  %v10161_v11 = vld [vmem:[#allocation8 + $0xdec] ss:$24 sps:$4 sm:$0xff]   ;;  %4203 = vmatpush2.bf16.msra.mxu1 %v10156_v10  ;;  %v10174_v10 = vld [vmem:[#allocation8 + $0xd60] ss:$24 sps:$4 sm:$0xff]  }
 0x4c9   :  { %3528 = vmatpush2.bf16.msra.mxu0 %v10072_v12  ;;  %v10159_v12 = vld [vmem:[#allocation8 + $0xde8] ss:$24 sps:$4 sm:$0xff]  }
 0x4ca   :  { %3529 = vmatprep.subr.bf16.mxu0 %v10077_v13  ;;  %v10164_v13 = vld [vmem:[#allocation8 + $0xdb4] ss:$24 sps:$4 sm:$0xff]  }
 0x4cb   :  { %4204 = vmatprep.subr.bf16.mxu1 %v10164_v13  ;;  %v10177_v13 = vld [vmem:[#allocation8 + $0xd30] ss:$24 sps:$4 sm:$0xff]  }
 0x4cd   :  { %3530 = vmatpush2.bf16.msra.mxu0 %v10075_v14  ;;  %v10162_v14 = vld [vmem:[#allocation8 + $0xdb0] ss:$24 sps:$4 sm:$0xff]  }
 0x4ce   :  { %4217 = vmatprep.subr.bf16.mxu0 %v10083_v17  ;;  %4205 = vmatpush2.bf16.msra.mxu1 %v10162_v14  ;;  %v10170_v17 = vld [vmem:[#allocation8 + $0xd84] ss:$24 sps:$4 sm:$0xff]  }
 0x4cf   :  { %4206 = vmatprep.subr.bf16.mxu1 %v10170_v17  ;;  %v10182_v14 = vld [vmem:[#allocation8 + $0xd04] ss:$24 sps:$4 sm:$0xff]   ;;  %v10183_v17 = vld [vmem:[#allocation8 + $0xcd0] ss:$24 sps:$4 sm:$0xff]  }
 0x4d0   :  { %3532 = vmatmul.mubr.bf16.vlgmr.msra.gmra.mxu0 %v11322_v45  ;;  %v10117_v45 = vld [vmem:[#allocation8 + $0xc38] ss:$24 sps:$4 sm:$0xff]  }
 0x4d1   :  { %4218 = vmatpush1.bf16.msra.mxu0 %v10081_v18  ;;  %v10168_v18 = vld [vmem:[#allocation8 + $0xd80] ss:$24 sps:$4 sm:$0xff]  }
 0x4d2   :  { %4219 = vmatprep.subr.bf16.mxu0 %v10089_v24  ;;  %4207 = vmatpush2.bf16.msra.mxu1 %v10168_v18  ;;  %v10176_v24 = vld [vmem:[#allocation8 + $0xd64] ss:$24 sps:$4 sm:$0xff]  }
 0x4d3   :  { %4258 = vmatprep.subr.bf16.mxu1 %v10176_v24  ;;  %v10188_v18 = vld [vmem:[#allocation8 + $0xca4] ss:$24 sps:$4 sm:$0xff]   ;;  %v10189_v24 = vld [vmem:[#allocation8 + $0xc70] ss:$24 sps:$4 sm:$0xff]  }
 0x4d5   :  { %4220 = vmatpush1.bf16.msra.mxu0 %v10087_v26 }
 0x4d6   :  { %4221 = vmatprep.subr.bf16.mxu0 %v10095_v29 }
 0x4d9   :  { %4222 = vmatpush1.bf16.msra.mxu0 %v10093_v30 }
 0x4da   :  { %4223 = vmatprep.subr.bf16.mxu0 %v10101_v33 }
 0x4dd   :  { %4224 = vmatpush1.bf16.msra.mxu0 %v10099_v34  ;;  %v2903_v34 = vld [vmem:[#allocation10 + $0x3] ss:$8 sm:$0xf] }
 0x4de   :  { %4225 = vmatprep.subr.bf16.mxu0 %v10107_v37  ;;  %v2905_v36 = vor.u32 %v2904_v35, %v2903_v34  ;;  %v10206_v34 = vld [vmem:[#allocation8 + $0xe84] ss:$24 sps:$4 sm:$0xff]   ;;  %v10204_v35 = vld [vmem:[#allocation8 + $0xe80] ss:$24 sps:$4 sm:$0xff]  }
 0x4e0   :  { %v2910_v37 = vrot.slane %v2905_v36, %v11266_v63  ;;  %v2918_v46 = vrot.slane %v2905_v36, %v11285_v20  ;;  %v2922_v47 = vrot.slane %v2905_v36, %v11288_v21  ;;  %v2930_v52 = vrot.slane %v2905_v36, %v11296_v25 }
 0x4e1   :  { %4226 = vmatpush1.bf16.msra.mxu0 %v10105_v38  ;;  %v2914_v38 = vrot.slane %v2905_v36, %v11269_v0 }
 0x4e2   :  { %4227 = vmatprep.subr.bf16.mxu0 %v10113_v41 }
 0x4e5   :  { %4228 = vmatpush1.bf16.msra.mxu0 %v10111_v61 }
 0x4e6   :  { %4229 = vmatprep.subr.bf16.mxu0 %v10119_v44 }
 0x4e9   :  { %4230 = vmatpush1.bf16.msra.mxu0 %v10117_v45 }
 0x4ea   :  { %4231 = vmatprep.subr.bf16.mxu0 %v10125_v49 }
 0x4ed   :  { %4232 = vmatpush1.bf16.msra.mxu0 %v10123_v48  ;;  %v2926_v48 = vrot.slane %v2905_v36, %v11291_v22  ;;  %v10209_v36 = vld [vmem:[#allocation8 + $0xe54] ss:$24 sps:$4 sm:$0xff]  }
 0x4ee   :  { %4233 = vmatprep.subr.bf16.mxu0 %v10131_v51 }
 0x4f1   :  { %4234 = vmatpush2.bf16.msra.mxu0 %v10129_v53 }
 0x4f2   :  { %4235 = vmatprep.subr.bf16.mxu0 %v10137_v55 }
 0x4f5   :  { %4236 = vmatpush2.bf16.msra.mxu0 %v10135_v57 }
 0x4f6   :  { %4237 = vmatprep.subr.bf16.mxu0 %v10143_v59 }
 0x4f9   :  { %4238 = vmatpush2.bf16.msra.mxu0 %v10141_v62 }
 0x4fa   :  { %4239 = vmatprep.subr.bf16.mxu0 %v10149_v2 }
 0x4fd   :  { %4240 = vmatpush2.bf16.msra.mxu0 %v10147_v4 }
 0x4fe   :  { %4241 = vmatprep.subr.bf16.mxu0 %v10155_v6 }
 0x501   :  { %4242 = vmatpush2.bf16.msra.mxu0 %v10153_v8 }
 0x502   :  { %4243 = vmatprep.subr.bf16.mxu0 %v10161_v11 }
 0x505   :  { %4244 = vmatpush2.bf16.msra.mxu0 %v10159_v12  ;;  %v10179_v12 = vld [vmem:[#allocation8 + $0xd34] ss:$24 sps:$4 sm:$0xff]  }
 0x506   :  { %4245 = vmatprep.subr.bf16.mxu0 %v10167_v15  ;;  %v10180_v15 = vld [vmem:[#allocation8 + $0xd00] ss:$24 sps:$4 sm:$0xff]  }
 0x509   :  { %4246 = vmatpush2.bf16.msra.mxu0 %v10165_v16  ;;  %v10185_v16 = vld [vmem:[#allocation8 + $0xcd4] ss:$24 sps:$4 sm:$0xff]  }
 0x50a   :  { %4247 = vmatprep.subr.bf16.mxu0 %v10173_v19  ;;  %v10186_v19 = vld [vmem:[#allocation8 + $0xca0] ss:$24 sps:$4 sm:$0xff]  }
 0x50d   :  { %4248 = vmatpush2.bf16.msra.mxu0 %v10171_v23  ;;  %v10191_v23 = vld [vmem:[#allocation8 + $0xc74] ss:$24 sps:$4 sm:$0xff]  }
 0x550   :  { %v3451_v26 = vpop.f32.mrf.mxu0  ;;  %v3492_v27 = vpop.f32.mrf.mxu1 }
 0x551   :  { %v3452_v39 = vadd.f32 %v3451_v26, %v2910_v37  ;;  %v3493_v50 = vadd.f32 %v3492_v27, %v2918_v46  ;;  %v10194_v26 = vld [vmem:[#allocation8 + $0xc44] ss:$24 sps:$4 sm:$0xff]   ;;  %v10192_v27 = vld [vmem:[#allocation8 + $0xc40] ss:$24 sps:$4 sm:$0xff]   ;;  %v10207_v37 = vld [vmem:[#allocation8 + $0xe50] ss:$24 sps:$4 sm:$0xff]  }
 0x552   :  { %v3453_v28 = vpop.f32.mrf.mxu0  ;;  %v3494_v29 = vpop.f32.mrf.mxu1  ;;  %v10222_v46 = vld [vmem:[#allocation8 + $0x1050] ss:$24 sps:$4 sm:$0xff]  }
 0x553   :  { %v3454_v40 = vadd.f32 %v3453_v28, %v2914_v38  ;;  %v8786_v41 = vmul.f32 -1.442695, %v3452_v39  ;;  %v3495_v51 = vadd.f32 %v3494_v29, %v2922_v47  ;;  %v3552_v57 = vmax.f32 %v3493_v50, 0.0  ;;  %v10197_v28 = vld [vmem:[#allocation8 + $0xc14] ss:$24 sps:$4 sm:$0xff]  }
 0x554   :  { %v3455_v30 = vpop.f32.mrf.mxu0  ;;  %v3496_v31 = vpop.f32.mrf.mxu1  ;;  %v10195_v29 = vld [vmem:[#allocation8 + $0xc10] ss:$24 sps:$4 sm:$0xff]   ;;  %v10212_v38 = vld [vmem:[#allocation8 + $0xe24] ss:$24 sps:$4 sm:$0xff]   ;;  %v10210_v39 = vld [vmem:[#allocation8 + $0xe20] ss:$24 sps:$4 sm:$0xff]  }
 0x555   :  { %v8787_v61 = vmul.f32 -1.442695, %v3454_v40  ;;  %10986 = vpow2.f32 %v8786_v41  ;;  %v3553_v59 = vmax.f32 %v3495_v51, 0.0  ;;  %v10200_v30 = vld [vmem:[#allocation8 + $0xee4] ss:$24 sps:$4 sm:$0xff]  }
 0x556   :  { %v3456_v32 = vpop.f32.mrf.mxu0  ;;  %v3497_v33 = vpop.f32.mrf.mxu1  ;;  %v10198_v31 = vld [vmem:[#allocation8 + $0xee0] ss:$24 sps:$4 sm:$0xff]   ;;  %v10215_v40 = vld [vmem:[#allocation8 + $0xdf4] ss:$24 sps:$4 sm:$0xff]   ;;  %v10213_v41 = vld [vmem:[#allocation8 + $0xdf0] ss:$24 sps:$4 sm:$0xff]  }
 0x557   :  { %10988 = vpow2.f32 %v8787_v61  ;;  %v10203_v32 = vld [vmem:[#allocation8 + $0xeb4] ss:$24 sps:$4 sm:$0xff]   ;;  %v10201_v33 = vld [vmem:[#allocation8 + $0xeb0] ss:$24 sps:$4 sm:$0xff]   ;;  %v10218_v61 = vld [vmem:[#allocation8 + $0xdc4] ss:$24 sps:$4 sm:$0xff]  }
 0x558   :  { %v10227_v47 = vld [vmem:[#allocation8 + $0x105c] ss:$24 sps:$4 sm:$0xff]   ;;  %v10228_v50 = vld [vmem:[#allocation8 + $0x1020] ss:$24 sps:$4 sm:$0xff]   ;;  %v10233_v51 = vld [vmem:[#allocation8 + $0x102c] ss:$24 sps:$4 sm:$0xff]  }
 0x562   :  { %v10987_v42 = vpop.eup %10986 }
 0x563   :  { %v3546_v44 = vadd.f32 1.0, %v10987_v42  ;;  %v10216_v42 = vld [vmem:[#allocation8 + $0xdc0] ss:$24 sps:$4 sm:$0xff]  }
 0x564   :  { %v10989_v43 = vpop.eup %10988 }
 0x565   :  { %v3547_v45 = vadd.f32 1.0, %v10989_v43  ;;  %10990 = vrcp.f32 %v3546_v44  ;;  %v10221_v43 = vld [vmem:[#allocation8 + $0xd94] ss:$24 sps:$4 sm:$0xff]   ;;  %v10219_v44 = vld [vmem:[#allocation8 + $0xd90] ss:$24 sps:$4 sm:$0xff]  }
 0x567   :  { %10992 = vrcp.f32 %v3547_v45  ;;  %v10224_v45 = vld [vmem:[#allocation8 + $0x1054] ss:$24 sps:$4 sm:$0xff]  }
 0x568   :  { %4935 = vmatprep.subr.bf16.mxu0 %v10224_v45  ;;  %v10311_v45 = vld [vmem:[#allocation8 + $0x10bc] ss:$24 sps:$4 sm:$0xff]  }
 0x572   :  { %v10991_v49 = vpop.eup %10990 }
 0x573   :  { %v3556_v56 = vsub.f32 1.0, %v10991_v49  ;;  %v3554_v2 = vmul.f32 %v10991_v49, %v3552_v57  ;;  %v10230_v49 = vld [vmem:[#allocation8 + $0x1024] ss:$24 sps:$4 sm:$0xff]  }
 0x574   :  { %v10993_v53 = vpop.eup %10992  ;;  %v10242_v57 = vld [vmem:[#allocation8 + $0xfc4] ss:$24 sps:$4 sm:$0xff]  }
 0x575   :  { %v3557_v1 = vsub.f32 1.0, %v10993_v53  ;;  %v3555_v4 = vmul.f32 %v10993_v53, %v3553_v59  ;;  %v10236_v53 = vld [vmem:[#allocation8 + $0xff4] ss:$24 sps:$4 sm:$0xff]  }
 0x576   :  { %v10245_v59 = vld [vmem:[#allocation8 + $0xfcc] ss:$24 sps:$4 sm:$0xff]  }
 0x590   :  { %v3533_v54 = vpop.f32.mrf.mxu0 }
 0x591   :  { %v3534_v55 = vadd.f32 %v3533_v54, %v2926_v48  ;;  %v10225_v48 = vld [vmem:[#allocation8 + $0x1058] ss:$24 sps:$4 sm:$0xff]  }
 0x592   :  { %v3535_v58 = vpop.f32.mrf.mxu0  ;;  %v10234_v54 = vld [vmem:[#allocation8 + $0xff0] ss:$24 sps:$4 sm:$0xff]  }
 0x593   :  { %v3558_v60 = vmul.f32 %v3556_v56, %v3534_v55  ;;  %v3536_v62 = vadd.f32 %v3535_v58, %v2930_v52  ;;  %v10231_v52 = vld [vmem:[#allocation8 + $0x1028] ss:$24 sps:$4 sm:$0xff]   ;;  %v10239_v55 = vld [vmem:[#allocation8 + $0xffc] ss:$24 sps:$4 sm:$0xff]   ;;  %v10237_v56 = vld [vmem:[#allocation8 + $0xff8] ss:$24 sps:$4 sm:$0xff]  }
 0x594   :  { %v3537_v3 = vpop.f32.mrf.mxu0  ;;  %v10240_v58 = vld [vmem:[#allocation8 + $0xfc0] ss:$24 sps:$4 sm:$0xff]  }
 0x595   :  { %v3559_v5 = vmul.f32 %v3557_v1, %v3536_v62  ;;  %v3560_v6 = vadd.f32 %v3558_v60, %v3554_v2  ;;  %v10243_v60 = vld [vmem:[#allocation8 + $0xfc8] ss:$24 sps:$4 sm:$0xff]   ;;  %v10248_v62 = vld [vmem:[#allocation8 + $0xf94] ss:$24 sps:$4 sm:$0xff]   ;;  %v10249_v3 = vld [vmem:[#allocation8 + $0xf98] ss:$24 sps:$4 sm:$0xff]  }
 0x596   :  { %v3538_v7 = vpop.f32.mrf.mxu0  ;;  %v10246_v1 = vld [vmem:[#allocation8 + $0xf90] ss:$24 sps:$4 sm:$0xff]   ;;  %v10251_v2 = vld [vmem:[#allocation8 + $0xf9c] ss:$24 sps:$4 sm:$0xff]  }
 0x597   :  { %v3561_v8 = vadd.f32 %v3559_v5, %v3555_v4  ;;  %v11333_v11 = vpack.c.bf16 %v3560_v6, %v3560_v6  ;;  %v10254_v4 = vld [vmem:[#allocation8 + $0xf64] ss:$24 sps:$4 sm:$0xff]   ;;  %v10252_v5 = vld [vmem:[#allocation8 + $0xf60] ss:$24 sps:$4 sm:$0xff]  }
 0x598   :  { %v10257_v6 = vld [vmem:[#allocation8 + $0xf6c] ss:$24 sps:$4 sm:$0xff]   ;;  %v10255_v7 = vld [vmem:[#allocation8 + $0xf68] ss:$24 sps:$4 sm:$0xff]  }
 0x599   :  { %v3563_v9 = vpack.c.bf16 %v3561_v8, %v3561_v8  ;;  %v10260_v8 = vld [vmem:[#allocation8 + $0xf34] ss:$24 sps:$4 sm:$0xff]  }
 0x59b   :  { %4208 = vmatprep.mubr.bf16.mxu1 %v3563_v9  ;;  %4249 = vmatprep.mubr.bf16.mxu0 %v3563_v9 }
 0x59c   :  { %4209 = vmatmul.mubr.bf16.vlgmr.msra.gmra.mxu1 %v11333_v11  ;;  %4250 = vmatmul.mubr.bf16.vlgmr.msra.gmra.mxu0 %v11333_v11 }
 0x59d   :  { %4259 = vmatpush1.bf16.msra.mxu1 %v10174_v10  ;;  %4290 = vmatprep.mubr.bf16.mxu1 %v3563_v9  ;;  %v10258_v9 = vld [vmem:[#allocation8 + $0xf30] ss:$24 sps:$4 sm:$0xff]   ;;  %v10263_v10 = vld [vmem:[#allocation8 + $0xf3c] ss:$24 sps:$4 sm:$0xff]  }
 0x59e   :  { %4260 = vmatprep.subr.bf16.mxu1 %v10179_v12  ;;  %4936 = vmatpush1.bf16.msra.mxu0 %v10222_v46  ;;  %v10264_v12 = vld [vmem:[#allocation8 + $0xf00] ss:$24 sps:$4 sm:$0xff]  }
 0x59f   :  { %4937 = vmatprep.subr.bf16.mxu0 %v10230_v49  ;;  %v10309_v46 = vld [vmem:[#allocation8 + $0x10b8] ss:$24 sps:$4 sm:$0xff]   ;;  %v10317_v49 = vld [vmem:[#allocation8 + $0x108c] ss:$24 sps:$4 sm:$0xff]  }
 0x5a1   :  { %4261 = vmatpush1.bf16.msra.mxu1 %v10177_v13  ;;  %v10266_v13 = vld [vmem:[#allocation8 + $0xf04] ss:$24 sps:$4 sm:$0xff]  }
 0x5a2   :  { %4262 = vmatprep.subr.bf16.mxu1 %v10182_v14  ;;  %4938 = vmatpush1.bf16.msra.mxu0 %v10228_v50  ;;  %v10267_v14 = vld [vmem:[#allocation8 + $0xf08] ss:$24 sps:$4 sm:$0xff]  }
 0x5a3   :  { %4939 = vmatprep.subr.bf16.mxu0 %v10236_v53  ;;  %v10315_v50 = vld [vmem:[#allocation8 + $0x1088] ss:$24 sps:$4 sm:$0xff]  }
 0x5a5   :  { %4263 = vmatpush1.bf16.msra.mxu1 %v10180_v15  ;;  %v10269_v15 = vld [vmem:[#allocation8 + $0xf0c] ss:$24 sps:$4 sm:$0xff]  }
 0x5a6   :  { %4264 = vmatprep.subr.bf16.mxu1 %v10185_v16  ;;  %4940 = vmatpush1.bf16.msra.mxu0 %v10234_v54  ;;  %v10272_v16 = vld [vmem:[#allocation8 + $0x11d4] ss:$24 sps:$4 sm:$0xff]  }
 0x5a7   :  { %4941 = vmatprep.subr.bf16.mxu0 %v10242_v57 }
 0x5a9   :  { %4265 = vmatpush1.bf16.msra.mxu1 %v10183_v17  ;;  %v10275_v17 = vld [vmem:[#allocation8 + $0x11dc] ss:$24 sps:$4 sm:$0xff]  }
 0x5aa   :  { %4266 = vmatprep.subr.bf16.mxu1 %v10188_v18  ;;  %4942 = vmatpush1.bf16.msra.mxu0 %v10240_v58  ;;  %v10270_v18 = vld [vmem:[#allocation8 + $0x11d0] ss:$24 sps:$4 sm:$0xff]  }
 0x5ab   :  { %4943 = vmatprep.subr.bf16.mxu0 %v10248_v62  ;;  %v3663_v62 = vld [vmem:[#allocation10 + $0x4] ss:$8 sm:$0x30] }
 0x5ad   :  { %4267 = vmatpush1.bf16.msra.mxu1 %v10186_v19  ;;  %v10273_v19 = vld [vmem:[#allocation8 + $0x11d8] ss:$24 sps:$4 sm:$0xff]  }
 0x5ae   :  { %4268 = vmatprep.subr.bf16.mxu1 %v10191_v23  ;;  %4944 = vmatpush1.bf16.msra.mxu0 %v10246_v1  ;;  %v10278_v23 = vld [vmem:[#allocation8 + $0x11a4] ss:$24 sps:$4 sm:$0xff]  }
 0x5af   :  { %4945 = vmatprep.subr.bf16.mxu0 %v10254_v4 }
 0x5b1   :  { %4269 = vmatpush1.bf16.msra.mxu1 %v10189_v24  ;;  %v10281_v24 = vld [vmem:[#allocation8 + $0x11ac] ss:$24 sps:$4 sm:$0xff]  }
 0x5b2   :  { %4270 = vmatprep.subr.bf16.mxu1 %v10194_v26  ;;  %4946 = vmatpush1.bf16.msra.mxu0 %v10252_v5  ;;  %v10276_v26 = vld [vmem:[#allocation8 + $0x11a0] ss:$24 sps:$4 sm:$0xff]  }
 0x5b3   :  { %4947 = vmatprep.subr.bf16.mxu0 %v10260_v8 }
 0x5b5   :  { %4271 = vmatpush1.bf16.msra.mxu1 %v10192_v27  ;;  %v10279_v27 = vld [vmem:[#allocation8 + $0x11a8] ss:$24 sps:$4 sm:$0xff]  }
 0x5b6   :  { %4272 = vmatprep.subr.bf16.mxu1 %v10197_v28  ;;  %4948 = vmatpush1.bf16.msra.mxu0 %v10258_v9  ;;  %v10284_v28 = vld [vmem:[#allocation8 + $0x1174] ss:$24 sps:$4 sm:$0xff]  }
 0x5b7   :  { %4949 = vmatprep.subr.bf16.mxu0 %v10266_v13 }
 0x5b9   :  { %4273 = vmatpush1.bf16.msra.mxu1 %v10195_v29  ;;  %v10287_v29 = vld [vmem:[#allocation8 + $0x117c] ss:$24 sps:$4 sm:$0xff]  }
 0x5ba   :  { %4274 = vmatprep.subr.bf16.mxu1 %v10200_v30  ;;  %4950 = vmatpush1.bf16.msra.mxu0 %v10264_v12  ;;  %v10282_v30 = vld [vmem:[#allocation8 + $0x1170] ss:$24 sps:$4 sm:$0xff]  }
 0x5bb   :  { %4951 = vmatprep.subr.bf16.mxu0 %v10272_v16 }
 0x5bd   :  { %4275 = vmatpush2.bf16.msra.mxu1 %v10198_v31  ;;  %v10285_v31 = vld [vmem:[#allocation8 + $0x1178] ss:$24 sps:$4 sm:$0xff]  }
 0x5be   :  { %4276 = vmatprep.subr.bf16.mxu1 %v10203_v32  ;;  %4952 = vmatpush2.bf16.msra.mxu0 %v10270_v18  ;;  %v10290_v32 = vld [vmem:[#allocation8 + $0x1144] ss:$24 sps:$4 sm:$0xff]  }
 0x5bf   :  { %4953 = vmatprep.subr.bf16.mxu0 %v10278_v23 }
 0x5c1   :  { %4277 = vmatpush2.bf16.msra.mxu1 %v10201_v33  ;;  %v10293_v33 = vld [vmem:[#allocation8 + $0x114c] ss:$24 sps:$4 sm:$0xff]  }
 0x5c2   :  { %4278 = vmatprep.subr.bf16.mxu1 %v10206_v34  ;;  %4954 = vmatpush2.bf16.msra.mxu0 %v10276_v26  ;;  %v10288_v34 = vld [vmem:[#allocation8 + $0x1140] ss:$24 sps:$4 sm:$0xff]  }
 0x5c3   :  { %4955 = vmatprep.subr.bf16.mxu0 %v10284_v28 }
 0x5c5   :  { %4279 = vmatpush2.bf16.msra.mxu1 %v10204_v35  ;;  %v10291_v35 = vld [vmem:[#allocation8 + $0x1148] ss:$24 sps:$4 sm:$0xff]  }
 0x5c6   :  { %4280 = vmatprep.subr.bf16.mxu1 %v10209_v36  ;;  %4956 = vmatpush2.bf16.msra.mxu0 %v10282_v30  ;;  %v10296_v36 = vld [vmem:[#allocation8 + $0x1114] ss:$24 sps:$4 sm:$0xff]  }
 0x5c7   :  { %4957 = vmatprep.subr.bf16.mxu0 %v10290_v32 }
 0x5c9   :  { %4281 = vmatpush2.bf16.msra.mxu1 %v10207_v37  ;;  %v10299_v37 = vld [vmem:[#allocation8 + $0x111c] ss:$24 sps:$4 sm:$0xff]  }
 0x5ca   :  { %4282 = vmatprep.subr.bf16.mxu1 %v10212_v38  ;;  %4958 = vmatpush2.bf16.msra.mxu0 %v10288_v34  ;;  %v10294_v38 = vld [vmem:[#allocation8 + $0x1110] ss:$24 sps:$4 sm:$0xff]  }
 0x5cb   :  { %4959 = vmatprep.subr.bf16.mxu0 %v10296_v36 }
 0x5cd   :  { %4283 = vmatpush2.bf16.msra.mxu1 %v10210_v39  ;;  %v10297_v39 = vld [vmem:[#allocation8 + $0x1118] ss:$24 sps:$4 sm:$0xff]  }
 0x5ce   :  { %4284 = vmatprep.subr.bf16.mxu1 %v10215_v40  ;;  %v10302_v40 = vld [vmem:[#allocation8 + $0x10e4] ss:$24 sps:$4 sm:$0xff]   ;;  %4960 = vmatpush2.bf16.msra.mxu0 %v10294_v38 }
 0x5cf   :  { %4961 = vmatprep.subr.bf16.mxu0 %v10302_v40 }
 0x5d1   :  { %4285 = vmatpush2.bf16.msra.mxu1 %v10213_v41  ;;  %v10300_v41 = vld [vmem:[#allocation8 + $0x10e0] ss:$24 sps:$4 sm:$0xff]  }
 0x5d2   :  { %4286 = vmatprep.subr.bf16.mxu1 %v10218_v61  ;;  %v10305_v61 = vld [vmem:[#allocation8 + $0x10ec] ss:$24 sps:$4 sm:$0xff]   ;;  %4962 = vmatpush2.bf16.msra.mxu0 %v10300_v41  ;;  %v10318_v41 = vld [vmem:[#allocation8 + $0x1060] ss:$24 sps:$4 sm:$0xff]  }
 0x5d5   :  { %4287 = vmatpush2.bf16.msra.mxu1 %v10216_v42  ;;  %v10303_v42 = vld [vmem:[#allocation8 + $0x10e8] ss:$24 sps:$4 sm:$0xff]  }
 0x5d6   :  { %4288 = vmatprep.subr.bf16.mxu1 %v10221_v43  ;;  %v10308_v43 = vld [vmem:[#allocation8 + $0x10b4] ss:$24 sps:$4 sm:$0xff]  }
 0x5d7   :  { %4963 = vmatprep.subr.bf16.mxu0 %v10308_v43  ;;  %v10321_v43 = vld [vmem:[#allocation8 + $0x1030] ss:$24 sps:$4 sm:$0xff]  }
 0x5d9   :  { %4289 = vmatpush2.bf16.msra.mxu1 %v10219_v44  ;;  %v10306_v44 = vld [vmem:[#allocation8 + $0x10b0] ss:$24 sps:$4 sm:$0xff]  }
 0x5da   :  { %4976 = vmatprep.subr.bf16.mxu1 %v10227_v47  ;;  %4964 = vmatpush2.bf16.msra.mxu0 %v10306_v44  ;;  %v10314_v47 = vld [vmem:[#allocation8 + $0x1084] ss:$24 sps:$4 sm:$0xff]  }
 0x5db   :  { %4965 = vmatprep.subr.bf16.mxu0 %v10314_v47  ;;  %v10326_v44 = vld [vmem:[#allocation8 + $0x1004] ss:$24 sps:$4 sm:$0xff]   ;;  %v10327_v47 = vld [vmem:[#allocation8 + $0xfd0] ss:$24 sps:$4 sm:$0xff]  }
 0x5dc   :  { %4291 = vmatmul.mubr.bf16.vlgmr.msra.gmra.mxu1 %v11333_v11  ;;  %v10261_v11 = vld [vmem:[#allocation8 + $0xf38] ss:$24 sps:$4 sm:$0xff]  }
 0x5dd   :  { %4977 = vmatpush1.bf16.msra.mxu1 %v10225_v48  ;;  %v10312_v48 = vld [vmem:[#allocation8 + $0x1080] ss:$24 sps:$4 sm:$0xff]  }
 0x5de   :  { %4978 = vmatprep.subr.bf16.mxu1 %v10233_v51  ;;  %4966 = vmatpush2.bf16.msra.mxu0 %v10312_v48  ;;  %v10320_v51 = vld [vmem:[#allocation8 + $0x1064] ss:$24 sps:$4 sm:$0xff]  }
 0x5df   :  { %5017 = vmatprep.subr.bf16.mxu0 %v10320_v51  ;;  %v10332_v48 = vld [vmem:[#allocation8 + $0xfa4] ss:$24 sps:$4 sm:$0xff]   ;;  %v10333_v51 = vld [vmem:[#allocation8 + $0xf70] ss:$24 sps:$4 sm:$0xff]  }
 0x5e1   :  { %4979 = vmatpush1.bf16.msra.mxu1 %v10231_v52 }
 0x5e2   :  { %4980 = vmatprep.subr.bf16.mxu1 %v10239_v55 }
 0x5e5   :  { %4981 = vmatpush1.bf16.msra.mxu1 %v10237_v56 }
 0x5e6   :  { %4982 = vmatprep.subr.bf16.mxu1 %v10245_v59 }
 0x5e9   :  { %4983 = vmatpush1.bf16.msra.mxu1 %v10243_v60  ;;  %v3662_v60 = vld [vmem:[#allocation10 + $0x4] ss:$8 sm:$0xf] }
 0x5ea   :  { %4984 = vmatprep.subr.bf16.mxu1 %v10251_v2  ;;  %v3664_v1 = vor.u32 %v3663_v62, %v3662_v60  ;;  %v10350_v60 = vld [vmem:[#allocation8 + $0x1184] ss:$24 sps:$4 sm:$0xff]   ;;  %v10348_v62 = vld [vmem:[#allocation8 + $0x1180] ss:$24 sps:$4 sm:$0xff]  }
 0x5ec   :  { %v3669_v2 = vrot.slane %v3664_v1, %v11266_v63  ;;  %v3677_v12 = vrot.slane %v3664_v1, %v11285_v20  ;;  %v3681_v13 = vrot.slane %v3664_v1, %v11288_v21  ;;  %v3689_v18 = vrot.slane %v3664_v1, %v11296_v25 }
 0x5ed   :  { %4985 = vmatpush1.bf16.msra.mxu1 %v10249_v3  ;;  %v3673_v3 = vrot.slane %v3664_v1, %v11269_v0 }
 0x5ee   :  { %4986 = vmatprep.subr.bf16.mxu1 %v10257_v6 }
 0x5f1   :  { %4987 = vmatpush1.bf16.msra.mxu1 %v10255_v7 }
 0x5f2   :  { %4988 = vmatprep.subr.bf16.mxu1 %v10263_v10 }
 0x5f5   :  { %4989 = vmatpush1.bf16.msra.mxu1 %v10261_v11 }
 0x5f6   :  { %4990 = vmatprep.subr.bf16.mxu1 %v10269_v15 }
 0x5f9   :  { %4991 = vmatpush1.bf16.msra.mxu1 %v10267_v14  ;;  %v3685_v14 = vrot.slane %v3664_v1, %v11291_v22  ;;  %v10353_v1 = vld [vmem:[#allocation8 + $0x1154] ss:$24 sps:$4 sm:$0xff]  }
 0x5fa   :  { %4992 = vmatprep.subr.bf16.mxu1 %v10275_v17 }
 0x5fd   :  { %4993 = vmatpush2.bf16.msra.mxu1 %v10273_v19 }
 0x5fe   :  { %4994 = vmatprep.subr.bf16.mxu1 %v10281_v24 }
 0x601   :  { %4995 = vmatpush2.bf16.msra.mxu1 %v10279_v27 }
 0x602   :  { %4996 = vmatprep.subr.bf16.mxu1 %v10287_v29 }
 0x605   :  { %4997 = vmatpush2.bf16.msra.mxu1 %v10285_v31 }
 0x606   :  { %4998 = vmatprep.subr.bf16.mxu1 %v10293_v33 }
 0x609   :  { %4999 = vmatpush2.bf16.msra.mxu1 %v10291_v35 }
 0x60a   :  { %5000 = vmatprep.subr.bf16.mxu1 %v10299_v37 }
 0x60d   :  { %5001 = vmatpush2.bf16.msra.mxu1 %v10297_v39 }
 0x60e   :  { %5002 = vmatprep.subr.bf16.mxu1 %v10305_v61 }
 0x611   :  { %5003 = vmatpush2.bf16.msra.mxu1 %v10303_v42  ;;  %v10323_v42 = vld [vmem:[#allocation8 + $0x1034] ss:$24 sps:$4 sm:$0xff]  }
 0x612   :  { %5004 = vmatprep.subr.bf16.mxu1 %v10311_v45  ;;  %v10324_v45 = vld [vmem:[#allocation8 + $0x1000] ss:$24 sps:$4 sm:$0xff]  }
 0x615   :  { %5005 = vmatpush2.bf16.msra.mxu1 %v10309_v46  ;;  %v10329_v46 = vld [vmem:[#allocation8 + $0xfd4] ss:$24 sps:$4 sm:$0xff]  }
 0x616   :  { %5006 = vmatprep.subr.bf16.mxu1 %v10317_v49  ;;  %v10330_v49 = vld [vmem:[#allocation8 + $0xfa0] ss:$24 sps:$4 sm:$0xff]  }
 0x619   :  { %5007 = vmatpush2.bf16.msra.mxu1 %v10315_v50  ;;  %v10335_v50 = vld [vmem:[#allocation8 + $0xf74] ss:$24 sps:$4 sm:$0xff]  }
 0x65c   :  { %v4210_v52 = vpop.f32.mrf.mxu1  ;;  %v4251_v53 = vpop.f32.mrf.mxu0 }
 0x65d   :  { %v4211_v4 = vadd.f32 %v4210_v52, %v3669_v2  ;;  %v4252_v16 = vadd.f32 %v4251_v53, %v3677_v12  ;;  %v10338_v52 = vld [vmem:[#allocation8 + $0xf44] ss:$24 sps:$4 sm:$0xff]   ;;  %v10336_v53 = vld [vmem:[#allocation8 + $0xf40] ss:$24 sps:$4 sm:$0xff]   ;;  %v10351_v2 = vld [vmem:[#allocation8 + $0x1150] ss:$24 sps:$4 sm:$0xff]  }
 0x65e   :  { %v4212_v54 = vpop.f32.mrf.mxu1  ;;  %v4253_v55 = vpop.f32.mrf.mxu0  ;;  %v10366_v12 = vld [vmem:[#allocation8 + $0x1350] ss:$24 sps:$4 sm:$0xff]  }
 0x65f   :  { %v4213_v5 = vadd.f32 %v4212_v54, %v3673_v3  ;;  %v8884_v6 = vmul.f32 -1.442695, %v4211_v4  ;;  %v4254_v17 = vadd.f32 %v4253_v55, %v3681_v13  ;;  %v4311_v27 = vmax.f32 %v4252_v16, 0.0  ;;  %v10341_v54 = vld [vmem:[#allocation8 + $0xf14] ss:$24 sps:$4 sm:$0xff]  }
 0x660   :  { %v4214_v56 = vpop.f32.mrf.mxu1  ;;  %v4255_v57 = vpop.f32.mrf.mxu0  ;;  %v10339_v55 = vld [vmem:[#allocation8 + $0xf10] ss:$24 sps:$4 sm:$0xff]   ;;  %v10356_v3 = vld [vmem:[#allocation8 + $0x1124] ss:$24 sps:$4 sm:$0xff]   ;;  %v10354_v4 = vld [vmem:[#allocation8 + $0x1120] ss:$24 sps:$4 sm:$0xff]  }
 0x661   :  { %v8885_v7 = vmul.f32 -1.442695, %v4213_v5  ;;  %10994 = vpow2.f32 %v8884_v6  ;;  %v4312_v29 = vmax.f32 %v4254_v17, 0.0  ;;  %v10344_v56 = vld [vmem:[#allocation8 + $0x11e4] ss:$24 sps:$4 sm:$0xff]  }
 0x662   :  { %v4215_v58 = vpop.f32.mrf.mxu1  ;;  %v4256_v59 = vpop.f32.mrf.mxu0  ;;  %v10342_v57 = vld [vmem:[#allocation8 + $0x11e0] ss:$24 sps:$4 sm:$0xff]   ;;  %v10359_v5 = vld [vmem:[#allocation8 + $0x10f4] ss:$24 sps:$4 sm:$0xff]   ;;  %v10357_v6 = vld [vmem:[#allocation8 + $0x10f0] ss:$24 sps:$4 sm:$0xff]  }
 0x663   :  { %10996 = vpow2.f32 %v8885_v7  ;;  %v10347_v58 = vld [vmem:[#allocation8 + $0x11b4] ss:$24 sps:$4 sm:$0xff]   ;;  %v10345_v59 = vld [vmem:[#allocation8 + $0x11b0] ss:$24 sps:$4 sm:$0xff]   ;;  %v10362_v7 = vld [vmem:[#allocation8 + $0x10c4] ss:$24 sps:$4 sm:$0xff]  }
 0x664   :  { %v10371_v13 = vld [vmem:[#allocation8 + $0x135c] ss:$24 sps:$4 sm:$0xff]   ;;  %v10372_v16 = vld [vmem:[#allocation8 + $0x1320] ss:$24 sps:$4 sm:$0xff]   ;;  %v10377_v17 = vld [vmem:[#allocation8 + $0x132c] ss:$24 sps:$4 sm:$0xff]  }
 0x66e   :  { %v10995_v8 = vpop.eup %10994 }
 0x66f   :  { %v4305_v10 = vadd.f32 1.0, %v10995_v8  ;;  %v10360_v8 = vld [vmem:[#allocation8 + $0x10c0] ss:$24 sps:$4 sm:$0xff]  }
 0x670   :  { %v10997_v9 = vpop.eup %10996 }
 0x671   :  { %v4306_v11 = vadd.f32 1.0, %v10997_v9  ;;  %10998 = vrcp.f32 %v4305_v10  ;;  %v10365_v9 = vld [vmem:[#allocation8 + $0x1094] ss:$24 sps:$4 sm:$0xff]   ;;  %v10363_v10 = vld [vmem:[#allocation8 + $0x1090] ss:$24 sps:$4 sm:$0xff]  }
 0x673   :  { %11000 = vrcp.f32 %v4306_v11  ;;  %v10368_v11 = vld [vmem:[#allocation8 + $0x1354] ss:$24 sps:$4 sm:$0xff]  }
 0x674   :  { %5694 = vmatprep.subr.bf16.mxu1 %v10368_v11  ;;  %v10455_v11 = vld [vmem:[#allocation8 + $0x13bc] ss:$24 sps:$4 sm:$0xff]  }
 0x67e   :  { %v10999_v15 = vpop.eup %10998 }
 0x67f   :  { %v4315_v26 = vsub.f32 1.0, %v10999_v15  ;;  %v4313_v33 = vmul.f32 %v10999_v15, %v4311_v27  ;;  %v10374_v15 = vld [vmem:[#allocation8 + $0x1324] ss:$24 sps:$4 sm:$0xff]  }
 0x680   :  { %v11001_v19 = vpop.eup %11000  ;;  %v10386_v27 = vld [vmem:[#allocation8 + $0x12c4] ss:$24 sps:$4 sm:$0xff]  }
 0x681   :  { %v4316_v32 = vsub.f32 1.0, %v11001_v19  ;;  %v4314_v35 = vmul.f32 %v11001_v19, %v4312_v29  ;;  %v10380_v19 = vld [vmem:[#allocation8 + $0x12f4] ss:$24 sps:$4 sm:$0xff]  }
 0x682   :  { %v10389_v29 = vld [vmem:[#allocation8 + $0x12cc] ss:$24 sps:$4 sm:$0xff]  }
 0x69c   :  { %v4292_v23 = vpop.f32.mrf.mxu1 }
 0x69d   :  { %v4293_v24 = vadd.f32 %v4292_v23, %v3685_v14  ;;  %v10369_v14 = vld [vmem:[#allocation8 + $0x1358] ss:$24 sps:$4 sm:$0xff]  }
 0x69e   :  { %v4294_v28 = vpop.f32.mrf.mxu1  ;;  %v10378_v23 = vld [vmem:[#allocation8 + $0x12f0] ss:$24 sps:$4 sm:$0xff]  }
 0x69f   :  { %v4317_v30 = vmul.f32 %v4315_v26, %v4293_v24  ;;  %v4295_v31 = vadd.f32 %v4294_v28, %v3689_v18  ;;  %v10375_v18 = vld [vmem:[#allocation8 + $0x1328] ss:$24 sps:$4 sm:$0xff]   ;;  %v10383_v24 = vld [vmem:[#allocation8 + $0x12fc] ss:$24 sps:$4 sm:$0xff]   ;;  %v10381_v26 = vld [vmem:[#allocation8 + $0x12f8] ss:$24 sps:$4 sm:$0xff]  }
 0x6a0   :  { %v4296_v34 = vpop.f32.mrf.mxu1  ;;  %v10384_v28 = vld [vmem:[#allocation8 + $0x12c0] ss:$24 sps:$4 sm:$0xff]  }
 0x6a1   :  { %v4318_v36 = vmul.f32 %v4316_v32, %v4295_v31  ;;  %v4319_v37 = vadd.f32 %v4317_v30, %v4313_v33  ;;  %v10387_v30 = vld [vmem:[#allocation8 + $0x12c8] ss:$24 sps:$4 sm:$0xff]   ;;  %v10392_v31 = vld [vmem:[#allocation8 + $0x1294] ss:$24 sps:$4 sm:$0xff]   ;;  %v10393_v34 = vld [vmem:[#allocation8 + $0x1298] ss:$24 sps:$4 sm:$0xff]  }
 0x6a2   :  { %v4297_v38 = vpop.f32.mrf.mxu1  ;;  %v10390_v32 = vld [vmem:[#allocation8 + $0x1290] ss:$24 sps:$4 sm:$0xff]   ;;  %v10395_v33 = vld [vmem:[#allocation8 + $0x129c] ss:$24 sps:$4 sm:$0xff]  }
 0x6a3   :  { %v4320_v39 = vadd.f32 %v4318_v36, %v4314_v35  ;;  %v11344_v61 = vpack.c.bf16 %v4319_v37, %v4319_v37  ;;  %v10398_v35 = vld [vmem:[#allocation8 + $0x1264] ss:$24 sps:$4 sm:$0xff]   ;;  %v10396_v36 = vld [vmem:[#allocation8 + $0x1260] ss:$24 sps:$4 sm:$0xff]  }
 0x6a4   :  { %v10401_v37 = vld [vmem:[#allocation8 + $0x126c] ss:$24 sps:$4 sm:$0xff]   ;;  %v10399_v38 = vld [vmem:[#allocation8 + $0x1268] ss:$24 sps:$4 sm:$0xff]  }
 0x6a5   :  { %v4322_v40 = vpack.c.bf16 %v4320_v39, %v4320_v39  ;;  %v10404_v39 = vld [vmem:[#allocation8 + $0x1234] ss:$24 sps:$4 sm:$0xff]  }
 0x6a7   :  { %4967 = vmatprep.mubr.bf16.mxu0 %v4322_v40  ;;  %5008 = vmatprep.mubr.bf16.mxu1 %v4322_v40 }
 0x6a8   :  { %4968 = vmatmul.mubr.bf16.vlgmr.msra.gmra.mxu0 %v11344_v61  ;;  %5009 = vmatmul.mubr.bf16.vlgmr.msra.gmra.mxu1 %v11344_v61 }
 0x6a9   :  { %5018 = vmatpush1.bf16.msra.mxu0 %v10318_v41  ;;  %5049 = vmatprep.mubr.bf16.mxu0 %v4322_v40  ;;  %v10402_v40 = vld [vmem:[#allocation8 + $0x1230] ss:$24 sps:$4 sm:$0xff]   ;;  %v10407_v41 = vld [vmem:[#allocation8 + $0x123c] ss:$24 sps:$4 sm:$0xff]  }
 0x6aa   :  { %5019 = vmatprep.subr.bf16.mxu0 %v10323_v42  ;;  %5695 = vmatpush1.bf16.msra.mxu1 %v10366_v12  ;;  %v10408_v42 = vld [vmem:[#allocation8 + $0x1200] ss:$24 sps:$4 sm:$0xff]  }
 0x6ab   :  { %5696 = vmatprep.subr.bf16.mxu1 %v10374_v15  ;;  %v10453_v12 = vld [vmem:[#allocation8 + $0x13b8] ss:$24 sps:$4 sm:$0xff]   ;;  %v10461_v15 = vld [vmem:[#allocation8 + $0x138c] ss:$24 sps:$4 sm:$0xff]  }
 0x6ad   :  { %5020 = vmatpush1.bf16.msra.mxu0 %v10321_v43  ;;  %v10410_v43 = vld [vmem:[#allocation8 + $0x1204] ss:$24 sps:$4 sm:$0xff]  }
 0x6ae   :  { %5021 = vmatprep.subr.bf16.mxu0 %v10326_v44  ;;  %5697 = vmatpush1.bf16.msra.mxu1 %v10372_v16  ;;  %v10411_v44 = vld [vmem:[#allocation8 + $0x1208] ss:$24 sps:$4 sm:$0xff]  }
 0x6af   :  { %5698 = vmatprep.subr.bf16.mxu1 %v10380_v19  ;;  %v10459_v16 = vld [vmem:[#allocation8 + $0x1388] ss:$24 sps:$4 sm:$0xff]  }
 0x6b1   :  { %5022 = vmatpush1.bf16.msra.mxu0 %v10324_v45  ;;  %v10413_v45 = vld [vmem:[#allocation8 + $0x120c] ss:$24 sps:$4 sm:$0xff]  }
 0x6b2   :  { %5023 = vmatprep.subr.bf16.mxu0 %v10329_v46  ;;  %5699 = vmatpush1.bf16.msra.mxu1 %v10378_v23  ;;  %v10416_v46 = vld [vmem:[#allocation8 + $0x14d4] ss:$24 sps:$4 sm:$0xff]  }
 0x6b3   :  { %5700 = vmatprep.subr.bf16.mxu1 %v10386_v27 }
 0x6b5   :  { %5024 = vmatpush1.bf16.msra.mxu0 %v10327_v47  ;;  %v10419_v47 = vld [vmem:[#allocation8 + $0x14dc] ss:$24 sps:$4 sm:$0xff]  }
 0x6b6   :  { %5025 = vmatprep.subr.bf16.mxu0 %v10332_v48  ;;  %5701 = vmatpush1.bf16.msra.mxu1 %v10384_v28  ;;  %v10414_v48 = vld [vmem:[#allocation8 + $0x14d0] ss:$24 sps:$4 sm:$0xff]  }
 0x6b7   :  { %5702 = vmatprep.subr.bf16.mxu1 %v10392_v31  ;;  %v4422_v31 = vld [vmem:[#allocation10 + $0x5] ss:$8 sm:$0x30] }
 0x6b9   :  { %5026 = vmatpush1.bf16.msra.mxu0 %v10330_v49  ;;  %v10417_v49 = vld [vmem:[#allocation8 + $0x14d8] ss:$24 sps:$4 sm:$0xff]  }
 0x6ba   :  { %5027 = vmatprep.subr.bf16.mxu0 %v10335_v50  ;;  %5703 = vmatpush1.bf16.msra.mxu1 %v10390_v32  ;;  %v10422_v50 = vld [vmem:[#allocation8 + $0x14a4] ss:$24 sps:$4 sm:$0xff]  }
 0x6bb   :  { %5704 = vmatprep.subr.bf16.mxu1 %v10398_v35 }
 0x6bd   :  { %5028 = vmatpush1.bf16.msra.mxu0 %v10333_v51  ;;  %v10425_v51 = vld [vmem:[#allocation8 + $0x14ac] ss:$24 sps:$4 sm:$0xff]  }
 0x6be   :  { %5029 = vmatprep.subr.bf16.mxu0 %v10338_v52  ;;  %5705 = vmatpush1.bf16.msra.mxu1 %v10396_v36  ;;  %v10420_v52 = vld [vmem:[#allocation8 + $0x14a0] ss:$24 sps:$4 sm:$0xff]  }
 0x6bf   :  { %5706 = vmatprep.subr.bf16.mxu1 %v10404_v39 }
 0x6c1   :  { %5030 = vmatpush1.bf16.msra.mxu0 %v10336_v53  ;;  %v10423_v53 = vld [vmem:[#allocation8 + $0x14a8] ss:$24 sps:$4 sm:$0xff]  }
 0x6c2   :  { %5031 = vmatprep.subr.bf16.mxu0 %v10341_v54  ;;  %5707 = vmatpush1.bf16.msra.mxu1 %v10402_v40  ;;  %v10428_v54 = vld [vmem:[#allocation8 + $0x1474] ss:$24 sps:$4 sm:$0xff]  }
 0x6c3   :  { %5708 = vmatprep.subr.bf16.mxu1 %v10410_v43 }
 0x6c5   :  { %5032 = vmatpush1.bf16.msra.mxu0 %v10339_v55  ;;  %v10431_v55 = vld [vmem:[#allocation8 + $0x147c] ss:$24 sps:$4 sm:$0xff]  }
 0x6c6   :  { %5033 = vmatprep.subr.bf16.mxu0 %v10344_v56  ;;  %5709 = vmatpush1.bf16.msra.mxu1 %v10408_v42  ;;  %v10426_v56 = vld [vmem:[#allocation8 + $0x1470] ss:$24 sps:$4 sm:$0xff]  }
 0x6c7   :  { %5710 = vmatprep.subr.bf16.mxu1 %v10416_v46 }
 0x6c9   :  { %5034 = vmatpush2.bf16.msra.mxu0 %v10342_v57  ;;  %v10429_v57 = vld [vmem:[#allocation8 + $0x1478] ss:$24 sps:$4 sm:$0xff]  }
 0x6ca   :  { %5035 = vmatprep.subr.bf16.mxu0 %v10347_v58  ;;  %5711 = vmatpush2.bf16.msra.mxu1 %v10414_v48  ;;  %v10434_v58 = vld [vmem:[#allocation8 + $0x1444] ss:$24 sps:$4 sm:$0xff]  }
 0x6cb   :  { %5712 = vmatprep.subr.bf16.mxu1 %v10422_v50 }
 0x6cd   :  { %5036 = vmatpush2.bf16.msra.mxu0 %v10345_v59  ;;  %v10437_v59 = vld [vmem:[#allocation8 + $0x144c] ss:$24 sps:$4 sm:$0xff]  }
 0x6ce   :  { %5037 = vmatprep.subr.bf16.mxu0 %v10350_v60  ;;  %5713 = vmatpush2.bf16.msra.mxu1 %v10420_v52  ;;  %v10432_v60 = vld [vmem:[#allocation8 + $0x1440] ss:$24 sps:$4 sm:$0xff]  }
 0x6cf   :  { %5714 = vmatprep.subr.bf16.mxu1 %v10428_v54 }
 0x6d1   :  { %5038 = vmatpush2.bf16.msra.mxu0 %v10348_v62  ;;  %v10435_v62 = vld [vmem:[#allocation8 + $0x1448] ss:$24 sps:$4 sm:$0xff]  }
 0x6d2   :  { %5039 = vmatprep.subr.bf16.mxu0 %v10353_v1  ;;  %5715 = vmatpush2.bf16.msra.mxu1 %v10426_v56  ;;  %v10440_v1 = vld [vmem:[#allocation8 + $0x1414] ss:$24 sps:$4 sm:$0xff]  }
 0x6d3   :  { %5716 = vmatprep.subr.bf16.mxu1 %v10434_v58 }
 0x6d5   :  { %5040 = vmatpush2.bf16.msra.mxu0 %v10351_v2  ;;  %v10443_v2 = vld [vmem:[#allocation8 + $0x141c] ss:$24 sps:$4 sm:$0xff]  }
 0x6d6   :  { %5041 = vmatprep.subr.bf16.mxu0 %v10356_v3  ;;  %5717 = vmatpush2.bf16.msra.mxu1 %v10432_v60  ;;  %v10438_v3 = vld [vmem:[#allocation8 + $0x1410] ss:$24 sps:$4 sm:$0xff]  }
 0x6d7   :  { %5718 = vmatprep.subr.bf16.mxu1 %v10440_v1 }
 0x6d9   :  { %5042 = vmatpush2.bf16.msra.mxu0 %v10354_v4  ;;  %v10441_v4 = vld [vmem:[#allocation8 + $0x1418] ss:$24 sps:$4 sm:$0xff]  }
 0x6da   :  { %5043 = vmatprep.subr.bf16.mxu0 %v10359_v5  ;;  %v10446_v5 = vld [vmem:[#allocation8 + $0x13e4] ss:$24 sps:$4 sm:$0xff]   ;;  %5719 = vmatpush2.bf16.msra.mxu1 %v10438_v3 }
 0x6db   :  { %5720 = vmatprep.subr.bf16.mxu1 %v10446_v5 }
 0x6dd   :  { %5044 = vmatpush2.bf16.msra.mxu0 %v10357_v6  ;;  %v10444_v6 = vld [vmem:[#allocation8 + $0x13e0] ss:$24 sps:$4 sm:$0xff]  }
 0x6de   :  { %5045 = vmatprep.subr.bf16.mxu0 %v10362_v7  ;;  %v10449_v7 = vld [vmem:[#allocation8 + $0x13ec] ss:$24 sps:$4 sm:$0xff]   ;;  %5721 = vmatpush2.bf16.msra.mxu1 %v10444_v6  ;;  %v10462_v6 = vld [vmem:[#allocation8 + $0x1360] ss:$24 sps:$4 sm:$0xff]  }
 0x6e1   :  { %5046 = vmatpush2.bf16.msra.mxu0 %v10360_v8  ;;  %v10447_v8 = vld [vmem:[#allocation8 + $0x13e8] ss:$24 sps:$4 sm:$0xff]  }
 0x6e2   :  { %5047 = vmatprep.subr.bf16.mxu0 %v10365_v9  ;;  %v10452_v9 = vld [vmem:[#allocation8 + $0x13b4] ss:$24 sps:$4 sm:$0xff]  }
 0x6e3   :  { %5722 = vmatprep.subr.bf16.mxu1 %v10452_v9  ;;  %v10465_v9 = vld [vmem:[#allocation8 + $0x1330] ss:$24 sps:$4 sm:$0xff]  }
 0x6e5   :  { %5048 = vmatpush2.bf16.msra.mxu0 %v10363_v10  ;;  %v10450_v10 = vld [vmem:[#allocation8 + $0x13b0] ss:$24 sps:$4 sm:$0xff]  }
 0x6e6   :  { %5735 = vmatprep.subr.bf16.mxu0 %v10371_v13  ;;  %5723 = vmatpush2.bf16.msra.mxu1 %v10450_v10  ;;  %v10458_v13 = vld [vmem:[#allocation8 + $0x1384] ss:$24 sps:$4 sm:$0xff]  }
 0x6e7   :  { %5724 = vmatprep.subr.bf16.mxu1 %v10458_v13  ;;  %v10470_v10 = vld [vmem:[#allocation8 + $0x1304] ss:$24 sps:$4 sm:$0xff]   ;;  %v10471_v13 = vld [vmem:[#allocation8 + $0x12d0] ss:$24 sps:$4 sm:$0xff]  }
 0x6e8   :  { %5050 = vmatmul.mubr.bf16.vlgmr.msra.gmra.mxu0 %v11344_v61  ;;  %v10405_v61 = vld [vmem:[#allocation8 + $0x1238] ss:$24 sps:$4 sm:$0xff]  }
 0x6e9   :  { %5736 = vmatpush1.bf16.msra.mxu0 %v10369_v14  ;;  %v10456_v14 = vld [vmem:[#allocation8 + $0x1380] ss:$24 sps:$4 sm:$0xff]  }
 0x6ea   :  { %5737 = vmatprep.subr.bf16.mxu0 %v10377_v17  ;;  %5725 = vmatpush2.bf16.msra.mxu1 %v10456_v14  ;;  %v10464_v17 = vld [vmem:[#allocation8 + $0x1364] ss:$24 sps:$4 sm:$0xff]  }
 0x6eb   :  { %5776 = vmatprep.subr.bf16.mxu1 %v10464_v17  ;;  %v10476_v14 = vld [vmem:[#allocation8 + $0x12a4] ss:$24 sps:$4 sm:$0xff]   ;;  %v10477_v17 = vld [vmem:[#allocation8 + $0x1270] ss:$24 sps:$4 sm:$0xff]  }
 0x6ed   :  { %5738 = vmatpush1.bf16.msra.mxu0 %v10375_v18 }
 0x6ee   :  { %5739 = vmatprep.subr.bf16.mxu0 %v10383_v24 }
 0x6f1   :  { %5740 = vmatpush1.bf16.msra.mxu0 %v10381_v26 }
 0x6f2   :  { %5741 = vmatprep.subr.bf16.mxu0 %v10389_v29 }
 0x6f5   :  { %5742 = vmatpush1.bf16.msra.mxu0 %v10387_v30  ;;  %v4421_v30 = vld [vmem:[#allocation10 + $0x5] ss:$8 sm:$0xf] }
 0x6f6   :  { %5743 = vmatprep.subr.bf16.mxu0 %v10395_v33  ;;  %v4423_v32 = vor.u32 %v4422_v31, %v4421_v30  ;;  %v10494_v30 = vld [vmem:[#allocation8 + $0x1484] ss:$24 sps:$4 sm:$0xff]   ;;  %v10492_v31 = vld [vmem:[#allocation8 + $0x1480] ss:$24 sps:$4 sm:$0xff]  }
 0x6f8   :  { %v4428_v33 = vrot.slane %v4423_v32, %v11266_v63  ;;  %v4436_v42 = vrot.slane %v4423_v32, %v11285_v20  ;;  %v4440_v43 = vrot.slane %v4423_v32, %v11288_v21  ;;  %v4448_v48 = vrot.slane %v4423_v32, %v11296_v25 }
 0x6f9   :  { %5744 = vmatpush1.bf16.msra.mxu0 %v10393_v34  ;;  %v4432_v34 = vrot.slane %v4423_v32, %v11269_v0 }
 0x6fa   :  { %5745 = vmatprep.subr.bf16.mxu0 %v10401_v37 }
 0x6fd   :  { %5746 = vmatpush1.bf16.msra.mxu0 %v10399_v38 }
 0x6fe   :  { %5747 = vmatprep.subr.bf16.mxu0 %v10407_v41 }
 0x701   :  { %5748 = vmatpush1.bf16.msra.mxu0 %v10405_v61 }
 0x702   :  { %5749 = vmatprep.subr.bf16.mxu0 %v10413_v45 }
 0x705   :  { %5750 = vmatpush1.bf16.msra.mxu0 %v10411_v44  ;;  %v4444_v44 = vrot.slane %v4423_v32, %v11291_v22  ;;  %v10497_v32 = vld [vmem:[#allocation8 + $0x1454] ss:$24 sps:$4 sm:$0xff]  }
 0x706   :  { %5751 = vmatprep.subr.bf16.mxu0 %v10419_v47 }
 0x709   :  { %5752 = vmatpush2.bf16.msra.mxu0 %v10417_v49 }
 0x70a   :  { %5753 = vmatprep.subr.bf16.mxu0 %v10425_v51 }
 0x70d   :  { %5754 = vmatpush2.bf16.msra.mxu0 %v10423_v53 }
 0x70e   :  { %5755 = vmatprep.subr.bf16.mxu0 %v10431_v55 }
 0x711   :  { %5756 = vmatpush2.bf16.msra.mxu0 %v10429_v57 }
 0x712   :  { %5757 = vmatprep.subr.bf16.mxu0 %v10437_v59 }
 0x715   :  { %5758 = vmatpush2.bf16.msra.mxu0 %v10435_v62 }
 0x716   :  { %5759 = vmatprep.subr.bf16.mxu0 %v10443_v2 }
 0x719   :  { %5760 = vmatpush2.bf16.msra.mxu0 %v10441_v4 }
 0x71a   :  { %5761 = vmatprep.subr.bf16.mxu0 %v10449_v7 }
 0x71d   :  { %5762 = vmatpush2.bf16.msra.mxu0 %v10447_v8  ;;  %v10467_v8 = vld [vmem:[#allocation8 + $0x1334] ss:$24 sps:$4 sm:$0xff]  }
 0x71e   :  { %5763 = vmatprep.subr.bf16.mxu0 %v10455_v11  ;;  %v10468_v11 = vld [vmem:[#allocation8 + $0x1300] ss:$24 sps:$4 sm:$0xff]  }
 0x721   :  { %5764 = vmatpush2.bf16.msra.mxu0 %v10453_v12  ;;  %v10473_v12 = vld [vmem:[#allocation8 + $0x12d4] ss:$24 sps:$4 sm:$0xff]  }
 0x722   :  { %5765 = vmatprep.subr.bf16.mxu0 %v10461_v15  ;;  %v10474_v15 = vld [vmem:[#allocation8 + $0x12a0] ss:$24 sps:$4 sm:$0xff]  }
 0x725   :  { %5766 = vmatpush2.bf16.msra.mxu0 %v10459_v16  ;;  %v10479_v16 = vld [vmem:[#allocation8 + $0x1274] ss:$24 sps:$4 sm:$0xff]  }
 0x768   :  { %v4969_v18 = vpop.f32.mrf.mxu0  ;;  %v5010_v19 = vpop.f32.mrf.mxu1 }
 0x769   :  { %v4970_v35 = vadd.f32 %v4969_v18, %v4428_v33  ;;  %v5011_v46 = vadd.f32 %v5010_v19, %v4436_v42  ;;  %v10482_v18 = vld [vmem:[#allocation8 + $0x1244] ss:$24 sps:$4 sm:$0xff]   ;;  %v10480_v19 = vld [vmem:[#allocation8 + $0x1240] ss:$24 sps:$4 sm:$0xff]   ;;  %v10495_v33 = vld [vmem:[#allocation8 + $0x1450] ss:$24 sps:$4 sm:$0xff]  }
 0x76a   :  { %v4971_v23 = vpop.f32.mrf.mxu0  ;;  %v5012_v24 = vpop.f32.mrf.mxu1  ;;  %v10510_v42 = vld [vmem:[#allocation8 + $0x1650] ss:$24 sps:$4 sm:$0xff]  }
 0x76b   :  { %v4972_v36 = vadd.f32 %v4971_v23, %v4432_v34  ;;  %v8982_v37 = vmul.f32 -1.442695, %v4970_v35  ;;  %v5013_v47 = vadd.f32 %v5012_v24, %v4440_v43  ;;  %v5070_v53 = vmax.f32 %v5011_v46, 0.0  ;;  %v10485_v23 = vld [vmem:[#allocation8 + $0x1214] ss:$24 sps:$4 sm:$0xff]  }
 0x76c   :  { %v4973_v26 = vpop.f32.mrf.mxu0  ;;  %v5014_v27 = vpop.f32.mrf.mxu1  ;;  %v10483_v24 = vld [vmem:[#allocation8 + $0x1210] ss:$24 sps:$4 sm:$0xff]   ;;  %v10500_v34 = vld [vmem:[#allocation8 + $0x1424] ss:$24 sps:$4 sm:$0xff]   ;;  %v10498_v35 = vld [vmem:[#allocation8 + $0x1420] ss:$24 sps:$4 sm:$0xff]  }
 0x76d   :  { %v8983_v38 = vmul.f32 -1.442695, %v4972_v36  ;;  %11002 = vpow2.f32 %v8982_v37  ;;  %v5071_v55 = vmax.f32 %v5013_v47, 0.0  ;;  %v10488_v26 = vld [vmem:[#allocation8 + $0x14e4] ss:$24 sps:$4 sm:$0xff]  }
 0x76e   :  { %v4974_v28 = vpop.f32.mrf.mxu0  ;;  %v5015_v29 = vpop.f32.mrf.mxu1  ;;  %v10486_v27 = vld [vmem:[#allocation8 + $0x14e0] ss:$24 sps:$4 sm:$0xff]   ;;  %v10503_v36 = vld [vmem:[#allocation8 + $0x13f4] ss:$24 sps:$4 sm:$0xff]   ;;  %v10501_v37 = vld [vmem:[#allocation8 + $0x13f0] ss:$24 sps:$4 sm:$0xff]  }
 0x76f   :  { %11004 = vpow2.f32 %v8983_v38  ;;  %v10491_v28 = vld [vmem:[#allocation8 + $0x14b4] ss:$24 sps:$4 sm:$0xff]   ;;  %v10489_v29 = vld [vmem:[#allocation8 + $0x14b0] ss:$24 sps:$4 sm:$0xff]   ;;  %v10506_v38 = vld [vmem:[#allocation8 + $0x13c4] ss:$24 sps:$4 sm:$0xff]  }
 0x770   :  { %v10515_v43 = vld [vmem:[#allocation8 + $0x165c] ss:$24 sps:$4 sm:$0xff]   ;;  %v10516_v46 = vld [vmem:[#allocation8 + $0x1620] ss:$24 sps:$4 sm:$0xff]   ;;  %v10521_v47 = vld [vmem:[#allocation8 + $0x162c] ss:$24 sps:$4 sm:$0xff]  }
 0x77a   :  { %v11003_v39 = vpop.eup %11002 }
 0x77b   :  { %v5064_v41 = vadd.f32 1.0, %v11003_v39  ;;  %v10504_v39 = vld [vmem:[#allocation8 + $0x13c0] ss:$24 sps:$4 sm:$0xff]  }
 0x77c   :  { %v11005_v40 = vpop.eup %11004 }
 0x77d   :  { %v5065_v61 = vadd.f32 1.0, %v11005_v40  ;;  %11006 = vrcp.f32 %v5064_v41  ;;  %v10509_v40 = vld [vmem:[#allocation8 + $0x1394] ss:$24 sps:$4 sm:$0xff]   ;;  %v10507_v41 = vld [vmem:[#allocation8 + $0x1390] ss:$24 sps:$4 sm:$0xff]  }
 0x77f   :  { %11008 = vrcp.f32 %v5065_v61  ;;  %v10512_v61 = vld [vmem:[#allocation8 + $0x1654] ss:$24 sps:$4 sm:$0xff]  }
 0x780   :  { %6453 = vmatprep.subr.bf16.mxu0 %v10512_v61  ;;  %v10599_v61 = vld [vmem:[#allocation8 + $0x16bc] ss:$24 sps:$4 sm:$0xff]  }
 0x78a   :  { %v11007_v45 = vpop.eup %11006 }
 0x78b   :  { %v5074_v52 = vsub.f32 1.0, %v11007_v45  ;;  %v5072_v59 = vmul.f32 %v11007_v45, %v5070_v53  ;;  %v10518_v45 = vld [vmem:[#allocation8 + $0x1624] ss:$24 sps:$4 sm:$0xff]  }
 0x78c   :  { %v11009_v49 = vpop.eup %11008  ;;  %v10530_v53 = vld [vmem:[#allocation8 + $0x15c4] ss:$24 sps:$4 sm:$0xff]  }
 0x78d   :  { %v5075_v58 = vsub.f32 1.0, %v11009_v49  ;;  %v5073_v62 = vmul.f32 %v11009_v49, %v5071_v55  ;;  %v10524_v49 = vld [vmem:[#allocation8 + $0x15f4] ss:$24 sps:$4 sm:$0xff]  }
 0x78e   :  { %v10533_v55 = vld [vmem:[#allocation8 + $0x15cc] ss:$24 sps:$4 sm:$0xff]  }
 0x7a8   :  { %v5051_v50 = vpop.f32.mrf.mxu0 }
 0x7a9   :  { %v5052_v51 = vadd.f32 %v5051_v50, %v4444_v44  ;;  %v10513_v44 = vld [vmem:[#allocation8 + $0x1658] ss:$24 sps:$4 sm:$0xff]  }
 0x7aa   :  { %v5053_v54 = vpop.f32.mrf.mxu0  ;;  %v10522_v50 = vld [vmem:[#allocation8 + $0x15f0] ss:$24 sps:$4 sm:$0xff]  }
 0x7ab   :  { %v5076_v56 = vmul.f32 %v5074_v52, %v5052_v51  ;;  %v5054_v57 = vadd.f32 %v5053_v54, %v4448_v48  ;;  %v10519_v48 = vld [vmem:[#allocation8 + $0x1628] ss:$24 sps:$4 sm:$0xff]   ;;  %v10527_v51 = vld [vmem:[#allocation8 + $0x15fc] ss:$24 sps:$4 sm:$0xff]   ;;  %v10525_v52 = vld [vmem:[#allocation8 + $0x15f8] ss:$24 sps:$4 sm:$0xff]  }
 0x7ac   :  { %v5055_v60 = vpop.f32.mrf.mxu0  ;;  %v10528_v54 = vld [vmem:[#allocation8 + $0x15c0] ss:$24 sps:$4 sm:$0xff]  }
 0x7ad   :  { %v5077_v1 = vmul.f32 %v5075_v58, %v5054_v57  ;;  %v5078_v2 = vadd.f32 %v5076_v56, %v5072_v59  ;;  %v10531_v56 = vld [vmem:[#allocation8 + $0x15c8] ss:$24 sps:$4 sm:$0xff]   ;;  %v10536_v57 = vld [vmem:[#allocation8 + $0x1594] ss:$24 sps:$4 sm:$0xff]   ;;  %v10537_v60 = vld [vmem:[#allocation8 + $0x1598] ss:$24 sps:$4 sm:$0xff]  }
 0x7ae   :  { %v5056_v3 = vpop.f32.mrf.mxu0  ;;  %v10534_v58 = vld [vmem:[#allocation8 + $0x1590] ss:$24 sps:$4 sm:$0xff]   ;;  %v10539_v59 = vld [vmem:[#allocation8 + $0x159c] ss:$24 sps:$4 sm:$0xff]  }
 0x7af   :  { %v5079_v4 = vadd.f32 %v5077_v1, %v5073_v62  ;;  %v11355_v7 = vpack.c.bf16 %v5078_v2, %v5078_v2  ;;  %v10542_v62 = vld [vmem:[#allocation8 + $0x1564] ss:$24 sps:$4 sm:$0xff]   ;;  %v10540_v1 = vld [vmem:[#allocation8 + $0x1560] ss:$24 sps:$4 sm:$0xff]  }
 0x7b0   :  { %v10545_v2 = vld [vmem:[#allocation8 + $0x156c] ss:$24 sps:$4 sm:$0xff]   ;;  %v10543_v3 = vld [vmem:[#allocation8 + $0x1568] ss:$24 sps:$4 sm:$0xff]  }
 0x7b1   :  { %v5081_v5 = vpack.c.bf16 %v5079_v4, %v5079_v4  ;;  %v10548_v4 = vld [vmem:[#allocation8 + $0x1534] ss:$24 sps:$4 sm:$0xff]  }
 0x7b3   :  { %5726 = vmatprep.mubr.bf16.mxu1 %v5081_v5  ;;  %5767 = vmatprep.mubr.bf16.mxu0 %v5081_v5 }
 0x7b4   :  { %5727 = vmatmul.mubr.bf16.vlgmr.msra.gmra.mxu1 %v11355_v7  ;;  %5768 = vmatmul.mubr.bf16.vlgmr.msra.gmra.mxu0 %v11355_v7 }
 0x7b5   :  { %5777 = vmatpush1.bf16.msra.mxu1 %v10462_v6  ;;  %5808 = vmatprep.mubr.bf16.mxu1 %v5081_v5  ;;  %v10546_v5 = vld [vmem:[#allocation8 + $0x1530] ss:$24 sps:$4 sm:$0xff]   ;;  %v10551_v6 = vld [vmem:[#allocation8 + $0x153c] ss:$24 sps:$4 sm:$0xff]  }
 0x7b6   :  { %5778 = vmatprep.subr.bf16.mxu1 %v10467_v8  ;;  %6454 = vmatpush1.bf16.msra.mxu0 %v10510_v42  ;;  %v10552_v8 = vld [vmem:[#allocation8 + $0x1500] ss:$24 sps:$4 sm:$0xff]  }
 0x7b7   :  { %6455 = vmatprep.subr.bf16.mxu0 %v10518_v45  ;;  %v10597_v42 = vld [vmem:[#allocation8 + $0x16b8] ss:$24 sps:$4 sm:$0xff]   ;;  %v10605_v45 = vld [vmem:[#allocation8 + $0x168c] ss:$24 sps:$4 sm:$0xff]  }
 0x7b9   :  { %5779 = vmatpush1.bf16.msra.mxu1 %v10465_v9  ;;  %v10554_v9 = vld [vmem:[#allocation8 + $0x1504] ss:$24 sps:$4 sm:$0xff]  }
 0x7ba   :  { %5780 = vmatprep.subr.bf16.mxu1 %v10470_v10  ;;  %6456 = vmatpush1.bf16.msra.mxu0 %v10516_v46  ;;  %v10555_v10 = vld [vmem:[#allocation8 + $0x1508] ss:$24 sps:$4 sm:$0xff]  }
 0x7bb   :  { %6457 = vmatprep.subr.bf16.mxu0 %v10524_v49  ;;  %v10603_v46 = vld [vmem:[#allocation8 + $0x1688] ss:$24 sps:$4 sm:$0xff]  }
 0x7bd   :  { %5781 = vmatpush1.bf16.msra.mxu1 %v10468_v11  ;;  %v10557_v11 = vld [vmem:[#allocation8 + $0x150c] ss:$24 sps:$4 sm:$0xff]  }
 0x7be   :  { %5782 = vmatprep.subr.bf16.mxu1 %v10473_v12  ;;  %6458 = vmatpush1.bf16.msra.mxu0 %v10522_v50  ;;  %v10560_v12 = vld [vmem:[#allocation8 + $0x17d4] ss:$24 sps:$4 sm:$0xff]  }
 0x7bf   :  { %6459 = vmatprep.subr.bf16.mxu0 %v10530_v53 }
 0x7c1   :  { %5783 = vmatpush1.bf16.msra.mxu1 %v10471_v13  ;;  %v10563_v13 = vld [vmem:[#allocation8 + $0x17dc] ss:$24 sps:$4 sm:$0xff]  }
 0x7c2   :  { %5784 = vmatprep.subr.bf16.mxu1 %v10476_v14  ;;  %6460 = vmatpush1.bf16.msra.mxu0 %v10528_v54  ;;  %v10558_v14 = vld [vmem:[#allocation8 + $0x17d0] ss:$24 sps:$4 sm:$0xff]  }
 0x7c3   :  { %6461 = vmatprep.subr.bf16.mxu0 %v10536_v57  ;;  %v5181_v57 = vld [vmem:[#allocation10 + $0x6] ss:$8 sm:$0x30] }
 0x7c5   :  { %5785 = vmatpush1.bf16.msra.mxu1 %v10474_v15  ;;  %v10561_v15 = vld [vmem:[#allocation8 + $0x17d8] ss:$24 sps:$4 sm:$0xff]  }
 0x7c6   :  { %5786 = vmatprep.subr.bf16.mxu1 %v10479_v16  ;;  %6462 = vmatpush1.bf16.msra.mxu0 %v10534_v58  ;;  %v10566_v16 = vld [vmem:[#allocation8 + $0x17a4] ss:$24 sps:$4 sm:$0xff]  }
 0x7c7   :  { %6463 = vmatprep.subr.bf16.mxu0 %v10542_v62 }
 0x7c9   :  { %5787 = vmatpush1.bf16.msra.mxu1 %v10477_v17  ;;  %v10569_v17 = vld [vmem:[#allocation8 + $0x17ac] ss:$24 sps:$4 sm:$0xff]  }
 0x7ca   :  { %5788 = vmatprep.subr.bf16.mxu1 %v10482_v18  ;;  %6464 = vmatpush1.bf16.msra.mxu0 %v10540_v1  ;;  %v10564_v18 = vld [vmem:[#allocation8 + $0x17a0] ss:$24 sps:$4 sm:$0xff]  }
 0x7cb   :  { %6465 = vmatprep.subr.bf16.mxu0 %v10548_v4 }
 0x7cd   :  { %5789 = vmatpush1.bf16.msra.mxu1 %v10480_v19  ;;  %v10567_v19 = vld [vmem:[#allocation8 + $0x17a8] ss:$24 sps:$4 sm:$0xff]  }
 0x7ce   :  { %5790 = vmatprep.subr.bf16.mxu1 %v10485_v23  ;;  %6466 = vmatpush1.bf16.msra.mxu0 %v10546_v5  ;;  %v10572_v23 = vld [vmem:[#allocation8 + $0x1774] ss:$24 sps:$4 sm:$0xff]  }
 0x7cf   :  { %6467 = vmatprep.subr.bf16.mxu0 %v10554_v9 }
 0x7d1   :  { %5791 = vmatpush1.bf16.msra.mxu1 %v10483_v24  ;;  %v10575_v24 = vld [vmem:[#allocation8 + $0x177c] ss:$24 sps:$4 sm:$0xff]  }
 0x7d2   :  { %5792 = vmatprep.subr.bf16.mxu1 %v10488_v26  ;;  %6468 = vmatpush1.bf16.msra.mxu0 %v10552_v8  ;;  %v10570_v26 = vld [vmem:[#allocation8 + $0x1770] ss:$24 sps:$4 sm:$0xff]  }
 0x7d3   :  { %6469 = vmatprep.subr.bf16.mxu0 %v10560_v12 }
 0x7d5   :  { %5793 = vmatpush2.bf16.msra.mxu1 %v10486_v27  ;;  %v10573_v27 = vld [vmem:[#allocation8 + $0x1778] ss:$24 sps:$4 sm:$0xff]  }
 0x7d6   :  { %5794 = vmatprep.subr.bf16.mxu1 %v10491_v28  ;;  %6470 = vmatpush2.bf16.msra.mxu0 %v10558_v14  ;;  %v10578_v28 = vld [vmem:[#allocation8 + $0x1744] ss:$24 sps:$4 sm:$0xff]  }
 0x7d7   :  { %6471 = vmatprep.subr.bf16.mxu0 %v10566_v16 }
 0x7d9   :  { %5795 = vmatpush2.bf16.msra.mxu1 %v10489_v29  ;;  %v10581_v29 = vld [vmem:[#allocation8 + $0x174c] ss:$24 sps:$4 sm:$0xff]  }
 0x7da   :  { %5796 = vmatprep.subr.bf16.mxu1 %v10494_v30  ;;  %6472 = vmatpush2.bf16.msra.mxu0 %v10564_v18  ;;  %v10576_v30 = vld [vmem:[#allocation8 + $0x1740] ss:$24 sps:$4 sm:$0xff]  }
 0x7db   :  { %6473 = vmatprep.subr.bf16.mxu0 %v10572_v23 }
 0x7dd   :  { %5797 = vmatpush2.bf16.msra.mxu1 %v10492_v31  ;;  %v10579_v31 = vld [vmem:[#allocation8 + $0x1748] ss:$24 sps:$4 sm:$0xff]  }
 0x7de   :  { %5798 = vmatprep.subr.bf16.mxu1 %v10497_v32  ;;  %6474 = vmatpush2.bf16.msra.mxu0 %v10570_v26  ;;  %v10584_v32 = vld [vmem:[#allocation8 + $0x1714] ss:$24 sps:$4 sm:$0xff]  }
 0x7df   :  { %6475 = vmatprep.subr.bf16.mxu0 %v10578_v28 }
 0x7e1   :  { %5799 = vmatpush2.bf16.msra.mxu1 %v10495_v33  ;;  %v10587_v33 = vld [vmem:[#allocation8 + $0x171c] ss:$24 sps:$4 sm:$0xff]  }
 0x7e2   :  { %5800 = vmatprep.subr.bf16.mxu1 %v10500_v34  ;;  %6476 = vmatpush2.bf16.msra.mxu0 %v10576_v30  ;;  %v10582_v34 = vld [vmem:[#allocation8 + $0x1710] ss:$24 sps:$4 sm:$0xff]  }
 0x7e3   :  { %6477 = vmatprep.subr.bf16.mxu0 %v10584_v32 }
 0x7e5   :  { %5801 = vmatpush2.bf16.msra.mxu1 %v10498_v35  ;;  %v10585_v35 = vld [vmem:[#allocation8 + $0x1718] ss:$24 sps:$4 sm:$0xff]  }
 0x7e6   :  { %5802 = vmatprep.subr.bf16.mxu1 %v10503_v36  ;;  %v10590_v36 = vld [vmem:[#allocation8 + $0x16e4] ss:$24 sps:$4 sm:$0xff]   ;;  %6478 = vmatpush2.bf16.msra.mxu0 %v10582_v34 }
 0x7e7   :  { %6479 = vmatprep.subr.bf16.mxu0 %v10590_v36 }
 0x7e9   :  { %5803 = vmatpush2.bf16.msra.mxu1 %v10501_v37  ;;  %v10588_v37 = vld [vmem:[#allocation8 + $0x16e0] ss:$24 sps:$4 sm:$0xff]  }
 0x7ea   :  { %5804 = vmatprep.subr.bf16.mxu1 %v10506_v38  ;;  %v10593_v38 = vld [vmem:[#allocation8 + $0x16ec] ss:$24 sps:$4 sm:$0xff]   ;;  %6480 = vmatpush2.bf16.msra.mxu0 %v10588_v37  ;;  %v10606_v37 = vld [vmem:[#allocation8 + $0x1660] ss:$24 sps:$4 sm:$0xff]  }
 0x7ed   :  { %5805 = vmatpush2.bf16.msra.mxu1 %v10504_v39  ;;  %v10591_v39 = vld [vmem:[#allocation8 + $0x16e8] ss:$24 sps:$4 sm:$0xff]  }
 0x7ee   :  { %5806 = vmatprep.subr.bf16.mxu1 %v10509_v40  ;;  %v10596_v40 = vld [vmem:[#allocation8 + $0x16b4] ss:$24 sps:$4 sm:$0xff]  }
 0x7ef   :  { %6481 = vmatprep.subr.bf16.mxu0 %v10596_v40  ;;  %v10609_v40 = vld [vmem:[#allocation8 + $0x1630] ss:$24 sps:$4 sm:$0xff]  }
 0x7f1   :  { %5807 = vmatpush2.bf16.msra.mxu1 %v10507_v41  ;;  %v10594_v41 = vld [vmem:[#allocation8 + $0x16b0] ss:$24 sps:$4 sm:$0xff]  }
 0x7f2   :  { %6494 = vmatprep.subr.bf16.mxu1 %v10515_v43  ;;  %6482 = vmatpush2.bf16.msra.mxu0 %v10594_v41  ;;  %v10602_v43 = vld [vmem:[#allocation8 + $0x1684] ss:$24 sps:$4 sm:$0xff]  }
 0x7f3   :  { %6483 = vmatprep.subr.bf16.mxu0 %v10602_v43  ;;  %v10614_v41 = vld [vmem:[#allocation8 + $0x1604] ss:$24 sps:$4 sm:$0xff]   ;;  %v10615_v43 = vld [vmem:[#allocation8 + $0x15d0] ss:$24 sps:$4 sm:$0xff]  }
 0x7f4   :  { %5809 = vmatmul.mubr.bf16.vlgmr.msra.gmra.mxu1 %v11355_v7  ;;  %v10549_v7 = vld [vmem:[#allocation8 + $0x1538] ss:$24 sps:$4 sm:$0xff]  }
 0x7f5   :  { %6495 = vmatpush1.bf16.msra.mxu1 %v10513_v44  ;;  %v10600_v44 = vld [vmem:[#allocation8 + $0x1680] ss:$24 sps:$4 sm:$0xff]  }
 0x7f6   :  { %6496 = vmatprep.subr.bf16.mxu1 %v10521_v47  ;;  %6484 = vmatpush2.bf16.msra.mxu0 %v10600_v44  ;;  %v10608_v47 = vld [vmem:[#allocation8 + $0x1664] ss:$24 sps:$4 sm:$0xff]  }
 0x7f7   :  { %6535 = vmatprep.subr.bf16.mxu0 %v10608_v47  ;;  %v10620_v44 = vld [vmem:[#allocation8 + $0x15a4] ss:$24 sps:$4 sm:$0xff]   ;;  %v10621_v47 = vld [vmem:[#allocation8 + $0x1570] ss:$24 sps:$4 sm:$0xff]  }
 0x7f9   :  { %6497 = vmatpush1.bf16.msra.mxu1 %v10519_v48 }
 0x7fa   :  { %6498 = vmatprep.subr.bf16.mxu1 %v10527_v51 }
 0x7fd   :  { %6499 = vmatpush1.bf16.msra.mxu1 %v10525_v52 }
 0x7fe   :  { %6500 = vmatprep.subr.bf16.mxu1 %v10533_v55 }
 0x801   :  { %6501 = vmatpush1.bf16.msra.mxu1 %v10531_v56  ;;  %v5180_v56 = vld [vmem:[#allocation10 + $0x6] ss:$8 sm:$0xf] }
 0x802   :  { %6502 = vmatprep.subr.bf16.mxu1 %v10539_v59  ;;  %v5182_v58 = vor.u32 %v5181_v57, %v5180_v56  ;;  %v10638_v56 = vld [vmem:[#allocation8 + $0x1784] ss:$24 sps:$4 sm:$0xff]   ;;  %v10636_v57 = vld [vmem:[#allocation8 + $0x1780] ss:$24 sps:$4 sm:$0xff]  }
 0x804   :  { %v5187_v59 = vrot.slane %v5182_v58, %v11266_v63  ;;  %v5195_v8 = vrot.slane %v5182_v58, %v11285_v20  ;;  %v5199_v9 = vrot.slane %v5182_v58, %v11288_v21  ;;  %v5207_v14 = vrot.slane %v5182_v58, %v11296_v25 }
 0x805   :  { %6503 = vmatpush1.bf16.msra.mxu1 %v10537_v60  ;;  %v5191_v60 = vrot.slane %v5182_v58, %v11269_v0 }
 0x806   :  { %6504 = vmatprep.subr.bf16.mxu1 %v10545_v2 }
 0x809   :  { %6505 = vmatpush1.bf16.msra.mxu1 %v10543_v3 }
 0x80a   :  { %6506 = vmatprep.subr.bf16.mxu1 %v10551_v6 }
 0x80d   :  { %6507 = vmatpush1.bf16.msra.mxu1 %v10549_v7 }
 0x80e   :  { %6508 = vmatprep.subr.bf16.mxu1 %v10557_v11 }
 0x811   :  { %6509 = vmatpush1.bf16.msra.mxu1 %v10555_v10  ;;  %v5203_v10 = vrot.slane %v5182_v58, %v11291_v22  ;;  %v10641_v58 = vld [vmem:[#allocation8 + $0x1754] ss:$24 sps:$4 sm:$0xff]  }
 0x812   :  { %6510 = vmatprep.subr.bf16.mxu1 %v10563_v13 }
 0x815   :  { %6511 = vmatpush2.bf16.msra.mxu1 %v10561_v15 }
 0x816   :  { %6512 = vmatprep.subr.bf16.mxu1 %v10569_v17 }
 0x819   :  { %6513 = vmatpush2.bf16.msra.mxu1 %v10567_v19 }
 0x81a   :  { %6514 = vmatprep.subr.bf16.mxu1 %v10575_v24 }
 0x81d   :  { %6515 = vmatpush2.bf16.msra.mxu1 %v10573_v27 }
 0x81e   :  { %6516 = vmatprep.subr.bf16.mxu1 %v10581_v29 }
 0x821   :  { %6517 = vmatpush2.bf16.msra.mxu1 %v10579_v31 }
 0x822   :  { %6518 = vmatprep.subr.bf16.mxu1 %v10587_v33 }
 0x825   :  { %6519 = vmatpush2.bf16.msra.mxu1 %v10585_v35 }
 0x826   :  { %6520 = vmatprep.subr.bf16.mxu1 %v10593_v38 }
 0x829   :  { %6521 = vmatpush2.bf16.msra.mxu1 %v10591_v39  ;;  %v10611_v39 = vld [vmem:[#allocation8 + $0x1634] ss:$24 sps:$4 sm:$0xff]  }
 0x82a   :  { %6522 = vmatprep.subr.bf16.mxu1 %v10599_v61  ;;  %v10612_v61 = vld [vmem:[#allocation8 + $0x1600] ss:$24 sps:$4 sm:$0xff]  }
 0x82d   :  { %6523 = vmatpush2.bf16.msra.mxu1 %v10597_v42  ;;  %v10617_v42 = vld [vmem:[#allocation8 + $0x15d4] ss:$24 sps:$4 sm:$0xff]  }
 0x82e   :  { %6524 = vmatprep.subr.bf16.mxu1 %v10605_v45  ;;  %v10618_v45 = vld [vmem:[#allocation8 + $0x15a0] ss:$24 sps:$4 sm:$0xff]  }
 0x831   :  { %6525 = vmatpush2.bf16.msra.mxu1 %v10603_v46  ;;  %v10623_v46 = vld [vmem:[#allocation8 + $0x1574] ss:$24 sps:$4 sm:$0xff]  }
 0x874   :  { %v5728_v48 = vpop.f32.mrf.mxu1  ;;  %v5769_v49 = vpop.f32.mrf.mxu0 }
 0x875   :  { %v5729_v62 = vadd.f32 %v5728_v48, %v5187_v59  ;;  %v5770_v12 = vadd.f32 %v5769_v49, %v5195_v8  ;;  %v10626_v48 = vld [vmem:[#allocation8 + $0x1544] ss:$24 sps:$4 sm:$0xff]   ;;  %v10624_v49 = vld [vmem:[#allocation8 + $0x1540] ss:$24 sps:$4 sm:$0xff]   ;;  %v10639_v59 = vld [vmem:[#allocation8 + $0x1750] ss:$24 sps:$4 sm:$0xff]  }
 0x876   :  { %v5730_v50 = vpop.f32.mrf.mxu1  ;;  %v5771_v51 = vpop.f32.mrf.mxu0  ;;  %v10654_v8 = vld [vmem:[#allocation8 + $0x1950] ss:$24 sps:$4 sm:$0xff]  }
 0x877   :  { %v5731_v1 = vadd.f32 %v5730_v50, %v5191_v60  ;;  %v9080_v2 = vmul.f32 -1.442695, %v5729_v62  ;;  %v5772_v13 = vadd.f32 %v5771_v51, %v5199_v9  ;;  %v5829_v19 = vmax.f32 %v5770_v12, 0.0  ;;  %v10629_v50 = vld [vmem:[#allocation8 + $0x1514] ss:$24 sps:$4 sm:$0xff]  }
 0x878   :  { %v5732_v52 = vpop.f32.mrf.mxu1  ;;  %v5773_v53 = vpop.f32.mrf.mxu0  ;;  %v10627_v51 = vld [vmem:[#allocation8 + $0x1510] ss:$24 sps:$4 sm:$0xff]   ;;  %v10644_v60 = vld [vmem:[#allocation8 + $0x1724] ss:$24 sps:$4 sm:$0xff]   ;;  %v10642_v62 = vld [vmem:[#allocation8 + $0x1720] ss:$24 sps:$4 sm:$0xff]  }
 0x879   :  { %v9081_v3 = vmul.f32 -1.442695, %v5731_v1  ;;  %11010 = vpow2.f32 %v9080_v2  ;;  %v5830_v24 = vmax.f32 %v5772_v13, 0.0  ;;  %v10632_v52 = vld [vmem:[#allocation8 + $0x17e4] ss:$24 sps:$4 sm:$0xff]  }
 0x87a   :  { %v5733_v54 = vpop.f32.mrf.mxu1  ;;  %v5774_v55 = vpop.f32.mrf.mxu0  ;;  %v10630_v53 = vld [vmem:[#allocation8 + $0x17e0] ss:$24 sps:$4 sm:$0xff]   ;;  %v10647_v1 = vld [vmem:[#allocation8 + $0x16f4] ss:$24 sps:$4 sm:$0xff]   ;;  %v10645_v2 = vld [vmem:[#allocation8 + $0x16f0] ss:$24 sps:$4 sm:$0xff]  }
 0x87b   :  { %11012 = vpow2.f32 %v9081_v3  ;;  %v10635_v54 = vld [vmem:[#allocation8 + $0x17b4] ss:$24 sps:$4 sm:$0xff]   ;;  %v10633_v55 = vld [vmem:[#allocation8 + $0x17b0] ss:$24 sps:$4 sm:$0xff]   ;;  %v10650_v3 = vld [vmem:[#allocation8 + $0x16c4] ss:$24 sps:$4 sm:$0xff]  }
 0x87c   :  { %v10659_v9 = vld [vmem:[#allocation8 + $0x195c] ss:$24 sps:$4 sm:$0xff]   ;;  %v10660_v12 = vld [vmem:[#allocation8 + $0x1920] ss:$24 sps:$4 sm:$0xff]   ;;  %v10665_v13 = vld [vmem:[#allocation8 + $0x192c] ss:$24 sps:$4 sm:$0xff]  }
 0x886   :  { %v11011_v4 = vpop.eup %11010 }
 0x887   :  { %v5823_v6 = vadd.f32 1.0, %v11011_v4  ;;  %v10648_v4 = vld [vmem:[#allocation8 + $0x16c0] ss:$24 sps:$4 sm:$0xff]  }
 0x888   :  { %v11013_v5 = vpop.eup %11012 }
 0x889   :  { %v5824_v7 = vadd.f32 1.0, %v11013_v5  ;;  %11014 = vrcp.f32 %v5823_v6  ;;  %v10653_v5 = vld [vmem:[#allocation8 + $0x1694] ss:$24 sps:$4 sm:$0xff]   ;;  %v10651_v6 = vld [vmem:[#allocation8 + $0x1690] ss:$24 sps:$4 sm:$0xff]  }
 0x88b   :  { %11016 = vrcp.f32 %v5824_v7  ;;  %v10656_v7 = vld [vmem:[#allocation8 + $0x1954] ss:$24 sps:$4 sm:$0xff]  }
 0x88c   :  { %7212 = vmatprep.subr.bf16.mxu1 %v10656_v7  ;;  %v10743_v7 = vld [vmem:[#allocation8 + $0x19bc] ss:$24 sps:$4 sm:$0xff]  }
 0x896   :  { %v11015_v11 = vpop.eup %11014 }
 0x897   :  { %v5833_v18 = vsub.f32 1.0, %v11015_v11  ;;  %v5831_v29 = vmul.f32 %v11015_v11, %v5829_v19  ;;  %v10662_v11 = vld [vmem:[#allocation8 + $0x1924] ss:$24 sps:$4 sm:$0xff]  }
 0x898   :  { %v11017_v15 = vpop.eup %11016  ;;  %v10674_v19 = vld [vmem:[#allocation8 + $0x18c4] ss:$24 sps:$4 sm:$0xff]  }
 0x899   :  { %v5834_v28 = vsub.f32 1.0, %v11017_v15  ;;  %v5832_v31 = vmul.f32 %v11017_v15, %v5830_v24  ;;  %v10668_v15 = vld [vmem:[#allocation8 + $0x18f4] ss:$24 sps:$4 sm:$0xff]  }
 0x89a   :  { %v10677_v24 = vld [vmem:[#allocation8 + $0x18cc] ss:$24 sps:$4 sm:$0xff]  }
 0x8b4   :  { %v5810_v16 = vpop.f32.mrf.mxu1 }
 0x8b5   :  { %v5811_v17 = vadd.f32 %v5810_v16, %v5203_v10  ;;  %v10657_v10 = vld [vmem:[#allocation8 + $0x1958] ss:$24 sps:$4 sm:$0xff]  }
 0x8b6   :  { %v5812_v23 = vpop.f32.mrf.mxu1  ;;  %v10666_v16 = vld [vmem:[#allocation8 + $0x18f0] ss:$24 sps:$4 sm:$0xff]  }
 0x8b7   :  { %v5835_v26 = vmul.f32 %v5833_v18, %v5811_v17  ;;  %v5813_v27 = vadd.f32 %v5812_v23, %v5207_v14  ;;  %v10663_v14 = vld [vmem:[#allocation8 + $0x1928] ss:$24 sps:$4 sm:$0xff]   ;;  %v10671_v17 = vld [vmem:[#allocation8 + $0x18fc] ss:$24 sps:$4 sm:$0xff]   ;;  %v10669_v18 = vld [vmem:[#allocation8 + $0x18f8] ss:$24 sps:$4 sm:$0xff]  }
 0x8b8   :  { %v5814_v30 = vpop.f32.mrf.mxu1  ;;  %v10672_v23 = vld [vmem:[#allocation8 + $0x18c0] ss:$24 sps:$4 sm:$0xff]  }
 0x8b9   :  { %v5836_v32 = vmul.f32 %v5834_v28, %v5813_v27  ;;  %v5837_v33 = vadd.f32 %v5835_v26, %v5831_v29  ;;  %v10675_v26 = vld [vmem:[#allocation8 + $0x18c8] ss:$24 sps:$4 sm:$0xff]   ;;  %v10680_v27 = vld [vmem:[#allocation8 + $0x1894] ss:$24 sps:$4 sm:$0xff]   ;;  %v10681_v30 = vld [vmem:[#allocation8 + $0x1898] ss:$24 sps:$4 sm:$0xff]  }
 0x8ba   :  { %v5815_v34 = vpop.f32.mrf.mxu1  ;;  %v10678_v28 = vld [vmem:[#allocation8 + $0x1890] ss:$24 sps:$4 sm:$0xff]   ;;  %v10683_v29 = vld [vmem:[#allocation8 + $0x189c] ss:$24 sps:$4 sm:$0xff]  }
 0x8bb   :  { %v5838_v35 = vadd.f32 %v5836_v32, %v5832_v31  ;;  %v11366_v38 = vpack.c.bf16 %v5837_v33, %v5837_v33  ;;  %v10686_v31 = vld [vmem:[#allocation8 + $0x1864] ss:$24 sps:$4 sm:$0xff]   ;;  %v10684_v32 = vld [vmem:[#allocation8 + $0x1860] ss:$24 sps:$4 sm:$0xff]  }
 0x8bc   :  { %v10689_v33 = vld [vmem:[#allocation8 + $0x186c] ss:$24 sps:$4 sm:$0xff]   ;;  %v10687_v34 = vld [vmem:[#allocation8 + $0x1868] ss:$24 sps:$4 sm:$0xff]  }
 0x8bd   :  { %v5840_v36 = vpack.c.bf16 %v5838_v35, %v5838_v35  ;;  %v10692_v35 = vld [vmem:[#allocation8 + $0x1834] ss:$24 sps:$4 sm:$0xff]  }
 0x8bf   :  { %6485 = vmatprep.mubr.bf16.mxu0 %v5840_v36  ;;  %6526 = vmatprep.mubr.bf16.mxu1 %v5840_v36 }
 0x8c0   :  { %6486 = vmatmul.mubr.bf16.vlgmr.msra.gmra.mxu0 %v11366_v38  ;;  %6527 = vmatmul.mubr.bf16.vlgmr.msra.gmra.mxu1 %v11366_v38 }
 0x8c1   :  { %6536 = vmatpush1.bf16.msra.mxu0 %v10606_v37  ;;  %6567 = vmatprep.mubr.bf16.mxu0 %v5840_v36  ;;  %v10690_v36 = vld [vmem:[#allocation8 + $0x1830] ss:$24 sps:$4 sm:$0xff]   ;;  %v10695_v37 = vld [vmem:[#allocation8 + $0x183c] ss:$24 sps:$4 sm:$0xff]  }
 0x8c2   :  { %6537 = vmatprep.subr.bf16.mxu0 %v10611_v39  ;;  %7213 = vmatpush1.bf16.msra.mxu1 %v10654_v8  ;;  %v10696_v39 = vld [vmem:[#allocation8 + $0x1800] ss:$24 sps:$4 sm:$0xff]  }
 0x8c3   :  { %7214 = vmatprep.subr.bf16.mxu1 %v10662_v11  ;;  %v10741_v8 = vld [vmem:[#allocation8 + $0x19b8] ss:$24 sps:$4 sm:$0xff]   ;;  %v10749_v11 = vld [vmem:[#allocation8 + $0x198c] ss:$24 sps:$4 sm:$0xff]  }
 0x8c5   :  { %6538 = vmatpush1.bf16.msra.mxu0 %v10609_v40  ;;  %v10698_v40 = vld [vmem:[#allocation8 + $0x1804] ss:$24 sps:$4 sm:$0xff]  }
 0x8c6   :  { %6539 = vmatprep.subr.bf16.mxu0 %v10614_v41  ;;  %7215 = vmatpush1.bf16.msra.mxu1 %v10660_v12  ;;  %v10699_v41 = vld [vmem:[#allocation8 + $0x1808] ss:$24 sps:$4 sm:$0xff]  }
 0x8c7   :  { %7216 = vmatprep.subr.bf16.mxu1 %v10668_v15  ;;  %v10747_v12 = vld [vmem:[#allocation8 + $0x1988] ss:$24 sps:$4 sm:$0xff]  }
 0x8c9   :  { %6540 = vmatpush1.bf16.msra.mxu0 %v10612_v61  ;;  %v10701_v61 = vld [vmem:[#allocation8 + $0x180c] ss:$24 sps:$4 sm:$0xff]  }
 0x8ca   :  { %6541 = vmatprep.subr.bf16.mxu0 %v10617_v42  ;;  %7217 = vmatpush1.bf16.msra.mxu1 %v10666_v16  ;;  %v10704_v42 = vld [vmem:[#allocation8 + $0x1ad4] ss:$24 sps:$4 sm:$0xff]  }
 0x8cb   :  { %7218 = vmatprep.subr.bf16.mxu1 %v10674_v19 }
 0x8cd   :  { %6542 = vmatpush1.bf16.msra.mxu0 %v10615_v43  ;;  %v10707_v43 = vld [vmem:[#allocation8 + $0x1adc] ss:$24 sps:$4 sm:$0xff]  }
 0x8ce   :  { %6543 = vmatprep.subr.bf16.mxu0 %v10620_v44  ;;  %7219 = vmatpush1.bf16.msra.mxu1 %v10672_v23  ;;  %v10702_v44 = vld [vmem:[#allocation8 + $0x1ad0] ss:$24 sps:$4 sm:$0xff]  }
 0x8cf   :  { %7220 = vmatprep.subr.bf16.mxu1 %v10680_v27  ;;  %v5940_v27 = vld [vmem:[#allocation10 + $0x7] ss:$8 sm:$0x30] }
 0x8d1   :  { %6544 = vmatpush1.bf16.msra.mxu0 %v10618_v45  ;;  %v10705_v45 = vld [vmem:[#allocation8 + $0x1ad8] ss:$24 sps:$4 sm:$0xff]  }
 0x8d2   :  { %6545 = vmatprep.subr.bf16.mxu0 %v10623_v46  ;;  %7221 = vmatpush1.bf16.msra.mxu1 %v10678_v28  ;;  %v10710_v46 = vld [vmem:[#allocation8 + $0x1aa4] ss:$24 sps:$4 sm:$0xff]  }
 0x8d3   :  { %7222 = vmatprep.subr.bf16.mxu1 %v10686_v31 }
 0x8d5   :  { %6546 = vmatpush1.bf16.msra.mxu0 %v10621_v47  ;;  %v10713_v47 = vld [vmem:[#allocation8 + $0x1aac] ss:$24 sps:$4 sm:$0xff]  }
 0x8d6   :  { %6547 = vmatprep.subr.bf16.mxu0 %v10626_v48  ;;  %7223 = vmatpush1.bf16.msra.mxu1 %v10684_v32  ;;  %v10708_v48 = vld [vmem:[#allocation8 + $0x1aa0] ss:$24 sps:$4 sm:$0xff]  }
 0x8d7   :  { %7224 = vmatprep.subr.bf16.mxu1 %v10692_v35 }
 0x8d9   :  { %6548 = vmatpush1.bf16.msra.mxu0 %v10624_v49  ;;  %v10711_v49 = vld [vmem:[#allocation8 + $0x1aa8] ss:$24 sps:$4 sm:$0xff]  }
 0x8da   :  { %6549 = vmatprep.subr.bf16.mxu0 %v10629_v50  ;;  %7225 = vmatpush1.bf16.msra.mxu1 %v10690_v36  ;;  %v10716_v50 = vld [vmem:[#allocation8 + $0x1a74] ss:$24 sps:$4 sm:$0xff]  }
 0x8db   :  { %7226 = vmatprep.subr.bf16.mxu1 %v10698_v40 }
 0x8dd   :  { %6550 = vmatpush1.bf16.msra.mxu0 %v10627_v51  ;;  %v10719_v51 = vld [vmem:[#allocation8 + $0x1a7c] ss:$24 sps:$4 sm:$0xff]  }
 0x8de   :  { %6551 = vmatprep.subr.bf16.mxu0 %v10632_v52  ;;  %7227 = vmatpush1.bf16.msra.mxu1 %v10696_v39  ;;  %v10714_v52 = vld [vmem:[#allocation8 + $0x1a70] ss:$24 sps:$4 sm:$0xff]  }
 0x8df   :  { %7228 = vmatprep.subr.bf16.mxu1 %v10704_v42 }
 0x8e1   :  { %6552 = vmatpush2.bf16.msra.mxu0 %v10630_v53  ;;  %v10717_v53 = vld [vmem:[#allocation8 + $0x1a78] ss:$24 sps:$4 sm:$0xff]  }
 0x8e2   :  { %6553 = vmatprep.subr.bf16.mxu0 %v10635_v54  ;;  %7229 = vmatpush2.bf16.msra.mxu1 %v10702_v44  ;;  %v10722_v54 = vld [vmem:[#allocation8 + $0x1a44] ss:$24 sps:$4 sm:$0xff]  }
 0x8e3   :  { %7230 = vmatprep.subr.bf16.mxu1 %v10710_v46 }
 0x8e5   :  { %6554 = vmatpush2.bf16.msra.mxu0 %v10633_v55  ;;  %v10725_v55 = vld [vmem:[#allocation8 + $0x1a4c] ss:$24 sps:$4 sm:$0xff]  }
 0x8e6   :  { %6555 = vmatprep.subr.bf16.mxu0 %v10638_v56  ;;  %7231 = vmatpush2.bf16.msra.mxu1 %v10708_v48  ;;  %v10720_v56 = vld [vmem:[#allocation8 + $0x1a40] ss:$24 sps:$4 sm:$0xff]  }
 0x8e7   :  { %7232 = vmatprep.subr.bf16.mxu1 %v10716_v50 }
 0x8e9   :  { %6556 = vmatpush2.bf16.msra.mxu0 %v10636_v57  ;;  %v10723_v57 = vld [vmem:[#allocation8 + $0x1a48] ss:$24 sps:$4 sm:$0xff]  }
 0x8ea   :  { %6557 = vmatprep.subr.bf16.mxu0 %v10641_v58  ;;  %7233 = vmatpush2.bf16.msra.mxu1 %v10714_v52  ;;  %v10728_v58 = vld [vmem:[#allocation8 + $0x1a14] ss:$24 sps:$4 sm:$0xff]  }
 0x8eb   :  { %7234 = vmatprep.subr.bf16.mxu1 %v10722_v54 }
 0x8ed   :  { %6558 = vmatpush2.bf16.msra.mxu0 %v10639_v59  ;;  %v10731_v59 = vld [vmem:[#allocation8 + $0x1a1c] ss:$24 sps:$4 sm:$0xff]  }
 0x8ee   :  { %6559 = vmatprep.subr.bf16.mxu0 %v10644_v60  ;;  %7235 = vmatpush2.bf16.msra.mxu1 %v10720_v56  ;;  %v10726_v60 = vld [vmem:[#allocation8 + $0x1a10] ss:$24 sps:$4 sm:$0xff]  }
 0x8ef   :  { %7236 = vmatprep.subr.bf16.mxu1 %v10728_v58 }
 0x8f1   :  { %6560 = vmatpush2.bf16.msra.mxu0 %v10642_v62  ;;  %v10729_v62 = vld [vmem:[#allocation8 + $0x1a18] ss:$24 sps:$4 sm:$0xff]  }
 0x8f2   :  { %6561 = vmatprep.subr.bf16.mxu0 %v10647_v1  ;;  %v10734_v1 = vld [vmem:[#allocation8 + $0x19e4] ss:$24 sps:$4 sm:$0xff]   ;;  %7237 = vmatpush2.bf16.msra.mxu1 %v10726_v60 }
 0x8f3   :  { %7238 = vmatprep.subr.bf16.mxu1 %v10734_v1 }
 0x8f5   :  { %6562 = vmatpush2.bf16.msra.mxu0 %v10645_v2  ;;  %v10732_v2 = vld [vmem:[#allocation8 + $0x19e0] ss:$24 sps:$4 sm:$0xff]  }
 0x8f6   :  { %6563 = vmatprep.subr.bf16.mxu0 %v10650_v3  ;;  %v10737_v3 = vld [vmem:[#allocation8 + $0x19ec] ss:$24 sps:$4 sm:$0xff]   ;;  %7239 = vmatpush2.bf16.msra.mxu1 %v10732_v2  ;;  %v10750_v2 = vld [vmem:[#allocation8 + $0x1960] ss:$24 sps:$4 sm:$0xff]  }
 0x8f9   :  { %6564 = vmatpush2.bf16.msra.mxu0 %v10648_v4  ;;  %v10735_v4 = vld [vmem:[#allocation8 + $0x19e8] ss:$24 sps:$4 sm:$0xff]  }
 0x8fa   :  { %6565 = vmatprep.subr.bf16.mxu0 %v10653_v5  ;;  %v10740_v5 = vld [vmem:[#allocation8 + $0x19b4] ss:$24 sps:$4 sm:$0xff]  }
 0x8fb   :  { %7240 = vmatprep.subr.bf16.mxu1 %v10740_v5  ;;  %v10753_v5 = vld [vmem:[#allocation8 + $0x1930] ss:$24 sps:$4 sm:$0xff]  }
 0x8fd   :  { %6566 = vmatpush2.bf16.msra.mxu0 %v10651_v6  ;;  %v10738_v6 = vld [vmem:[#allocation8 + $0x19b0] ss:$24 sps:$4 sm:$0xff]  }
 0x8fe   :  { %7253 = vmatprep.subr.bf16.mxu0 %v10659_v9  ;;  %7241 = vmatpush2.bf16.msra.mxu1 %v10738_v6  ;;  %v10746_v9 = vld [vmem:[#allocation8 + $0x1984] ss:$24 sps:$4 sm:$0xff]  }
 0x8ff   :  { %7242 = vmatprep.subr.bf16.mxu1 %v10746_v9  ;;  %v10758_v6 = vld [vmem:[#allocation8 + $0x1904] ss:$24 sps:$4 sm:$0xff]   ;;  %v10759_v9 = vld [vmem:[#allocation8 + $0x18d0] ss:$24 sps:$4 sm:$0xff]  }
 0x900   :  { %6568 = vmatmul.mubr.bf16.vlgmr.msra.gmra.mxu0 %v11366_v38  ;;  %v10693_v38 = vld [vmem:[#allocation8 + $0x1838] ss:$24 sps:$4 sm:$0xff]  }
 0x901   :  { %7254 = vmatpush1.bf16.msra.mxu0 %v10657_v10  ;;  %v10744_v10 = vld [vmem:[#allocation8 + $0x1980] ss:$24 sps:$4 sm:$0xff]  }
 0x902   :  { %7255 = vmatprep.subr.bf16.mxu0 %v10665_v13  ;;  %7243 = vmatpush2.bf16.msra.mxu1 %v10744_v10  ;;  %v10752_v13 = vld [vmem:[#allocation8 + $0x1964] ss:$24 sps:$4 sm:$0xff]  }
 0x903   :  { %7294 = vmatprep.subr.bf16.mxu1 %v10752_v13  ;;  %v10764_v10 = vld [vmem:[#allocation8 + $0x18a4] ss:$24 sps:$4 sm:$0xff]   ;;  %v10765_v13 = vld [vmem:[#allocation8 + $0x1870] ss:$24 sps:$4 sm:$0xff]  }
 0x905   :  { %7256 = vmatpush1.bf16.msra.mxu0 %v10663_v14 }
 0x906   :  { %7257 = vmatprep.subr.bf16.mxu0 %v10671_v17 }
 0x909   :  { %7258 = vmatpush1.bf16.msra.mxu0 %v10669_v18 }
 0x90a   :  { %7259 = vmatprep.subr.bf16.mxu0 %v10677_v24 }
 0x90d   :  { %7260 = vmatpush1.bf16.msra.mxu0 %v10675_v26  ;;  %v5939_v26 = vld [vmem:[#allocation10 + $0x7] ss:$8 sm:$0xf] }
 0x90e   :  { %7261 = vmatprep.subr.bf16.mxu0 %v10683_v29  ;;  %v5941_v28 = vor.u32 %v5940_v27, %v5939_v26  ;;  %v10782_v26 = vld [vmem:[#allocation8 + $0x1a84] ss:$24 sps:$4 sm:$0xff]   ;;  %v10780_v27 = vld [vmem:[#allocation8 + $0x1a80] ss:$24 sps:$4 sm:$0xff]  }
 0x910   :  { %v5946_v29 = vrot.slane %v5941_v28, %v11266_v63  ;;  %v5954_v39 = vrot.slane %v5941_v28, %v11285_v20  ;;  %v5958_v40 = vrot.slane %v5941_v28, %v11288_v21  ;;  %v5966_v44 = vrot.slane %v5941_v28, %v11296_v25 }
 0x911   :  { %7262 = vmatpush1.bf16.msra.mxu0 %v10681_v30  ;;  %v5950_v30 = vrot.slane %v5941_v28, %v11269_v0 }
 0x912   :  { %7263 = vmatprep.subr.bf16.mxu0 %v10689_v33 }
 0x915   :  { %7264 = vmatpush1.bf16.msra.mxu0 %v10687_v34 }
 0x916   :  { %7265 = vmatprep.subr.bf16.mxu0 %v10695_v37 }
 0x919   :  { %7266 = vmatpush1.bf16.msra.mxu0 %v10693_v38 }
 0x91a   :  { %7267 = vmatprep.subr.bf16.mxu0 %v10701_v61 }
 0x91d   :  { %7268 = vmatpush1.bf16.msra.mxu0 %v10699_v41  ;;  %v5962_v41 = vrot.slane %v5941_v28, %v11291_v22  ;;  %v10785_v28 = vld [vmem:[#allocation8 + $0x1a54] ss:$24 sps:$4 sm:$0xff]  }
 0x91e   :  { %7269 = vmatprep.subr.bf16.mxu0 %v10707_v43 }
 0x921   :  { %7270 = vmatpush2.bf16.msra.mxu0 %v10705_v45 }
 0x922   :  { %7271 = vmatprep.subr.bf16.mxu0 %v10713_v47 }
 0x925   :  { %7272 = vmatpush2.bf16.msra.mxu0 %v10711_v49 }
 0x926   :  { %7273 = vmatprep.subr.bf16.mxu0 %v10719_v51 }
 0x929   :  { %7274 = vmatpush2.bf16.msra.mxu0 %v10717_v53 }
 0x92a   :  { %7275 = vmatprep.subr.bf16.mxu0 %v10725_v55 }
 0x92d   :  { %7276 = vmatpush2.bf16.msra.mxu0 %v10723_v57 }
 0x92e   :  { %7277 = vmatprep.subr.bf16.mxu0 %v10731_v59 }
 0x931   :  { %7278 = vmatpush2.bf16.msra.mxu0 %v10729_v62 }
 0x932   :  { %7279 = vmatprep.subr.bf16.mxu0 %v10737_v3 }
 0x935   :  { %7280 = vmatpush2.bf16.msra.mxu0 %v10735_v4  ;;  %v10755_v4 = vld [vmem:[#allocation8 + $0x1934] ss:$24 sps:$4 sm:$0xff]  }
 0x936   :  { %7281 = vmatprep.subr.bf16.mxu0 %v10743_v7  ;;  %v10756_v7 = vld [vmem:[#allocation8 + $0x1900] ss:$24 sps:$4 sm:$0xff]  }
 0x939   :  { %7282 = vmatpush2.bf16.msra.mxu0 %v10741_v8  ;;  %v10761_v8 = vld [vmem:[#allocation8 + $0x18d4] ss:$24 sps:$4 sm:$0xff]  }
 0x93a   :  { %7283 = vmatprep.subr.bf16.mxu0 %v10749_v11  ;;  %v10762_v11 = vld [vmem:[#allocation8 + $0x18a0] ss:$24 sps:$4 sm:$0xff]  }
 0x93d   :  { %7284 = vmatpush2.bf16.msra.mxu0 %v10747_v12  ;;  %v10767_v12 = vld [vmem:[#allocation8 + $0x1874] ss:$24 sps:$4 sm:$0xff]  }
 0x980   :  { %v6487_v14 = vpop.f32.mrf.mxu0  ;;  %v6528_v15 = vpop.f32.mrf.mxu1 }
 0x981   :  { %v6488_v31 = vadd.f32 %v6487_v14, %v5946_v29  ;;  %v6529_v42 = vadd.f32 %v6528_v15, %v5954_v39  ;;  %v10770_v14 = vld [vmem:[#allocation8 + $0x1844] ss:$24 sps:$4 sm:$0xff]   ;;  %v10768_v15 = vld [vmem:[#allocation8 + $0x1840] ss:$24 sps:$4 sm:$0xff]   ;;  %v10783_v29 = vld [vmem:[#allocation8 + $0x1a50] ss:$24 sps:$4 sm:$0xff]  }
 0x982   :  { %v6489_v16 = vpop.f32.mrf.mxu0  ;;  %v6530_v17 = vpop.f32.mrf.mxu1  ;;  %v10798_v39 = vld [vmem:[#allocation8 + $0x1c50] ss:$24 sps:$4 sm:$0xff]  }
 0x983   :  { %v6490_v32 = vadd.f32 %v6489_v16, %v5950_v30  ;;  %v9178_v33 = vmul.f32 -1.442695, %v6488_v31  ;;  %v6531_v43 = vadd.f32 %v6530_v17, %v5958_v40  ;;  %v6588_v49 = vmax.f32 %v6529_v42, 0.0  ;;  %v10773_v16 = vld [vmem:[#allocation8 + $0x1814] ss:$24 sps:$4 sm:$0xff]  }
 0x984   :  { %v6491_v18 = vpop.f32.mrf.mxu0  ;;  %v6532_v19 = vpop.f32.mrf.mxu1  ;;  %v10771_v17 = vld [vmem:[#allocation8 + $0x1810] ss:$24 sps:$4 sm:$0xff]   ;;  %v10788_v30 = vld [vmem:[#allocation8 + $0x1a24] ss:$24 sps:$4 sm:$0xff]   ;;  %v10786_v31 = vld [vmem:[#allocation8 + $0x1a20] ss:$24 sps:$4 sm:$0xff]  }
 0x985   :  { %v9179_v34 = vmul.f32 -1.442695, %v6490_v32  ;;  %11018 = vpow2.f32 %v9178_v33  ;;  %v6589_v51 = vmax.f32 %v6531_v43, 0.0  ;;  %v10776_v18 = vld [vmem:[#allocation8 + $0x1ae4] ss:$24 sps:$4 sm:$0xff]  }
 0x986   :  { %v6492_v23 = vpop.f32.mrf.mxu0  ;;  %v6533_v24 = vpop.f32.mrf.mxu1  ;;  %v10774_v19 = vld [vmem:[#allocation8 + $0x1ae0] ss:$24 sps:$4 sm:$0xff]   ;;  %v10791_v32 = vld [vmem:[#allocation8 + $0x19f4] ss:$24 sps:$4 sm:$0xff]   ;;  %v10789_v33 = vld [vmem:[#allocation8 + $0x19f0] ss:$24 sps:$4 sm:$0xff]  }
 0x987   :  { %11020 = vpow2.f32 %v9179_v34  ;;  %v10779_v23 = vld [vmem:[#allocation8 + $0x1ab4] ss:$24 sps:$4 sm:$0xff]   ;;  %v10777_v24 = vld [vmem:[#allocation8 + $0x1ab0] ss:$24 sps:$4 sm:$0xff]   ;;  %v10794_v34 = vld [vmem:[#allocation8 + $0x19c4] ss:$24 sps:$4 sm:$0xff]  }
 0x988   :  { %v10803_v40 = vld [vmem:[#allocation8 + $0x1c5c] ss:$24 sps:$4 sm:$0xff]   ;;  %v10804_v42 = vld [vmem:[#allocation8 + $0x1c20] ss:$24 sps:$4 sm:$0xff]   ;;  %v10809_v43 = vld [vmem:[#allocation8 + $0x1c2c] ss:$24 sps:$4 sm:$0xff]  }
 0x992   :  { %v11019_v35 = vpop.eup %11018 }
 0x993   :  { %v6582_v37 = vadd.f32 1.0, %v11019_v35  ;;  %v10792_v35 = vld [vmem:[#allocation8 + $0x19c0] ss:$24 sps:$4 sm:$0xff]  }
 0x994   :  { %v11021_v36 = vpop.eup %11020 }
 0x995   :  { %v6583_v38 = vadd.f32 1.0, %v11021_v36  ;;  %11022 = vrcp.f32 %v6582_v37  ;;  %v10797_v36 = vld [vmem:[#allocation8 + $0x1994] ss:$24 sps:$4 sm:$0xff]   ;;  %v10795_v37 = vld [vmem:[#allocation8 + $0x1990] ss:$24 sps:$4 sm:$0xff]  }
 0x997   :  { %11024 = vrcp.f32 %v6583_v38  ;;  %v10800_v38 = vld [vmem:[#allocation8 + $0x1c54] ss:$24 sps:$4 sm:$0xff]  }
 0x998   :  { %7971 = vmatprep.subr.bf16.mxu0 %v10800_v38  ;;  %v10887_v38 = vld [vmem:[#allocation8 + $0x1cbc] ss:$24 sps:$4 sm:$0xff]  }
 0x9a2   :  { %v11023_v61 = vpop.eup %11022 }
 0x9a3   :  { %v6592_v48 = vsub.f32 1.0, %v11023_v61  ;;  %v6590_v55 = vmul.f32 %v11023_v61, %v6588_v49  ;;  %v10806_v61 = vld [vmem:[#allocation8 + $0x1c24] ss:$24 sps:$4 sm:$0xff]  }
 0x9a4   :  { %v11025_v45 = vpop.eup %11024  ;;  %v10818_v49 = vld [vmem:[#allocation8 + $0x1bc4] ss:$24 sps:$4 sm:$0xff]  }
 0x9a5   :  { %v6593_v54 = vsub.f32 1.0, %v11025_v45  ;;  %v6591_v57 = vmul.f32 %v11025_v45, %v6589_v51  ;;  %v10812_v45 = vld [vmem:[#allocation8 + $0x1bf4] ss:$24 sps:$4 sm:$0xff]  }
 0x9a6   :  { %v10821_v51 = vld [vmem:[#allocation8 + $0x1bcc] ss:$24 sps:$4 sm:$0xff]  }
 0x9c0   :  { %v6569_v46 = vpop.f32.mrf.mxu0 }
 0x9c1   :  { %v6570_v47 = vadd.f32 %v6569_v46, %v5962_v41  ;;  %v10801_v41 = vld [vmem:[#allocation8 + $0x1c58] ss:$24 sps:$4 sm:$0xff]  }
 0x9c2   :  { %v6571_v50 = vpop.f32.mrf.mxu0  ;;  %v10810_v46 = vld [vmem:[#allocation8 + $0x1bf0] ss:$24 sps:$4 sm:$0xff]  }
 0x9c3   :  { %v6594_v52 = vmul.f32 %v6592_v48, %v6570_v47  ;;  %v6572_v53 = vadd.f32 %v6571_v50, %v5966_v44  ;;  %v10807_v44 = vld [vmem:[#allocation8 + $0x1c28] ss:$24 sps:$4 sm:$0xff]   ;;  %v10815_v47 = vld [vmem:[#allocation8 + $0x1bfc] ss:$24 sps:$4 sm:$0xff]   ;;  %v10813_v48 = vld [vmem:[#allocation8 + $0x1bf8] ss:$24 sps:$4 sm:$0xff]  }
 0x9c4   :  { %v6573_v56 = vpop.f32.mrf.mxu0  ;;  %v10816_v50 = vld [vmem:[#allocation8 + $0x1bc0] ss:$24 sps:$4 sm:$0xff]  }
 0x9c5   :  { %v6595_v58 = vmul.f32 %v6593_v54, %v6572_v53  ;;  %v6596_v59 = vadd.f32 %v6594_v52, %v6590_v55  ;;  %v10819_v52 = vld [vmem:[#allocation8 + $0x1bc8] ss:$24 sps:$4 sm:$0xff]   ;;  %v10824_v53 = vld [vmem:[#allocation8 + $0x1b94] ss:$24 sps:$4 sm:$0xff]   ;;  %v10825_v56 = vld [vmem:[#allocation8 + $0x1b98] ss:$24 sps:$4 sm:$0xff]  }
 0x9c6   :  { %v6574_v60 = vpop.f32.mrf.mxu0  ;;  %v10822_v54 = vld [vmem:[#allocation8 + $0x1b90] ss:$24 sps:$4 sm:$0xff]   ;;  %v10827_v55 = vld [vmem:[#allocation8 + $0x1b9c] ss:$24 sps:$4 sm:$0xff]  }
 0x9c7   :  { %v6597_v62 = vadd.f32 %v6595_v58, %v6591_v57  ;;  %v11377_v3 = vpack.c.bf16 %v6596_v59, %v6596_v59  ;;  %v10830_v57 = vld [vmem:[#allocation8 + $0x1b64] ss:$24 sps:$4 sm:$0xff]   ;;  %v10828_v58 = vld [vmem:[#allocation8 + $0x1b60] ss:$24 sps:$4 sm:$0xff]  }
 0x9c8   :  { %v10833_v59 = vld [vmem:[#allocation8 + $0x1b6c] ss:$24 sps:$4 sm:$0xff]   ;;  %v10831_v60 = vld [vmem:[#allocation8 + $0x1b68] ss:$24 sps:$4 sm:$0xff]  }
 0x9c9   :  { %v6599_v1 = vpack.c.bf16 %v6597_v62, %v6597_v62  ;;  %v10836_v62 = vld [vmem:[#allocation8 + $0x1b34] ss:$24 sps:$4 sm:$0xff]  }
 0x9cb   :  { %7244 = vmatprep.mubr.bf16.mxu1 %v6599_v1  ;;  %7285 = vmatprep.mubr.bf16.mxu0 %v6599_v1 }
 0x9cc   :  { %7245 = vmatmul.mubr.bf16.vlgmr.msra.gmra.mxu1 %v11377_v3  ;;  %7286 = vmatmul.mubr.bf16.vlgmr.msra.gmra.mxu0 %v11377_v3 }
 0x9cd   :  { %7295 = vmatpush1.bf16.msra.mxu1 %v10750_v2  ;;  %7326 = vmatprep.mubr.bf16.mxu1 %v6599_v1  ;;  %v10834_v1 = vld [vmem:[#allocation8 + $0x1b30] ss:$24 sps:$4 sm:$0xff]   ;;  %v10839_v2 = vld [vmem:[#allocation8 + $0x1b3c] ss:$24 sps:$4 sm:$0xff]  }
 0x9ce   :  { %7296 = vmatprep.subr.bf16.mxu1 %v10755_v4  ;;  %7972 = vmatpush1.bf16.msra.mxu0 %v10798_v39  ;;  %v10840_v4 = vld [vmem:[#allocation8 + $0x1b00] ss:$24 sps:$4 sm:$0xff]  }
 0x9cf   :  { %7973 = vmatprep.subr.bf16.mxu0 %v10806_v61  ;;  %v10885_v39 = vld [vmem:[#allocation8 + $0x1cb8] ss:$24 sps:$4 sm:$0xff]   ;;  %v10893_v61 = vld [vmem:[#allocation8 + $0x1c8c] ss:$24 sps:$4 sm:$0xff]  }
 0x9d1   :  { %7297 = vmatpush1.bf16.msra.mxu1 %v10753_v5  ;;  %v10842_v5 = vld [vmem:[#allocation8 + $0x1b04] ss:$24 sps:$4 sm:$0xff]  }
 0x9d2   :  { %7298 = vmatprep.subr.bf16.mxu1 %v10758_v6  ;;  %7974 = vmatpush1.bf16.msra.mxu0 %v10804_v42  ;;  %v10843_v6 = vld [vmem:[#allocation8 + $0x1b08] ss:$24 sps:$4 sm:$0xff]  }
 0x9d3   :  { %7975 = vmatprep.subr.bf16.mxu0 %v10812_v45  ;;  %v10891_v42 = vld [vmem:[#allocation8 + $0x1c88] ss:$24 sps:$4 sm:$0xff]  }
 0x9d5   :  { %7299 = vmatpush1.bf16.msra.mxu1 %v10756_v7  ;;  %v10845_v7 = vld [vmem:[#allocation8 + $0x1b0c] ss:$24 sps:$4 sm:$0xff]  }
 0x9d6   :  { %7300 = vmatprep.subr.bf16.mxu1 %v10761_v8  ;;  %7976 = vmatpush1.bf16.msra.mxu0 %v10810_v46  ;;  %v10848_v8 = vld [vmem:[#allocation8 + $0x1dd4] ss:$24 sps:$4 sm:$0xff]  }
 0x9d7   :  { %7977 = vmatprep.subr.bf16.mxu0 %v10818_v49 }
 0x9d9   :  { %7301 = vmatpush1.bf16.msra.mxu1 %v10759_v9  ;;  %v10851_v9 = vld [vmem:[#allocation8 + $0x1ddc] ss:$24 sps:$4 sm:$0xff]  }
 0x9da   :  { %7302 = vmatprep.subr.bf16.mxu1 %v10764_v10  ;;  %7978 = vmatpush1.bf16.msra.mxu0 %v10816_v50  ;;  %v10846_v10 = vld [vmem:[#allocation8 + $0x1dd0] ss:$24 sps:$4 sm:$0xff]  }
 0x9db   :  { %7979 = vmatprep.subr.bf16.mxu0 %v10824_v53  ;;  %v6699_v53 = vld [vmem:[#allocation10 + $0x30] ss:$8 sm:$0x30] }
 0x9dd   :  { %7303 = vmatpush1.bf16.msra.mxu1 %v10762_v11  ;;  %v10849_v11 = vld [vmem:[#allocation8 + $0x1dd8] ss:$24 sps:$4 sm:$0xff]  }
 0x9de   :  { %7304 = vmatprep.subr.bf16.mxu1 %v10767_v12  ;;  %7980 = vmatpush1.bf16.msra.mxu0 %v10822_v54  ;;  %v10854_v12 = vld [vmem:[#allocation8 + $0x1da4] ss:$24 sps:$4 sm:$0xff]  }
 0x9df   :  { %7981 = vmatprep.subr.bf16.mxu0 %v10830_v57 }
 0x9e1   :  { %7305 = vmatpush1.bf16.msra.mxu1 %v10765_v13  ;;  %v10857_v13 = vld [vmem:[#allocation8 + $0x1dac] ss:$24 sps:$4 sm:$0xff]  }
 0x9e2   :  { %7306 = vmatprep.subr.bf16.mxu1 %v10770_v14  ;;  %7982 = vmatpush1.bf16.msra.mxu0 %v10828_v58  ;;  %v10852_v14 = vld [vmem:[#allocation8 + $0x1da0] ss:$24 sps:$4 sm:$0xff]  }
 0x9e3   :  { %7983 = vmatprep.subr.bf16.mxu0 %v10836_v62 }
 0x9e5   :  { %7307 = vmatpush1.bf16.msra.mxu1 %v10768_v15  ;;  %v10855_v15 = vld [vmem:[#allocation8 + $0x1da8] ss:$24 sps:$4 sm:$0xff]  }
 0x9e6   :  { %7308 = vmatprep.subr.bf16.mxu1 %v10773_v16  ;;  %7984 = vmatpush1.bf16.msra.mxu0 %v10834_v1  ;;  %v10860_v16 = vld [vmem:[#allocation8 + $0x1d74] ss:$24 sps:$4 sm:$0xff]  }
 0x9e7   :  { %7985 = vmatprep.subr.bf16.mxu0 %v10842_v5 }
 0x9e9   :  { %7309 = vmatpush1.bf16.msra.mxu1 %v10771_v17  ;;  %v10863_v17 = vld [vmem:[#allocation8 + $0x1d7c] ss:$24 sps:$4 sm:$0xff]  }
 0x9ea   :  { %7310 = vmatprep.subr.bf16.mxu1 %v10776_v18  ;;  %7986 = vmatpush1.bf16.msra.mxu0 %v10840_v4  ;;  %v10858_v18 = vld [vmem:[#allocation8 + $0x1d70] ss:$24 sps:$4 sm:$0xff]  }
 0x9eb   :  { %7987 = vmatprep.subr.bf16.mxu0 %v10848_v8 }
 0x9ed   :  { %7311 = vmatpush2.bf16.msra.mxu1 %v10774_v19  ;;  %v10861_v19 = vld [vmem:[#allocation8 + $0x1d78] ss:$24 sps:$4 sm:$0xff]  }
 0x9ee   :  { %7312 = vmatprep.subr.bf16.mxu1 %v10779_v23  ;;  %7988 = vmatpush2.bf16.msra.mxu0 %v10846_v10  ;;  %v10866_v23 = vld [vmem:[#allocation8 + $0x1d44] ss:$24 sps:$4 sm:$0xff]  }
 0x9ef   :  { %7989 = vmatprep.subr.bf16.mxu0 %v10854_v12 }
 0x9f1   :  { %7313 = vmatpush2.bf16.msra.mxu1 %v10777_v24  ;;  %v10869_v24 = vld [vmem:[#allocation8 + $0x1d4c] ss:$24 sps:$4 sm:$0xff]  }
 0x9f2   :  { %7314 = vmatprep.subr.bf16.mxu1 %v10782_v26  ;;  %7990 = vmatpush2.bf16.msra.mxu0 %v10852_v14  ;;  %v10864_v26 = vld [vmem:[#allocation8 + $0x1d40] ss:$24 sps:$4 sm:$0xff]  }
 0x9f3   :  { %7991 = vmatprep.subr.bf16.mxu0 %v10860_v16 }
 0x9f5   :  { %7315 = vmatpush2.bf16.msra.mxu1 %v10780_v27  ;;  %v10867_v27 = vld [vmem:[#allocation8 + $0x1d48] ss:$24 sps:$4 sm:$0xff]  }
 0x9f6   :  { %7316 = vmatprep.subr.bf16.mxu1 %v10785_v28  ;;  %7992 = vmatpush2.bf16.msra.mxu0 %v10858_v18  ;;  %v10872_v28 = vld [vmem:[#allocation8 + $0x1d14] ss:$24 sps:$4 sm:$0xff]  }
 0x9f7   :  { %7993 = vmatprep.subr.bf16.mxu0 %v10866_v23 }
 0x9f9   :  { %7317 = vmatpush2.bf16.msra.mxu1 %v10783_v29  ;;  %v10875_v29 = vld [vmem:[#allocation8 + $0x1d1c] ss:$24 sps:$4 sm:$0xff]  }
 0x9fa   :  { %7318 = vmatprep.subr.bf16.mxu1 %v10788_v30  ;;  %7994 = vmatpush2.bf16.msra.mxu0 %v10864_v26  ;;  %v10870_v30 = vld [vmem:[#allocation8 + $0x1d10] ss:$24 sps:$4 sm:$0xff]  }
 0x9fb   :  { %7995 = vmatprep.subr.bf16.mxu0 %v10872_v28 }
 0x9fd   :  { %7319 = vmatpush2.bf16.msra.mxu1 %v10786_v31  ;;  %v10873_v31 = vld [vmem:[#allocation8 + $0x1d18] ss:$24 sps:$4 sm:$0xff]  }
 0x9fe   :  { %7320 = vmatprep.subr.bf16.mxu1 %v10791_v32  ;;  %v10878_v32 = vld [vmem:[#allocation8 + $0x1ce4] ss:$24 sps:$4 sm:$0xff]   ;;  %7996 = vmatpush2.bf16.msra.mxu0 %v10870_v30 }
 0x9ff   :  { %7997 = vmatprep.subr.bf16.mxu0 %v10878_v32 }
 0xa01   :  { %7321 = vmatpush2.bf16.msra.mxu1 %v10789_v33  ;;  %v10876_v33 = vld [vmem:[#allocation8 + $0x1ce0] ss:$24 sps:$4 sm:$0xff]  }
 0xa02   :  { %7322 = vmatprep.subr.bf16.mxu1 %v10794_v34  ;;  %v10881_v34 = vld [vmem:[#allocation8 + $0x1cec] ss:$24 sps:$4 sm:$0xff]   ;;  %7998 = vmatpush2.bf16.msra.mxu0 %v10876_v33  ;;  %v10894_v33 = vld [vmem:[#allocation8 + $0x1c60] ss:$24 sps:$4 sm:$0xff]  }
 0xa05   :  { %7323 = vmatpush2.bf16.msra.mxu1 %v10792_v35  ;;  %v10879_v35 = vld [vmem:[#allocation8 + $0x1ce8] ss:$24 sps:$4 sm:$0xff]  }
 0xa06   :  { %7324 = vmatprep.subr.bf16.mxu1 %v10797_v36  ;;  %v10884_v36 = vld [vmem:[#allocation8 + $0x1cb4] ss:$24 sps:$4 sm:$0xff]  }
 0xa07   :  { %7999 = vmatprep.subr.bf16.mxu0 %v10884_v36  ;;  %v10897_v36 = vld [vmem:[#allocation8 + $0x1c30] ss:$24 sps:$4 sm:$0xff]  }
 0xa09   :  { %7325 = vmatpush2.bf16.msra.mxu1 %v10795_v37  ;;  %v10882_v37 = vld [vmem:[#allocation8 + $0x1cb0] ss:$24 sps:$4 sm:$0xff]  }
 0xa0a   :  { %8012 = vmatprep.subr.bf16.mxu1 %v10803_v40  ;;  %8000 = vmatpush2.bf16.msra.mxu0 %v10882_v37  ;;  %v10890_v40 = vld [vmem:[#allocation8 + $0x1c84] ss:$24 sps:$4 sm:$0xff]  }
 0xa0b   :  { %8001 = vmatprep.subr.bf16.mxu0 %v10890_v40  ;;  %v10902_v37 = vld [vmem:[#allocation8 + $0x1c04] ss:$24 sps:$4 sm:$0xff]   ;;  %v10903_v40 = vld [vmem:[#allocation8 + $0x1bd0] ss:$24 sps:$4 sm:$0xff]  }
 0xa0c   :  { %7327 = vmatmul.mubr.bf16.vlgmr.msra.gmra.mxu1 %v11377_v3  ;;  %v10837_v3 = vld [vmem:[#allocation8 + $0x1b38] ss:$24 sps:$4 sm:$0xff]  }
 0xa0d   :  { %8013 = vmatpush1.bf16.msra.mxu1 %v10801_v41  ;;  %v10888_v41 = vld [vmem:[#allocation8 + $0x1c80] ss:$24 sps:$4 sm:$0xff]  }
 0xa0e   :  { %8014 = vmatprep.subr.bf16.mxu1 %v10809_v43  ;;  %8002 = vmatpush2.bf16.msra.mxu0 %v10888_v41  ;;  %v10896_v43 = vld [vmem:[#allocation8 + $0x1c64] ss:$24 sps:$4 sm:$0xff]  }
 0xa0f   :  { %8053 = vmatprep.subr.bf16.mxu0 %v10896_v43  ;;  %v10908_v41 = vld [vmem:[#allocation8 + $0x1ba4] ss:$24 sps:$4 sm:$0xff]   ;;  %v10909_v43 = vld [vmem:[#allocation8 + $0x1b70] ss:$24 sps:$4 sm:$0xff]  }
 0xa11   :  { %8015 = vmatpush1.bf16.msra.mxu1 %v10807_v44 }
 0xa12   :  { %8016 = vmatprep.subr.bf16.mxu1 %v10815_v47 }
 0xa15   :  { %8017 = vmatpush1.bf16.msra.mxu1 %v10813_v48 }
 0xa16   :  { %8018 = vmatprep.subr.bf16.mxu1 %v10821_v51 }
 0xa19   :  { %8019 = vmatpush1.bf16.msra.mxu1 %v10819_v52  ;;  %v6698_v52 = vld [vmem:[#allocation10 + $0x30] ss:$8 sm:$0xf] }
 0xa1a   :  { %8020 = vmatprep.subr.bf16.mxu1 %v10827_v55  ;;  %v6700_v54 = vor.u32 %v6699_v53, %v6698_v52  ;;  %v10926_v52 = vld [vmem:[#allocation8 + $0x1d84] ss:$24 sps:$4 sm:$0xff]   ;;  %v10924_v53 = vld [vmem:[#allocation8 + $0x1d80] ss:$24 sps:$4 sm:$0xff]  }
 0xa1c   :  { %v6705_v55 = vrot.slane %v6700_v54, %v11266_v63  ;;  %v6713_v4 = vrot.slane %v6700_v54, %v11285_v20  ;;  %v6717_v5 = vrot.slane %v6700_v54, %v11288_v21  ;;  %v6725_v10 = vrot.slane %v6700_v54, %v11296_v25 }
 0xa1d   :  { %8021 = vmatpush1.bf16.msra.mxu1 %v10825_v56  ;;  %v6709_v56 = vrot.slane %v6700_v54, %v11269_v0 }
 0xa1e   :  { %8022 = vmatprep.subr.bf16.mxu1 %v10833_v59 }
 0xa21   :  { %8023 = vmatpush1.bf16.msra.mxu1 %v10831_v60 }
 0xa22   :  { %8024 = vmatprep.subr.bf16.mxu1 %v10839_v2 }
 0xa25   :  { %8025 = vmatpush1.bf16.msra.mxu1 %v10837_v3 }
 0xa26   :  { %8026 = vmatprep.subr.bf16.mxu1 %v10845_v7 }
 0xa29   :  { %8027 = vmatpush1.bf16.msra.mxu1 %v10843_v6  ;;  %v6721_v6 = vrot.slane %v6700_v54, %v11291_v22  ;;  %v10929_v54 = vld [vmem:[#allocation8 + $0x1d54] ss:$24 sps:$4 sm:$0xff]  }
 0xa2a   :  { %8028 = vmatprep.subr.bf16.mxu1 %v10851_v9 }
 0xa2d   :  { %8029 = vmatpush2.bf16.msra.mxu1 %v10849_v11 }
 0xa2e   :  { %8030 = vmatprep.subr.bf16.mxu1 %v10857_v13 }
 0xa31   :  { %8031 = vmatpush2.bf16.msra.mxu1 %v10855_v15 }
 0xa32   :  { %8032 = vmatprep.subr.bf16.mxu1 %v10863_v17 }
 0xa35   :  { %8033 = vmatpush2.bf16.msra.mxu1 %v10861_v19 }
 0xa36   :  { %8034 = vmatprep.subr.bf16.mxu1 %v10869_v24 }
 0xa39   :  { %8035 = vmatpush2.bf16.msra.mxu1 %v10867_v27 }
 0xa3a   :  { %8036 = vmatprep.subr.bf16.mxu1 %v10875_v29 }
 0xa3d   :  { %8037 = vmatpush2.bf16.msra.mxu1 %v10873_v31 }
 0xa3e   :  { %8038 = vmatprep.subr.bf16.mxu1 %v10881_v34 }
 0xa41   :  { %8039 = vmatpush2.bf16.msra.mxu1 %v10879_v35  ;;  %v10899_v35 = vld [vmem:[#allocation8 + $0x1c34] ss:$24 sps:$4 sm:$0xff]  }
 0xa42   :  { %8040 = vmatprep.subr.bf16.mxu1 %v10887_v38  ;;  %v10900_v38 = vld [vmem:[#allocation8 + $0x1c00] ss:$24 sps:$4 sm:$0xff]  }
 0xa45   :  { %8041 = vmatpush2.bf16.msra.mxu1 %v10885_v39  ;;  %v10905_v39 = vld [vmem:[#allocation8 + $0x1bd4] ss:$24 sps:$4 sm:$0xff]  }
 0xa46   :  { %8042 = vmatprep.subr.bf16.mxu1 %v10893_v61  ;;  %v10906_v61 = vld [vmem:[#allocation8 + $0x1ba0] ss:$24 sps:$4 sm:$0xff]  }
 0xa49   :  { %8043 = vmatpush2.bf16.msra.mxu1 %v10891_v42  ;;  %v10911_v42 = vld [vmem:[#allocation8 + $0x1b74] ss:$24 sps:$4 sm:$0xff]  }
 0xa8c   :  { %v7246_v44 = vpop.f32.mrf.mxu1  ;;  %v7287_v45 = vpop.f32.mrf.mxu0 }
 0xa8d   :  { %v7247_v57 = vadd.f32 %v7246_v44, %v6705_v55  ;;  %v7288_v8 = vadd.f32 %v7287_v45, %v6713_v4  ;;  %v10914_v44 = vld [vmem:[#allocation8 + $0x1b44] ss:$24 sps:$4 sm:$0xff]   ;;  %v10912_v45 = vld [vmem:[#allocation8 + $0x1b40] ss:$24 sps:$4 sm:$0xff]   ;;  %v10927_v55 = vld [vmem:[#allocation8 + $0x1d50] ss:$24 sps:$4 sm:$0xff]  }
 0xa8e   :  { %v7248_v46 = vpop.f32.mrf.mxu1  ;;  %v7289_v47 = vpop.f32.mrf.mxu0 }
 0xa8f   :  { %v7249_v58 = vadd.f32 %v7248_v46, %v6709_v56  ;;  %v9276_v59 = vmul.f32 -1.442695, %v7247_v57  ;;  %v7290_v9 = vadd.f32 %v7289_v47, %v6717_v5  ;;  %v7347_v15 = vmax.f32 %v7288_v8, 0.0  ;;  %v10917_v46 = vld [vmem:[#allocation8 + $0x1b14] ss:$24 sps:$4 sm:$0xff]  }
 0xa90   :  { %v7250_v48 = vpop.f32.mrf.mxu1  ;;  %v7291_v49 = vpop.f32.mrf.mxu0  ;;  %v10915_v47 = vld [vmem:[#allocation8 + $0x1b10] ss:$24 sps:$4 sm:$0xff]   ;;  %v10932_v56 = vld [vmem:[#allocation8 + $0x1d24] ss:$24 sps:$4 sm:$0xff]   ;;  %v10930_v57 = vld [vmem:[#allocation8 + $0x1d20] ss:$24 sps:$4 sm:$0xff]  }
 0xa91   :  { %v9277_v60 = vmul.f32 -1.442695, %v7249_v58  ;;  %11026 = vpow2.f32 %v9276_v59  ;;  %v7348_v17 = vmax.f32 %v7290_v9, 0.0  ;;  %v10920_v48 = vld [vmem:[#allocation8 + $0x1de4] ss:$24 sps:$4 sm:$0xff]  }
 0xa92   :  { %v7251_v50 = vpop.f32.mrf.mxu1  ;;  %v7292_v51 = vpop.f32.mrf.mxu0  ;;  %v10918_v49 = vld [vmem:[#allocation8 + $0x1de0] ss:$24 sps:$4 sm:$0xff]   ;;  %v10935_v58 = vld [vmem:[#allocation8 + $0x1cf4] ss:$24 sps:$4 sm:$0xff]   ;;  %v10933_v59 = vld [vmem:[#allocation8 + $0x1cf0] ss:$24 sps:$4 sm:$0xff]  }
 0xa93   :  { %11028 = vpow2.f32 %v9277_v60  ;;  %v10923_v50 = vld [vmem:[#allocation8 + $0x1db4] ss:$24 sps:$4 sm:$0xff]   ;;  %v10921_v51 = vld [vmem:[#allocation8 + $0x1db0] ss:$24 sps:$4 sm:$0xff]   ;;  %v10938_v60 = vld [vmem:[#allocation8 + $0x1cc4] ss:$24 sps:$4 sm:$0xff]  }
 0xa9e   :  { %v11027_v62 = vpop.eup %11026 }
 0xa9f   :  { %v7341_v2 = vadd.f32 1.0, %v11027_v62  ;;  %v10936_v62 = vld [vmem:[#allocation8 + $0x1cc0] ss:$24 sps:$4 sm:$0xff]  }
 0xaa0   :  { %v11029_v1 = vpop.eup %11028 }
 0xaa1   :  { %v7342_v3 = vadd.f32 1.0, %v11029_v1  ;;  %11030 = vrcp.f32 %v7341_v2  ;;  %v10941_v1 = vld [vmem:[#allocation8 + $0x1c94] ss:$24 sps:$4 sm:$0xff]   ;;  %v10939_v2 = vld [vmem:[#allocation8 + $0x1c90] ss:$24 sps:$4 sm:$0xff]  }
 0xaa3   :  { %11032 = vrcp.f32 %v7342_v3 }
 0xaae   :  { %v11031_v7 = vpop.eup %11030 }
 0xaaf   :  { %v7351_v14 = vsub.f32 1.0, %v11031_v7  ;;  %v7349_v24 = vmul.f32 %v11031_v7, %v7347_v15 }
 0xab0   :  { %v11033_v11 = vpop.eup %11032 }
 0xab1   :  { %v7352_v23 = vsub.f32 1.0, %v11033_v11  ;;  %v7350_v27 = vmul.f32 %v11033_v11, %v7348_v17  ;;  %v7457_v11 = vld [vmem:[#allocation10 + $0x31] ss:$8 sm:$0xf] }
 0xacc   :  { %v7328_v12 = vpop.f32.mrf.mxu1 }
 0xacd   :  { %v7329_v13 = vadd.f32 %v7328_v12, %v6721_v6  ;;  %v7458_v12 = vld [vmem:[#allocation10 + $0x31] ss:$8 sm:$0x30] }
 0xace   :  { %v7330_v16 = vpop.f32.mrf.mxu1 }
 0xacf   :  { %v7353_v18 = vmul.f32 %v7351_v14, %v7329_v13  ;;  %v7331_v19 = vadd.f32 %v7330_v16, %v6725_v10  ;;  %v7459_v13 = vor.u32 %v7458_v12, %v7457_v11  ;;  %v10951_v11 = vld [vmem:[#allocation11 + $0x18] sm:$0xff]   ;;  %v10952_v12 = vld [vmem:[#allocation11 + $0x50] sm:$0xff]  }
 0xad0   :  { %v7332_v26 = vpop.f32.mrf.mxu1 }
 0xad1   :  { %v7354_v28 = vmul.f32 %v7352_v23, %v7331_v19  ;;  %v7355_v29 = vadd.f32 %v7353_v18, %v7349_v24  ;;  %v7464_v14 = vrot.slane %v7459_v13, %v11266_v63  ;;  %v7468_v15 = vrot.slane %v7459_v13, %v11269_v0 }
 0xad2   :  { %v7333_v30 = vpop.f32.mrf.mxu1 }
 0xad3   :  { %v7356_v31 = vadd.f32 %v7354_v28, %v7350_v27  ;;  %v11388_v34 = vpack.c.bf16 %v7355_v29, %v7355_v29  ;;  %v7472_v28 = vrot.slane %v7459_v13, %v11285_v20  ;;  %v7476_v29 = vrot.slane %v7459_v13, %v11288_v21 }
 0xad5   :  { %v7358_v32 = vpack.c.bf16 %v7356_v31, %v7356_v31  ;;  %v7480_v31 = vrot.slane %v7459_v13, %v11291_v22  ;;  %v111_v22 = vld [vmem:[#allocation7 + $0x4] ss:$8 sm:$0x3] }
 0xad7   :  { %8003 = vmatprep.mubr.bf16.mxu0 %v7358_v32  ;;  %8044 = vmatprep.mubr.bf16.mxu1 %v7358_v32 }
 0xad8   :  { %8004 = vmatmul.mubr.bf16.vlgmr.msra.gmra.mxu0 %v11388_v34  ;;  %8045 = vmatmul.mubr.bf16.vlgmr.msra.gmra.mxu1 %v11388_v34 }
 0xad9   :  { %8054 = vmatpush1.bf16.msra.mxu0 %v10894_v33  ;;  %8085 = vmatprep.mubr.bf16.mxu0 %v7358_v32 }
 0xada   :  { %8055 = vmatprep.subr.bf16.mxu0 %v10899_v35  ;;  %v109_v35 = vld [vmem:[#allocation7 + $0x3] ss:$8 sm:$0x3] }
 0xadd   :  { %8056 = vmatpush1.bf16.msra.mxu0 %v10897_v36 }
 0xade   :  { %8057 = vmatprep.subr.bf16.mxu0 %v10902_v37 }
 0xae1   :  { %8058 = vmatpush1.bf16.msra.mxu0 %v10900_v38 }
 0xae2   :  { %8059 = vmatprep.subr.bf16.mxu0 %v10905_v39 }
 0xae5   :  { %8060 = vmatpush1.bf16.msra.mxu0 %v10903_v40 }
 0xae6   :  { %8061 = vmatprep.subr.bf16.mxu0 %v10908_v41 }
 0xae9   :  { %8062 = vmatpush1.bf16.msra.mxu0 %v10906_v61 }
 0xaea   :  { %8063 = vmatprep.subr.bf16.mxu0 %v10911_v42  ;;  %v8120_v42 = vrot.slane %v109_v35, %v11266_v63 }
 0xaed   :  { %8064 = vmatpush1.bf16.msra.mxu0 %v10909_v43 }
 0xaee   :  { %8065 = vmatprep.subr.bf16.mxu0 %v10914_v44 }
 0xaf1   :  { %8066 = vmatpush1.bf16.msra.mxu0 %v10912_v45 }
 0xaf2   :  { %8067 = vmatprep.subr.bf16.mxu0 %v10917_v46 }
 0xaf5   :  { %8068 = vmatpush1.bf16.msra.mxu0 %v10915_v47 }
 0xaf6   :  { %8069 = vmatprep.subr.bf16.mxu0 %v10920_v48 }
 0xaf9   :  { %8070 = vmatpush2.bf16.msra.mxu0 %v10918_v49 }
 0xafa   :  { %8071 = vmatprep.subr.bf16.mxu0 %v10923_v50 }
 0xafd   :  { %8072 = vmatpush2.bf16.msra.mxu0 %v10921_v51 }
 0xafe   :  { %8073 = vmatprep.subr.bf16.mxu0 %v10926_v52  ;;  %v8133_v52 = vrot.slane %v111_v22, %v11266_v63 }
 0xb01   :  { %8074 = vmatpush2.bf16.msra.mxu0 %v10924_v53  ;;  %v8137_v53 = vrot.slane %v111_v22, %v11269_v0 }
 0xb02   :  { %8075 = vmatprep.subr.bf16.mxu0 %v10929_v54 }
 0xb05   :  { %8076 = vmatpush2.bf16.msra.mxu0 %v10927_v55 }
 0xb06   :  { %8077 = vmatprep.subr.bf16.mxu0 %v10932_v56 }
 0xb09   :  { %8078 = vmatpush2.bf16.msra.mxu0 %v10930_v57 }
 0xb0a   :  { %8079 = vmatprep.subr.bf16.mxu0 %v10935_v58  ;;  %v10942_v58 = vld [vmem:[#allocation11 + $0x78] sm:$0xff]  }
 0xb0b   :  { %9392 = vmatprep.subr.bf16.mxu1 %v10942_v58 }
 0xb0d   :  { %8080 = vmatpush2.bf16.msra.mxu0 %v10933_v59  ;;  %v10943_v59 = vld [vmem:[#allocation11 + $0x38] sm:$0xff]  }
 0xb0e   :  { %8081 = vmatprep.subr.bf16.mxu0 %v10938_v60  ;;  %v10944_v60 = vld [vmem:[#allocation11 + $0x70] sm:$0xff]   ;;  %9393 = vmatpush3.bf16.msra.mxu1 %v10943_v59 }
 0xb0f   :  { %9394 = vmatprep.subr.bf16.mxu1 %v10944_v60 }
 0xb11   :  { %8082 = vmatpush2.bf16.msra.mxu0 %v10936_v62  ;;  %v10945_v62 = vld [vmem:[#allocation11 + $0x30] sm:$0xff]  }
 0xb12   :  { %8083 = vmatprep.subr.bf16.mxu0 %v10941_v1  ;;  %v10946_v1 = vld [vmem:[#allocation11 + $0x68] sm:$0xff]   ;;  %9395 = vmatpush3.bf16.msra.mxu1 %v10945_v62 }
 0xb13   :  { %9396 = vmatprep.subr.bf16.mxu1 %v10946_v1 }
 0xb15   :  { %8084 = vmatpush2.bf16.msra.mxu0 %v10939_v2 }
 0xb18   :  { %8086 = vmatmul.mubr.bf16.vlgmr.msra.gmra.mxu0 %v11388_v34  ;;  %v7484_v34 = vrot.slane %v7459_v13, %v11296_v25  ;;  %v8124_v25 = vrot.slane %v109_v35, %v11269_v0  ;;  %v10953_v13 = vld [vmem:[#allocation11 + $0x10] sm:$0xff]  }
 0xb98   :  { %v8005_v3 = vpop.f32.mrf.mxu0  ;;  %v8046_v4 = vpop.f32.mrf.mxu1 }
 0xb99   :  { %v8006_v16 = vadd.f32 %v8005_v3, %v7464_v14  ;;  %v8047_v30 = vadd.f32 %v8046_v4, %v7472_v28  ;;  %v10954_v14 = vld [vmem:[#allocation11 + $0x48] sm:$0xff]  }
 0xb9a   :  { %v8007_v5 = vpop.f32.mrf.mxu0  ;;  %v8048_v6 = vpop.f32.mrf.mxu1 }
 0xb9b   :  { %v8008_v17 = vadd.f32 %v8007_v5, %v7468_v15  ;;  %v9374_v18 = vmul.f32 -1.442695, %v8006_v16  ;;  %v8049_v33 = vadd.f32 %v8048_v6, %v7476_v29  ;;  %v8106_v38 = vmax.f32 %v8047_v30, 0.0  ;;  %v10955_v15 = vld [vmem:[#allocation11 + $0x8] sm:$0xff]   ;;  %v10956_v16 = vld [vmem:[#allocation11 + $0x40] sm:$0xff]  }
 0xb9c   :  { %v8009_v7 = vpop.f32.mrf.mxu0  ;;  %v8050_v8 = vpop.f32.mrf.mxu1 }
 0xb9d   :  { %v9375_v19 = vmul.f32 -1.442695, %v8008_v17  ;;  %11034 = vpow2.f32 %v9374_v18  ;;  %v8107_v41 = vmax.f32 %v8049_v33, 0.0  ;;  %v10947_v7 = vld [vmem:[#allocation11 + $0x28] sm:$0xff]   ;;  %v10948_v8 = vld [vmem:[#allocation11 + $0x60] sm:$0xff]  }
 0xb9e   :  { %v8010_v9 = vpop.f32.mrf.mxu0  ;;  %v8051_v10 = vpop.f32.mrf.mxu1  ;;  %9397 = vmatpush3.bf16.msra.mxu1 %v10947_v7  ;;  %v10957_v17 = vld [vmem:[#allocation11] sm:$0xff]  }
 0xb9f   :  { %11036 = vpow2.f32 %v9375_v19  ;;  %v10949_v9 = vld [vmem:[#allocation11 + $0x20] sm:$0xff]   ;;  %9398 = vmatprep.subr.bf16.mxu1 %v10948_v8  ;;  %v10950_v10 = vld [vmem:[#allocation11 + $0x58] sm:$0xff]  }
 0xba2   :  { %9399 = vmatpush3.bf16.msra.mxu1 %v10949_v9 }
 0xba3   :  { %9400 = vmatprep.subr.bf16.mxu1 %v10950_v10 }
 0xba6   :  { %9401 = vmatpush3.bf16.msra.mxu1 %v10951_v11 }
 0xba7   :  { %9402 = vmatprep.subr.bf16.mxu1 %v10952_v12 }
 0xbaa   :  { %v11035_v23 = vpop.eup %11034  ;;  %9403 = vmatpush3.bf16.msra.mxu1 %v10953_v13 }
 0xbab   :  { %v8100_v26 = vadd.f32 1.0, %v11035_v23  ;;  %9404 = vmatprep.subr.bf16.mxu1 %v10954_v14 }
 0xbac   :  { %v11037_v24 = vpop.eup %11036 }
 0xbad   :  { %v8101_v27 = vadd.f32 1.0, %v11037_v24  ;;  %11038 = vrcp.f32 %v8100_v26 }
 0xbae   :  { %9405 = vmatpush3.bf16.msra.mxu1 %v10955_v15 }
 0xbaf   :  { %11040 = vrcp.f32 %v8101_v27  ;;  %9406 = vmatprep.subr.bf16.mxu1 %v10956_v16 }
 0xbb2   :  { %9407 = vmatpush3.bf16.msra.mxu1 %v10957_v17 }
 0xbba   :  { %v11039_v32 = vpop.eup %11038 }
 0xbbb   :  { %v8110_v40 = vsub.f32 1.0, %v11039_v32  ;;  %v8108_v20 = vmul.f32 %v11039_v32, %v8106_v38 }
 0xbbc   :  { %v11041_v36 = vpop.eup %11040 }
 0xbbd   :  { %v8111_v44 = vsub.f32 1.0, %v11041_v36  ;;  %v8109_v46 = vmul.f32 %v11041_v36, %v8107_v41 }
 0xbd8   :  { %v8087_v37 = vpop.f32.mrf.mxu0 }
 0xbd9   :  { %v8088_v39 = vadd.f32 %v8087_v37, %v7480_v31  ;;  %v112_v31 = vld [vmem:[#allocation7 + $0x5] ss:$0 sm:$0xff] }
 0xbda   :  { %v8089_v61 = vpop.f32.mrf.mxu0 }
 0xbdb   :  { %v8112_v43 = vmul.f32 %v8110_v40, %v8088_v39  ;;  %v8090_v21 = vadd.f32 %v8089_v61, %v7484_v34 }
 0xbdc   :  { %v8091_v45 = vpop.f32.mrf.mxu0 }
 0xbdd   :  { %v8114_v47 = vadd.f32 %v8112_v43, %v8108_v20  ;;  %v8113_v48 = vmul.f32 %v8111_v44, %v8090_v21 }
 0xbde   :  { %v8092_v49 = vpop.f32.mrf.mxu0 }
 0xbdf   :  { %v8115_v50 = vadd.f32 %v8113_v48, %v8109_v46  ;;  %v8127_v51 = vmul.f32 %v8120_v42, %v8114_v47 }
 0xbe1   :  { %v8128_v54 = vmul.f32 %v8124_v25, %v8115_v50  ;;  %v8140_v55 = vadd.f32 %v8133_v52, %v8127_v51 }
 0xbe3   :  { %v8141_v56 = vadd.f32 %v8137_v53, %v8128_v54 }
 0xbe5   :  { %v8142_v57 = vadd.f32 %v8141_v56, %v8140_v55 }
 0xbe7   :  { %8143 = vadd.xlane.f32.xlu0 %v8142_v57 }
 0xc70   :  { %v8144_v2 = vpop.xlane.xlu0 %8143 }
 0xc71   :  { %v8146_v3 = vmul.f32 0.00390625, %v8144_v2 }
 0xc73   :  { %v8147_v63 = vsub.f32 %v8140_v55, %v8146_v3  ;;  %v8148_v4 = vsub.f32 %v8141_v56, %v8146_v3 }
 0xc75   :  { %v8149_v0 = vmul.f32 %v8147_v63, %v8147_v63  ;;  %v8150_v5 = vmul.f32 %v8148_v4, %v8148_v4 }
 0xc77   :  { %v8151_v6 = vadd.f32 %v8150_v5, %v8149_v0 }
 0xc79   :  { %8152 = vadd.xlane.f32.xlu0 %v8151_v6 }
 0xd02   :  { %v8153_v18 = vpop.xlane.xlu0 %8152 }
 0xd03   :  { %v8154_v19 = vmul.f32 0.00390625, %v8153_v18 }
 0xd05   :  { %v8155_v23 = vadd.f32 1e-05, %v8154_v19 }
 0xd07   :  { %11042 = vrsqrt.f32 %v8155_v23 }
 0xd14   :  { %v11043_v24 = vpop.eup %11042 }
 0xd15   :  { %v8158_v26 = vmul.f32 %v11043_v24, %v8148_v4  ;;  %v8157_v27 = vmul.f32 %v11043_v24, %v8147_v63 }
 0xd17   :  { %v8160_v28 = vpack.c.bf16 %v8158_v26, %v8158_v26  ;;  %v8159_v29 = vpack.c.bf16 %v8157_v27, %v8157_v27 }
 0xd19   :  { %8321 = vmatprep.mubr.bf16.mxu1 %v8160_v28 }
 0xd1a   :  { %8322 = vmatmul.mubr.bf16.vlgmr.msra.gmra.mxu1 %v8159_v29 }
 0xdda   :  { %v9408_v30 = vpop.f32.mrf.mxu1 }
 0xddc   :  { %v9409_v32 = vpop.f32.mrf.mxu1 }
 0xddd   :  { %v9410_v33 = vadd.f32 %v9409_v32, %v9408_v30 }
 0xdde   :  { %v9411_v34 = vpop.f32.mrf.mxu1 }
 0xddf   :  { %v8324_v35 = vadd.f32 %v9410_v33, %v112_v31 }
 0xde0   :  { %v9412_v36 = vpop.f32.mrf.mxu1 }
 0xde1   :  { %8329 = vst [vmem:[#allocation13] sm:$0xff] %v8324_v35 }
 0xde2   :  { %11175 = shalt.err (!%p11172_p6)
}
 0xde3   :  { %8339 = dma.vmem_to_hbm [thread:$0]  %s8337_s5, 128, %s11412_s6, [#allocation4]  }
 0xde4   :  { %11192 = dma.done.wait [#allocation4], 128  }
 0xde5   :  { %11193 = vsyncadd [#allocation4], 4294967168 }
 0xde6   :  { %8343 = vsyncpa [#allocation3], 1 }
 0xde7   :  { %8344 = vsyncpa [#allocation6], 1 }
 0xde8   :  { %8345 = vsyncpa [#allocation9], 1 }
 0xde9   :  { %8346 = vsyncpa [#allocation12], 1 }
 0xdea   :  { %8347 = vsyncpa [#allocation4], 1 }

</bundles_post_ra>
